<compile_context>
chip_gen: v7x
topology: tpu7x:2x2x1
jax: 0.10.0
libtpu: 0.0.40
codegen_flags: <defaults>
</compile_context>

<pallas_src>
import functools

import jax
import jax.numpy as jnp
from jax.experimental import pallas as pl
from jax.experimental.pallas import tpu as pltpu


def _round_up(x, m):
    return (x + m - 1) // m * m


def _mosaic_params(dimension_semantics, block_bytes):
    # ~2x for double buffering + ~2x headroom for in-kernel temporaries.
    limit = 4 * int(block_bytes) + 8 * 1024 * 1024
    limit = max(24 * 1024 * 1024, min(limit, 64 * 1024 * 1024))
    return pltpu.CompilerParams(dimension_semantics=dimension_semantics,
                                vmem_limit_bytes=limit)


def _row_mask(nt, TH, H):
    # Validity of global rows [i*TH-1, i*TH+TH] per row tile i (halo + ragged rows).
    rows = (jnp.arange(nt) * TH - 1)[:, None] + jnp.arange(TH + 2)[None, :]
    return ((rows >= 0) & (rows < H)).astype(jnp.float32).reshape(nt, TH + 2, 1, 1)


# ----------------------------------------------------------------------------
# Pallas kernels
# ----------------------------------------------------------------------------
def _matmul_bn_act_kernel(x_ref, w_ref, scale_ref, shift_ref, o_ref, *, act, pre_abs):
    # x: (TM, Cin) f32, w: (Cin, Cout) bf16, scale/shift: (1, Cout), o: (TM, Cout)
    x = x_ref[...]
    if pre_abs:                       # fused |irfft(.)| for the s2 path (VPU)
        x = jnp.abs(x)
    y = jnp.dot(x.astype(jnp.bfloat16), w_ref[...],
                preferred_element_type=jnp.float32)
    y = y * scale_ref[...] + shift_ref[...]
    if act == "relu":
        y = jnp.maximum(y, 0.0)
    elif act == "sigmoid":
        y = jax.nn.sigmoid(y)
    o_ref[...] = y.astype(o_ref.dtype)


def _dwconv3_bn_sigmoid_kernel(xm_ref, xt_ref, xb_ref, m_ref, w_ref, scale_ref,
                               shift_ref, o_ref, buf_ref, *, TH, W):
    # Depthwise 3x3, stride 1, 'same' zero padding, folded BN, sigmoid.
    # xm: (1, TH, W, C) mid rows; xt/xb: (1, 1, W, C) halo rows; m: (1, TH+2, 1, 1)
    # buf: (1, TH+2, W+2, C) f32 VMEM scratch holding the zero-padded slab.
    C = o_ref.shape[-1]
    xs = jnp.where(m_ref[...] != 0.0,
                   jnp.concatenate([xt_ref[...], xm_ref[...], xb_ref[...]], axis=1),
                   0).astype(jnp.float32)            # single slab cast (NaN-safe select)
    zcol = jnp.zeros((1, TH + 2, 1, C), jnp.float32)
    buf_ref[:, :, 0:1, :] = zcol                     # left 'same' pad column
    buf_ref[:, :, W + 1:W + 2, :] = zcol             # right 'same' pad column
    buf_ref[:, :, 1:W + 1, :] = xs
    acc = jnp.zeros(o_ref.shape, jnp.float32)
    for t in range(9):                               # pure VPU tap sum
        dh, dw = divmod(t, 3)
        acc = acc + buf_ref[:, dh:dh + TH, dw:dw + W, :] * w_ref[t, :]
    y = acc * scale_ref[...] + shift_ref[...]
    o_ref[...] = jax.nn.sigmoid(y).astype(o_ref.dtype)


def _conv3x3_cmul_kernel(ar_m, ar_t, ar_b, ai_m, ai_t, ai_b, cr_ref, ci_ref, m_ref,
                         w_ref, scale_ref, shift_ref, orr_ref, oii_ref, buf_ref,
                         *, TH, W, C1):
    # Dense 3x3 (256->256) + folded BN + sigmoid, with cen_fr * k fused in the
    # epilogue.  Inputs arrive as bf16 [real-half, imag-half] chains; the padded
    # slab lives in a bf16 VMEM scratch so the MXU taps read bf16 directly.
    C2 = 2 * C1
    valid = m_ref[...] != 0.0
    xr = jnp.where(valid, jnp.concatenate([ar_t[...], ar_m[...], ar_b[...]], axis=1),
                   0).astype(jnp.bfloat16)
    xi = jnp.where(valid, jnp.concatenate([ai_t[...], ai_m[...], ai_b[...]], axis=1),
                   0).astype(jnp.bfloat16)
    zcol = jnp.zeros((1, TH + 2, 1, C2), jnp.bfloat16)
    buf_ref[:, :, 0:1, :] = zcol
    buf_ref[:, :, W + 1:W + 2, :] = zcol
    buf_ref[:, :, 1:W + 1, :C1] = xr
    buf_ref[:, :, 1:W + 1, C1:] = xi
    acc = jnp.zeros((1, TH, W, C2), jnp.float32)
    # NOTE: keep accumulation as += of dot results (MRB accumulation on v7x).
    for t in range(9):
        dh, dw = divmod(t, 3)
        acc = acc + jax.lax.dot_general(
            buf_ref[:, dh:dh + TH, dw:dw + W, :], w_ref[t],
            dimension_numbers=(((3,), (0,)), ((), ())),
            preferred_element_type=jnp.float32)
    k = jax.nn.sigmoid(acc * scale_ref[...] + shift_ref[...])
    kr = k[..., :C1]
    ki = k[..., C1:]
    ar = cr_ref[...]
    ai = ci_ref[...]
    orr_ref[...] = (ar * kr - ai * ki).astype(orr_ref.dtype)
    oii_ref[...] = (ar * ki + ai * kr).astype(oii_ref.dtype)


# ----------------------------------------------------------------------------
# Op wrappers
# ----------------------------------------------------------------------------
def conv1x1_bn_act(xm, w, scale, shift, act, pre_abs=False, tm=1024):
    # xm: (M, Cin) rows-on-sublanes / channels-on-lanes.  Returns (M, Cout) f32.
    M, Cin = xm.shape
    Cout = w.shape[1]
    tm = max(8, min(tm, _round_up(M, 8)))
    nt = pl.cdiv(M, tm)                 # ragged last block: masked writes, no pad
    w = w.astype(jnp.bfloat16)          # no-op when params are already bf16
    blk = tm * Cin * xm.dtype.itemsize + Cin * Cout * 2 + 2 * Cout * 4 + tm * Cout * 4
    return pl.pallas_call(
        functools.partial(_matmul_bn_act_kernel, act=act, pre_abs=pre_abs),
        grid=(nt,),
        in_specs=[pl.BlockSpec((tm, Cin), lambda i: (i, 0)),
                  pl.BlockSpec((Cin, Cout), lambda i: (0, 0)),
                  pl.BlockSpec((1, Cout), lambda i: (0, 0)),
                  pl.BlockSpec((1, Cout), lambda i: (0, 0))],
        out_specs=pl.BlockSpec((tm, Cout), lambda i: (i, 0)),
        out_shape=jax.ShapeDtypeStruct((M, Cout), jnp.float32),
        compiler_params=_mosaic_params(("parallel",), blk),
    )(xm, w, scale.reshape(1, Cout), shift.reshape(1, Cout))


def dwconv3_bn_sigmoid(x, w, scale, shift, *, row_tile=32, out_dtype=jnp.bfloat16):
    # x: (B, H, W, C) NHWC (f32 or bf16); w: (9, C).  Row-tiled with a 1-row halo.
    B, H, W, C = x.shape
    TH = max(1, min(row_tile, H))
    nt = pl.cdiv(H, TH)
    w = w.astype(jnp.float32)
    rmask = _row_mask(nt, TH, H)
    itin = x.dtype.itemsize
    blk = ((TH + 2) * W * C * itin + (TH + 2) * 4 + 9 * C * 4 + 2 * C * 4
           + TH * W * C * jnp.dtype(out_dtype).itemsize
           + (TH + 2) * (W + 2) * C * 4)

    def mid_map(b, i): return (b, i, 0, 0)
    def top_map(b, i): return (b, jnp.maximum(i * TH - 1, 0), 0, 0)
    def bot_map(b, i): return (b, jnp.minimum(i * TH + TH, H - 1), 0, 0)

    return pl.pallas_call(
        functools.partial(_dwconv3_bn_sigmoid_kernel, TH=TH, W=W),
        grid=(B, nt),
        in_specs=[
            pl.BlockSpec((1, TH, W, C), mid_map),
            pl.BlockSpec((1, 1, W, C), top_map),
            pl.BlockSpec((1, 1, W, C), bot_map),
            pl.BlockSpec((1, TH + 2, 1, 1), lambda b, i: (i, 0, 0, 0)),
            pl.BlockSpec((9, C), lambda b, i: (0, 0)),
            pl.BlockSpec((1, C), lambda b, i: (0, 0)),
            pl.BlockSpec((1, C), lambda b, i: (0, 0)),
        ],
        out_specs=pl.BlockSpec((1, TH, W, C), mid_map),
        out_shape=jax.ShapeDtypeStruct((B, H, W, C), out_dtype),
        scratch_shapes=[pltpu.VMEM((1, TH + 2, W + 2, C), jnp.float32)],
        compiler_params=_mosaic_params(("parallel", "parallel"), blk),
    )(x, x, x, rmask, w, scale.reshape(1, C), shift.reshape(1, C))


def conv3x3_cmul_bn_sigmoid(a_r, a_i, cr, ci, w, scale, shift, *, row_tile=16):
    # Dense 3x3 over [a_r | a_i] (2*C1 channels) + BN + sigmoid, then the complex
    # multiply (cr + i*ci) * (kr + i*ki) fused in the epilogue -> (orr, oii) f32.
    B, H, W, C1 = cr.shape
    C2 = 2 * C1
    TH = max(1, min(row_tile, H))
    nt = pl.cdiv(H, TH)
    w = w.astype(jnp.bfloat16)
    rmask = _row_mask(nt, TH, H)
    blk = (2 * (TH + 2) * W * C1 * a_r.dtype.itemsize    # a_r/a_i blocks (+halos)
           + 2 * TH * W * C1 * 4                         # cr, ci
           + 2 * TH * W * C1 * 4                         # orr, oii
           + (TH + 2) * 4 + 9 * C2 * C2 * 2 + 2 * C2 * 4
           + (TH + 2) * (W + 2) * C2 * 2)                # bf16 scratch slab

    def mid_map(b, i): return (b, i, 0, 0)
    def top_map(b, i): return (b, jnp.maximum(i * TH - 1, 0), 0, 0)
    def bot_map(b, i): return (b, jnp.minimum(i * TH + TH, H - 1), 0, 0)

    s = jax.ShapeDtypeStruct((B, H, W, C1), jnp.float32)
    return pl.pallas_call(
        functools.partial(_conv3x3_cmul_kernel, TH=TH, W=W, C1=C1),
        grid=(B, nt),
        in_specs=[
            pl.BlockSpec((1, TH, W, C1), mid_map),            # a_r mid
            pl.BlockSpec((1, 1, W, C1), top_map),             # a_r top halo row
            pl.BlockSpec((1, 1, W, C1), bot_map),             # a_r bottom halo row
            pl.BlockSpec((1, TH, W, C1), mid_map),            # a_i mid
            pl.BlockSpec((1, 1, W, C1), top_map),
            pl.BlockSpec((1, 1, W, C1), bot_map),
            pl.BlockSpec((1, TH, W, C1), mid_map),            # cr (for cmul)
            pl.BlockSpec((1, TH, W, C1), mid_map),            # ci
            pl.BlockSpec((1, TH + 2, 1, 1), lambda b, i: (i, 0, 0, 0)),
            pl.BlockSpec((9, C2, C2), lambda b, i: (0, 0, 0)),
            pl.BlockSpec((1, C2), lambda b, i: (0, 0)),
            pl.BlockSpec((1, C2), lambda b, i: (0, 0)),
        ],
        out_specs=(pl.BlockSpec((1, TH, W, C1), mid_map),
                   pl.BlockSpec((1, TH, W, C1), mid_map)),
        out_shape=(s, s),
        scratch_shapes=[pltpu.VMEM((1, TH + 2, W + 2, C2), jnp.bfloat16)],
        compiler_params=_mosaic_params(("parallel", "parallel"), blk),
    )(a_r, a_r, a_r, a_i, a_i, a_i, cr, ci, rmask, w,
      scale.reshape(1, C2), shift.reshape(1, C2))


# ----------------------------------------------------------------------------
# spatialPath forward (NCHW at the boundary, NHWC inside)
# ----------------------------------------------------------------------------
def spatial_path_forward(x, p):
    B, C, H, W = x.shape              # C must be 3 (8*8*3 = 192), H,W % 8 == 0
    bs = 8
    h, w = H // bs, W // bs

    # SToD(8): 'b c (h h2) (w w2) -> b (h2 w2 c) h w', realized directly as
    # rows=(b,h,w) x channels=(h2 w2 c) feeding the 1x1 matmul.
    xr = x.reshape(B, C, h, bs, w, bs)
    xm = xr.transpose(0, 2, 4, 3, 5, 1).reshape(B * h * w, bs * bs * C)

    # s1: 1x1 conv 192->128 + BN + ReLU
    s1 = conv1x1_bn_act(xm, p["s1_w"], p["s1_scale"], p["s1_shift"], act="relu")
    C1 = s1.shape[1]
    s1 = s1.reshape(B, h, w, C1)

    # TODO(synk): FFT ops (rfftn/fftshift/ifftshift/irfftn) have no Pallas equivalent.
    fr = jnp.fft.rfftn(s1, axes=(1, 2))
    cen = jnp.fft.fftshift(fr, axes=(1, 2))          # (B, h, Wf, C1) complex64
    cr = jnp.real(cen)
    ci = jnp.imag(cen)

    # k channels use a [real | imag] layout (a fixed permutation of PyTorch's
    # interleaved '(c z)' view_as_real layout, applied consistently to the
    # synthetic kernel[0..2] parameters).  kernel[0..1] are depthwise, so the
    # two halves are processed as independent 128-channel chains (no concat).
    a_r = dwconv3_bn_sigmoid(cr, p["k0_w"][:, :C1], p["k0_scale"][:C1], p["k0_shift"][:C1])
    a_i = dwconv3_bn_sigmoid(ci, p["k0_w"][:, C1:], p["k0_scale"][C1:], p["k0_shift"][C1:])
    a_r = dwconv3_bn_sigmoid(a_r, p["k1_w"][:, :C1], p["k1_scale"][:C1], p["k1_shift"][:C1])
    a_i = dwconv3_bn_sigmoid(a_i, p["k1_w"][:, C1:], p["k1_scale"][C1:], p["k1_shift"][C1:])

    # kernel[2] (dense 3x3 + BN + Sigmoid) with cen_fr * k fused into the epilogue.
    orr, oii = conv3x3_cmul_bn_sigmoid(a_r, a_i, cr, ci,
                                       p["k2_w"], p["k2_scale"], p["k2_shift"])

    fr2 = jnp.fft.ifftshift(orr + 1j * oii, axes=(1, 2))
    out = jnp.fft.irfftn(fr2, s=(h, w), axes=(1, 2))  # (B, h, w, C1) f32

    # s2: |.| + 1x1 conv 128->128 + BN + ReLU (abs fused into the matmul kernel)
    out = conv1x1_bn_act(out.reshape(B * h * w, C1),
                         p["s2_w"], p["s2_scale"], p["s2_shift"],
                         act="relu", pre_abs=True)

    # back to the module's NCHW interface
    return out.reshape(B, h, w, C1).transpose(0, 3, 1, 2)


# ----------------------------------------------------------------------------
# Deterministic parameter construction (synthetic, no checkpoint load)
# ----------------------------------------------------------------------------
def _bn_fold(key, c, eps=1e-5):
    k1, k2, k3, k4 = jax.random.split(key, 4)
    gamma = 1.0 + 0.1 * jax.random.normal(k1, (c,), jnp.float32)
    beta = 0.1 * jax.random.normal(k2, (c,), jnp.float32)
    mean = 0.1 * jax.random.normal(k3, (c,), jnp.float32)
    var = 1.0 + 0.1 * jnp.abs(jax.random.normal(k4, (c,), jnp.float32))
    scale = gamma / jnp.sqrt(var + eps)
    shift = beta - mean * scale
    return scale, shift


def make_params(key):
    ks = jax.random.split(key, 10)
    p = {}
    # s1: Conv 1x1 192 -> 128 (no bias, BN folded); MXU weight kept in bf16
    p["s1_w"] = (0.05 * jax.random.normal(ks[0], (192, 128), jnp.float32)).astype(jnp.bfloat16)
    p["s1_scale"], p["s1_shift"] = _bn_fold(ks[1], 128)
    # kernel[0], kernel[1]: depthwise 3x3, 256 channels ([real | imag] layout)
    p["k0_w"] = 0.2 * jax.random.normal(ks[2], (9, 256), jnp.float32)
    p["k0_scale"], p["k0_shift"] = _bn_fold(ks[3], 256)
    p["k1_w"] = 0.2 * jax.random.normal(ks[4], (9, 256), jnp.float32)
    p["k1_scale"], p["k1_shift"] = _bn_fold(ks[5], 256)
    # kernel[2]: dense 3x3, 256 -> 256; MXU weight kept in bf16
    p["k2_w"] = (0.02 * jax.random.normal(ks[6], (9, 256, 256), jnp.float32)).astype(jnp.bfloat16)
    p["k2_scale"], p["k2_shift"] = _bn_fold(ks[7], 256)
    # s2: Conv 1x1 128 -> 128; MXU weight kept in bf16
    p["s2_w"] = (0.05 * jax.random.normal(ks[8], (128, 128), jnp.float32)).astype(jnp.bfloat16)
    p["s2_scale"], p["s2_shift"] = _bn_fold(ks[9], 128)
    return p


if __name__ == "__main__":
    key = jax.random.PRNGKey(0)
    kx, kp = jax.random.split(key)
    # input implied by the module: C=3 (8*8*3=192), H,W divisible by 8
    x = jax.random.normal(kx, (2, 3, 32, 32), jnp.float32)
    params = make_params(kp)

    fwd = jax.jit(spatial_path_forward)
    out = fwd(x, params)
    out = jax.block_until_ready(out)
    assert out.shape == (2, 128, 4, 4), out.shape
    assert jnp.isfinite(out).all()
    print("KERNEL_OK")
</pallas_src>

<mosaic_0001>
module attributes {stable_mosaic.version = 11 : i64} {
  func.func @_matmul_bn_act_kernel(%arg0: i32, %arg1: memref<32x192xf32, #tpu.memory_space<vmem>>, %arg2: memref<192x128xbf16, #tpu.memory_space<vmem>>, %arg3: memref<1x128xf32, #tpu.memory_space<vmem>>, %arg4: memref<1x128xf32, #tpu.memory_space<vmem>>, %arg5: memref<32x128xf32, #tpu.memory_space<vmem>>) attributes {dimension_semantics = [#tpu.dimension_semantics<parallel>], iteration_bounds = array<i64: 1>, scalar_prefetch = 0 : i64, scratch_operands = 0 : i64, tpu.core_type = #tpu.core_type<tc>, window_params = [{transform_indices = @transform_0, window_bounds = array<i64: 32, 192>}, {pipeline_mode = #tpu.pipeline_mode<synchronous>, transform_indices = @transform_1, window_bounds = array<i64: 192, 128>}, {pipeline_mode = #tpu.pipeline_mode<synchronous>, transform_indices = @transform_2, window_bounds = array<i64: 1, 128>}, {pipeline_mode = #tpu.pipeline_mode<synchronous>, transform_indices = @transform_3, window_bounds = array<i64: 1, 128>}, {transform_indices = @transform_4, window_bounds = array<i64: 32, 128>}]} {
    %c0 = arith.constant 0 : index
    %c0_0 = arith.constant 0 : index
    %0 = vector.load %arg1[%c0, %c0_0] : memref<32x192xf32, #tpu.memory_space<vmem>>, vector<32x192xf32>
    %1 = arith.truncf %0 : vector<32x192xf32> to vector<32x192xbf16>
    %c0_1 = arith.constant 0 : index
    %c0_2 = arith.constant 0 : index
    %2 = vector.load %arg2[%c0_1, %c0_2] : memref<192x128xbf16, #tpu.memory_space<vmem>>, vector<192x128xbf16>
    %cst = arith.constant dense<0.000000e+00> : vector<32x128xf32>
    %3 = tpu.matmul %1, %2, %cst {dimension_numbers = #tpu.dot_dimension_numbers<[1], [0], [0], [1], [0, 0, 1, 1], [], []>} : vector<32x192xbf16>, vector<192x128xbf16>, vector<32x128xf32> -> vector<32x128xf32>
    %c0_3 = arith.constant 0 : index
    %c0_4 = arith.constant 0 : index
    %4 = vector.load %arg3[%c0_3, %c0_4] : memref<1x128xf32, #tpu.memory_space<vmem>>, vector<1x128xf32>
    %5 = vector.broadcast %4 : vector<1x128xf32> to vector<32x128xf32>
    %6 = arith.mulf %3, %5 : vector<32x128xf32>
    %c0_5 = arith.constant 0 : index
    %c0_6 = arith.constant 0 : index
    %7 = vector.load %arg4[%c0_5, %c0_6] : memref<1x128xf32, #tpu.memory_space<vmem>>, vector<1x128xf32>
    %8 = vector.broadcast %7 : vector<1x128xf32> to vector<32x128xf32>
    %9 = arith.addf %6, %8 : vector<32x128xf32>
    %cst_7 = arith.constant 0.000000e+00 : f32
    %10 = vector.broadcast %cst_7 : f32 to vector<32x128xf32>
    %11 = arith.maximumf %9, %10 : vector<32x128xf32>
    %c0_8 = arith.constant 0 : index
    %c0_9 = arith.constant 0 : index
    %12 = vector.load %arg5[%c0_8, %c0_9] : memref<32x128xf32, #tpu.memory_space<vmem>>, vector<32x128xf32>
    tpu.vector_store %arg5[%c0_8, %c0_9], %11 {strides = array<i32>} : memref<32x128xf32, #tpu.memory_space<vmem>>, vector<32x128xf32>,
    return
  }
  func.func @transform_0(%arg0: i32) -> (i32, i32) {
    %c0_i32 = arith.constant 0 : i32
    %c0_i32_0 = arith.constant 0 : i32
    return %arg0, %c0_i32 : i32, i32
  }
  func.func @transform_1(%arg0: i32) -> (i32, i32) {
    %c0_i32 = arith.constant 0 : i32
    %c0_i32_0 = arith.constant 0 : i32
    %c0_i32_1 = arith.constant 0 : i32
    return %c0_i32, %c0_i32_0 : i32, i32
  }
  func.func @transform_2(%arg0: i32) -> (i32, i32) {
    %c0_i32 = arith.constant 0 : i32
    %c0_i32_0 = arith.constant 0 : i32
    %c0_i32_1 = arith.constant 0 : i32
    return %c0_i32, %c0_i32_0 : i32, i32
  }
  func.func @transform_3(%arg0: i32) -> (i32, i32) {
    %c0_i32 = arith.constant 0 : i32
    %c0_i32_0 = arith.constant 0 : i32
    %c0_i32_1 = arith.constant 0 : i32
    return %c0_i32, %c0_i32_0 : i32, i32
  }
  func.func @transform_4(%arg0: i32) -> (i32, i32) {
    %c0_i32 = arith.constant 0 : i32
    %c0_i32_0 = arith.constant 0 : i32
    return %arg0, %c0_i32 : i32, i32
  }
}

module attributes {stable_mosaic.version = 11 : i64} {
  func.func @_dwconv3_bn_sigmoid_kernel(%arg0: i32, %arg1: i32, %arg2: memref<1x4x3x128xf32, #tpu.memory_space<vmem>>, %arg3: memref<1x1x3x128xf32, #tpu.memory_space<vmem>>, %arg4: memref<1x1x3x128xf32, #tpu.memory_space<vmem>>, %arg5: memref<1x6x1x1xf32, #tpu.memory_space<vmem>>, %arg6: memref<9x128xf32, #tpu.memory_space<vmem>>, %arg7: memref<1x128xf32, #tpu.memory_space<vmem>>, %arg8: memref<1x128xf32, #tpu.memory_space<vmem>>, %arg9: memref<1x4x3x128xbf16, #tpu.memory_space<vmem>>, %arg10: memref<1x6x5x128xf32, #tpu.memory_space<vmem>>) attributes {dimension_semantics = [#tpu.dimension_semantics<parallel>, #tpu.dimension_semantics<parallel>], iteration_bounds = array<i64: 2, 1>, scalar_prefetch = 0 : i64, scratch_operands = 1 : i64, tpu.core_type = #tpu.core_type<tc>, window_params = [{transform_indices = @transform_0, window_bounds = array<i64: 1, 4, 3, 128>}, {transform_indices = @transform_1, window_bounds = array<i64: 1, 1, 3, 128>}, {transform_indices = @transform_2, window_bounds = array<i64: 1, 1, 3, 128>}, {transform_indices = @transform_3, window_bounds = array<i64: 1, 6, 1, 1>}, {pipeline_mode = #tpu.pipeline_mode<synchronous>, transform_indices = @transform_4, window_bounds = array<i64: 9, 128>}, {pipeline_mode = #tpu.pipeline_mode<synchronous>, transform_indices = @transform_5, window_bounds = array<i64: 1, 128>}, {pipeline_mode = #tpu.pipeline_mode<synchronous>, transform_indices = @transform_6, window_bounds = array<i64: 1, 128>}, {transform_indices = @transform_7, window_bounds = array<i64: 1, 4, 3, 128>}]} {
    %c0 = arith.constant 0 : index
    %c0_0 = arith.constant 0 : index
    %c0_1 = arith.constant 0 : index
    %c0_2 = arith.constant 0 : index
    %0 = vector.load %arg5[%c0, %c0_0, %c0_1, %c0_2] : memref<1x6x1x1xf32, #tpu.memory_space<vmem>>, vector<1x6x1x1xf32>
    %cst = arith.constant 0.000000e+00 : f32
    %1 = vector.broadcast %cst : f32 to vector<1x6x1x1xf32>
    %2 = arith.cmpf one, %0, %1 : vector<1x6x1x1xf32>
    %c0_3 = arith.constant 0 : index
    %c0_4 = arith.constant 0 : index
    %c0_5 = arith.constant 0 : index
    %c0_6 = arith.constant 0 : index
    %3 = vector.load %arg3[%c0_3, %c0_4, %c0_5, %c0_6] : memref<1x1x3x128xf32, #tpu.memory_space<vmem>>, vector<1x1x3x128xf32>
    %c0_7 = arith.constant 0 : index
    %c0_8 = arith.constant 0 : index
    %c0_9 = arith.constant 0 : index
    %c0_10 = arith.constant 0 : index
    %4 = vector.load %arg2[%c0_7, %c0_8, %c0_9, %c0_10] : memref<1x4x3x128xf32, #tpu.memory_space<vmem>>, vector<1x4x3x128xf32>
    %c0_11 = arith.constant 0 : index
    %c0_12 = arith.constant 0 : index
    %c0_13 = arith.constant 0 : index
    %c0_14 = arith.constant 0 : index
    %5 = vector.load %arg4[%c0_11, %c0_12, %c0_13, %c0_14] : memref<1x1x3x128xf32, #tpu.memory_space<vmem>>, vector<1x1x3x128xf32>
    %6 = tpu.concatenate %3, %4, %5 in 1 : vector<1x1x3x128xf32>, vector<1x4x3x128xf32>, vector<1x1x3x128xf32> -> vector<1x6x3x128xf32>
    %c0_i32 = arith.constant 0 : i32
    %7 = arith.sitofp %c0_i32 : i32 to f32
    %8 = vector.shape_cast %2 : vector<1x6x1x1xi1> to vector<1x6x1x1xi1>
    %9 = vector.broadcast %8 : vector<1x6x1x1xi1> to vector<1x6x3x128xi1>
    %10 = vector.broadcast %7 : f32 to vector<1x6x3x128xf32>
    %11 = arith.select %9, %6, %10 : vector<1x6x3x128xi1>, vector<1x6x3x128xf32>
    %cst_15 = arith.constant 0.000000e+00 : f32
    %12 = vector.broadcast %cst_15 : f32 to vector<1x6x1x128xf32>
    %c0_16 = arith.constant 0 : index
    %c0_17 = arith.constant 0 : index
    %c0_18 = arith.constant 0 : index
    %c0_19 = arith.constant 0 : index
    %13 = vector.load %arg10[%c0_16, %c0_17, %c0_18, %c0_19] : memref<1x6x5x128xf32, #tpu.memory_space<vmem>>, vector<1x6x1x128xf32>
    tpu.vector_store %arg10[%c0_16, %c0_17, %c0_18, %c0_19], %12 {strides = array<i32>} : memref<1x6x5x128xf32, #tpu.memory_space<vmem>>, vector<1x6x1x128xf32>,
    %c0_20 = arith.constant 0 : index
    %c0_21 = arith.constant 0 : index
    %c4 = arith.constant 4 : index
    %c0_22 = arith.constant 0 : index
    %14 = vector.load %arg10[%c0_20, %c0_21, %c4, %c0_22] : memref<1x6x5x128xf32, #tpu.memory_space<vmem>>, vector<1x6x1x128xf32>
    tpu.vector_store %arg10[%c0_20, %c0_21, %c4, %c0_22], %12 {strides = array<i32>} : memref<1x6x5x128xf32, #tpu.memory_space<vmem>>, vector<1x6x1x128xf32>,
    %c0_23 = arith.constant 0 : index
    %c0_24 = arith.constant 0 : index
    %c1 = arith.constant 1 : index
    %c0_25 = arith.constant 0 : index
    %15 = vector.load %arg10[%c0_23, %c0_24, %c1, %c0_25] : memref<1x6x5x128xf32, #tpu.memory_space<vmem>>, vector<1x6x3x128xf32>
    tpu.vector_store %arg10[%c0_23, %c0_24, %c1, %c0_25], %11 {strides = array<i32>} : memref<1x6x5x128xf32, #tpu.memory_space<vmem>>, vector<1x6x3x128xf32>,
    %cst_26 = arith.constant 0.000000e+00 : f32
    %16 = vector.broadcast %cst_26 : f32 to vector<1x4x3x128xf32>
    %c0_27 = arith.constant 0 : index
    %c0_28 = arith.constant 0 : index
    %c0_29 = arith.constant 0 : index
    %c0_30 = arith.constant 0 : index
    %17 = vector.load %arg10[%c0_27, %c0_28, %c0_29, %c0_30] : memref<1x6x5x128xf32, #tpu.memory_space<vmem>>, vector<1x4x3x128xf32>
    %c0_31 = arith.constant 0 : index
    %c0_32 = arith.constant 0 : index
    %18 = vector.load %arg6[%c0_31, %c0_32] : memref<9x128xf32, #tpu.memory_space<vmem>>, vector<1x128xf32>
    %19 = vector.shape_cast %18 : vector<1x128xf32> to vector<128xf32>
    %20 = vector.shape_cast %19 : vector<128xf32> to vector<1x1x1x128xf32>
    %21 = vector.broadcast %20 : vector<1x1x1x128xf32> to vector<1x4x3x128xf32>
    %22 = arith.mulf %17, %21 : vector<1x4x3x128xf32>
    %23 = arith.addf %16, %22 : vector<1x4x3x128xf32>
    %c0_33 = arith.constant 0 : index
    %c0_34 = arith.constant 0 : index
    %c1_35 = arith.constant 1 : index
    %c0_36 = arith.constant 0 : index
    %24 = vector.load %arg10[%c0_33, %c0_34, %c1_35, %c0_36] : memref<1x6x5x128xf32, #tpu.memory_space<vmem>>, vector<1x4x3x128xf32>
    %c1_37 = arith.constant 1 : index
    %c0_38 = arith.constant 0 : index
    %25 = vector.load %arg6[%c1_37, %c0_38] : memref<9x128xf32, #tpu.memory_space<vmem>>, vector<1x128xf32>
    %26 = vector.shape_cast %25 : vector<1x128xf32> to vector<128xf32>
    %27 = vector.shape_cast %26 : vector<128xf32> to vector<1x1x1x128xf32>
    %28 = vector.broadcast %27 : vector<1x1x1x128xf32> to vector<1x4x3x128xf32>
    %29 = arith.mulf %24, %28 : vector<1x4x3x128xf32>
    %30 = arith.addf %23, %29 : vector<1x4x3x128xf32>
    %c0_39 = arith.constant 0 : index
    %c0_40 = arith.constant 0 : index
    %c2 = arith.constant 2 : index
    %c0_41 = arith.constant 0 : index
    %31 = vector.load %arg10[%c0_39, %c0_40, %c2, %c0_41] : memref<1x6x5x128xf32, #tpu.memory_space<vmem>>, vector<1x4x3x128xf32>
    %c2_42 = arith.constant 2 : index
    %c0_43 = arith.constant 0 : index
    %32 = vector.load %arg6[%c2_42, %c0_43] : memref<9x128xf32, #tpu.memory_space<vmem>>, vector<1x128xf32>
    %33 = vector.shape_cast %32 : vector<1x128xf32> to vector<128xf32>
    %34 = vector.shape_cast %33 : vector<128xf32> to vector<1x1x1x128xf32>
    %35 = vector.broadcast %34 : vector<1x1x1x128xf32> to vector<1x4x3x128xf32>
    %36 = arith.mulf %31, %35 : vector<1x4x3x128xf32>
    %37 = arith.addf %30, %36 : vector<1x4x3x128xf32>
    %c0_44 = arith.constant 0 : index
    %c1_45 = arith.constant 1 : index
    %c0_46 = arith.constant 0 : index
    %c0_47 = arith.constant 0 : index
    %38 = vector.load %arg10[%c0_44, %c1_45, %c0_46, %c0_47] : memref<1x6x5x128xf32, #tpu.memory_space<vmem>>, vector<1x4x3x128xf32>
    %c3 = arith.constant 3 : index
    %c0_48 = arith.constant 0 : index
    %39 = vector.load %arg6[%c3, %c0_48] : memref<9x128xf32, #tpu.memory_space<vmem>>, vector<1x128xf32>
    %40 = vector.shape_cast %39 : vector<1x128xf32> to vector<128xf32>
    %41 = vector.shape_cast %40 : vector<128xf32> to vector<1x1x1x128xf32>
    %42 = vector.broadcast %41 : vector<1x1x1x128xf32> to vector<1x4x3x128xf32>
    %43 = arith.mulf %38, %42 : vector<1x4x3x128xf32>
    %44 = arith.addf %37, %43 : vector<1x4x3x128xf32>
    %c0_49 = arith.constant 0 : index
    %c1_50 = arith.constant 1 : index
    %c1_51 = arith.constant 1 : index
    %c0_52 = arith.constant 0 : index
    %45 = vector.load %arg10[%c0_49, %c1_50, %c1_51, %c0_52] : memref<1x6x5x128xf32, #tpu.memory_space<vmem>>, vector<1x4x3x128xf32>
    %c4_53 = arith.constant 4 : index
    %c0_54 = arith.constant 0 : index
    %46 = vector.load %arg6[%c4_53, %c0_54] : memref<9x128xf32, #tpu.memory_space<vmem>>, vector<1x128xf32>
    %47 = vector.shape_cast %46 : vector<1x128xf32> to vector<128xf32>
    %48 = vector.shape_cast %47 : vector<128xf32> to vector<1x1x1x128xf32>
    %49 = vector.broadcast %48 : vector<1x1x1x128xf32> to vector<1x4x3x128xf32>
    %50 = arith.mulf %45, %49 : vector<1x4x3x128xf32>
    %51 = arith.addf %44, %50 : vector<1x4x3x128xf32>
    %c0_55 = arith.constant 0 : index
    %c1_56 = arith.constant 1 : index
    %c2_57 = arith.constant 2 : index
    %c0_58 = arith.constant 0 : index
    %52 = vector.load %arg10[%c0_55, %c1_56, %c2_57, %c0_58] : memref<1x6x5x128xf32, #tpu.memory_space<vmem>>, vector<1x4x3x128xf32>
    %c5 = arith.constant 5 : index
    %c0_59 = arith.constant 0 : index
    %53 = vector.load %arg6[%c5, %c0_59] : memref<9x128xf32, #tpu.memory_space<vmem>>, vector<1x128xf32>
    %54 = vector.shape_cast %53 : vector<1x128xf32> to vector<128xf32>
    %55 = vector.shape_cast %54 : vector<128xf32> to vector<1x1x1x128xf32>
    %56 = vector.broadcast %55 : vector<1x1x1x128xf32> to vector<1x4x3x128xf32>
    %57 = arith.mulf %52, %56 : vector<1x4x3x128xf32>
    %58 = arith.addf %51, %57 : vector<1x4x3x128xf32>
    %c0_60 = arith.constant 0 : index
    %c2_61 = arith.constant 2 : index
    %c0_62 = arith.constant 0 : index
    %c0_63 = arith.constant 0 : index
    %59 = vector.load %arg10[%c0_60, %c2_61, %c0_62, %c0_63] : memref<1x6x5x128xf32, #tpu.memory_space<vmem>>, vector<1x4x3x128xf32>
    %c6 = arith.constant 6 : index
    %c0_64 = arith.constant 0 : index
    %60 = vector.load %arg6[%c6, %c0_64] : memref<9x128xf32, #tpu.memory_space<vmem>>, vector<1x128xf32>
    %61 = vector.shape_cast %60 : vector<1x128xf32> to vector<128xf32>
    %62 = vector.shape_cast %61 : vector<128xf32> to vector<1x1x1x128xf32>
    %63 = vector.broadcast %62 : vector<1x1x1x128xf32> to vector<1x4x3x128xf32>
    %64 = arith.mulf %59, %63 : vector<1x4x3x128xf32>
    %65 = arith.addf %58, %64 : vector<1x4x3x128xf32>
    %c0_65 = arith.constant 0 : index
    %c2_66 = arith.constant 2 : index
    %c1_67 = arith.constant 1 : index
    %c0_68 = arith.constant 0 : index
    %66 = vector.load %arg10[%c0_65, %c2_66, %c1_67, %c0_68] : memref<1x6x5x128xf32, #tpu.memory_space<vmem>>, vector<1x4x3x128xf32>
    %c7 = arith.constant 7 : index
    %c0_69 = arith.constant 0 : index
    %67 = vector.load %arg6[%c7, %c0_69] : memref<9x128xf32, #tpu.memory_space<vmem>>, vector<1x128xf32>
    %68 = vector.shape_cast %67 : vector<1x128xf32> to vector<128xf32>
    %69 = vector.shape_cast %68 : vector<128xf32> to vector<1x1x1x128xf32>
    %70 = vector.broadcast %69 : vector<1x1x1x128xf32> to vector<1x4x3x128xf32>
    %71 = arith.mulf %66, %70 : vector<1x4x3x128xf32>
    %72 = arith.addf %65, %71 : vector<1x4x3x128xf32>
    %c0_70 = arith.constant 0 : index
    %c2_71 = arith.constant 2 : index
    %c2_72 = arith.constant 2 : index
    %c0_73 = arith.constant 0 : index
    %73 = vector.load %arg10[%c0_70, %c2_71, %c2_72, %c0_73] : memref<1x6x5x128xf32, #tpu.memory_space<vmem>>, vector<1x4x3x128xf32>
    %c8 = arith.constant 8 : index
    %c0_74 = arith.constant 0 : index
    %74 = vector.load %arg6[%c8, %c0_74] : memref<9x128xf32, #tpu.memory_space<vmem>>, vector<1x128xf32>
    %75 = vector.shape_cast %74 : vector<1x128xf32> to vector<128xf32>
    %76 = vector.shape_cast %75 : vector<128xf32> to vector<1x1x1x128xf32>
    %77 = vector.broadcast %76 : vector<1x1x1x128xf32> to vector<1x4x3x128xf32>
    %78 = arith.mulf %73, %77 : vector<1x4x3x128xf32>
    %79 = arith.addf %72, %78 : vector<1x4x3x128xf32>
    %c0_75 = arith.constant 0 : index
    %c0_76 = arith.constant 0 : index
    %80 = vector.load %arg7[%c0_75, %c0_76] : memref<1x128xf32, #tpu.memory_space<vmem>>, vector<1x128xf32>
    %81 = vector.shape_cast %80 : vector<1x128xf32> to vector<1x1x1x128xf32>
    %82 = vector.broadcast %81 : vector<1x1x1x128xf32> to vector<1x4x3x128xf32>
    %83 = arith.mulf %79, %82 : vector<1x4x3x128xf32>
    %c0_77 = arith.constant 0 : index
    %c0_78 = arith.constant 0 : index
    %84 = vector.load %arg8[%c0_77, %c0_78] : memref<1x128xf32, #tpu.memory_space<vmem>>, vector<1x128xf32>
    %85 = vector.shape_cast %84 : vector<1x128xf32> to vector<1x1x1x128xf32>
    %86 = vector.broadcast %85 : vector<1x1x1x128xf32> to vector<1x4x3x128xf32>
    %87 = arith.addf %83, %86 : vector<1x4x3x128xf32>
    %88 = arith.negf %87 : vector<1x4x3x128xf32>
    %89 = math.exp %88 : vector<1x4x3x128xf32>
    %cst_79 = arith.constant 1.000000e+00 : f32
    %90 = vector.broadcast %cst_79 : f32 to vector<1x4x3x128xf32>
    %91 = arith.addf %90, %89 : vector<1x4x3x128xf32>
    %92 = arith.divf %90, %91 : vector<1x4x3x128xf32>
    %93 = arith.truncf %92 : vector<1x4x3x128xf32> to vector<1x4x3x128xbf16>
    %c0_80 = arith.constant 0 : index
    %c0_81 = arith.constant 0 : index
    %c0_82 = arith.constant 0 : index
    %c0_83 = arith.constant 0 : index
    %94 = vector.load %arg9[%c0_80, %c0_81, %c0_82, %c0_83] : memref<1x4x3x128xbf16, #tpu.memory_space<vmem>>, vector<1x4x3x128xbf16>
    tpu.vector_store %arg9[%c0_80, %c0_81, %c0_82, %c0_83], %93 {strides = array<i32>} : memref<1x4x3x128xbf16, #tpu.memory_space<vmem>>, vector<1x4x3x128xbf16>,
    return
  }
  func.func @transform_0(%arg0: i32, %arg1: i32) -> (i32, i32, i32, i32) {
    %c0_i32 = arith.constant 0 : i32
    %c0_i32_0 = arith.constant 0 : i32
    %c0_i32_1 = arith.constant 0 : i32
    return %arg0, %arg1, %c0_i32, %c0_i32_0 : i32, i32, i32, i32
  }
  func.func @transform_1(%arg0: i32, %arg1: i32) -> (i32, i32, i32, i32) {
    %c4_i32 = arith.constant 4 : i32
    %0 = arith.muli %arg1, %c4_i32 : i32
    %c1_i32 = arith.constant 1 : i32
    %1 = arith.subi %0, %c1_i32 : i32
    %c0_i32 = arith.constant 0 : i32
    %2 = arith.maxsi %1, %c0_i32 : i32
    %c0_i32_0 = arith.constant 0 : i32
    %c0_i32_1 = arith.constant 0 : i32
    %c0_i32_2 = arith.constant 0 : i32
    return %arg0, %2, %c0_i32_0, %c0_i32_1 : i32, i32, i32, i32
  }
  func.func @transform_2(%arg0: i32, %arg1: i32) -> (i32, i32, i32, i32) {
    %c4_i32 = arith.constant 4 : i32
    %0 = arith.muli %arg1, %c4_i32 : i32
    %c4_i32_0 = arith.constant 4 : i32
    %1 = arith.addi %0, %c4_i32_0 : i32
    %c3_i32 = arith.constant 3 : i32
    %2 = arith.minsi %1, %c3_i32 : i32
    %c0_i32 = arith.constant 0 : i32
    %c0_i32_1 = arith.constant 0 : i32
    %c0_i32_2 = arith.constant 0 : i32
    return %arg0, %2, %c0_i32, %c0_i32_1 : i32, i32, i32, i32
  }
  func.func @transform_3(%arg0: i32, %arg1: i32) -> (i32, i32, i32, i32) {
    %c0_i32 = arith.constant 0 : i32
    %c0_i32_0 = arith.constant 0 : i32
    %c0_i32_1 = arith.constant 0 : i32
    %c0_i32_2 = arith.constant 0 : i32
    return %arg1, %c0_i32, %c0_i32_0, %c0_i32_1 : i32, i32, i32, i32
  }
  func.func @transform_4(%arg0: i32, %arg1: i32) -> (i32, i32) {
    %c0_i32 = arith.constant 0 : i32
    %c0_i32_0 = arith.constant 0 : i32
    %c0_i32_1 = arith.constant 0 : i32
    return %c0_i32, %c0_i32_0 : i32, i32
  }
  func.func @transform_5(%arg0: i32, %arg1: i32) -> (i32, i32) {
    %c0_i32 = arith.constant 0 : i32
    %c0_i32_0 = arith.constant 0 : i32
    %c0_i32_1 = arith.constant 0 : i32
    return %c0_i32, %c0_i32_0 : i32, i32
  }
  func.func @transform_6(%arg0: i32, %arg1: i32) -> (i32, i32) {
    %c0_i32 = arith.constant 0 : i32
    %c0_i32_0 = arith.constant 0 : i32
    %c0_i32_1 = arith.constant 0 : i32
    return %c0_i32, %c0_i32_0 : i32, i32
  }
  func.func @transform_7(%arg0: i32, %arg1: i32) -> (i32, i32, i32, i32) {
    %c0_i32 = arith.constant 0 : i32
    %c0_i32_0 = arith.constant 0 : i32
    %c0_i32_1 = arith.constant 0 : i32
    return %arg0, %arg1, %c0_i32, %c0_i32_0 : i32, i32, i32, i32
  }
}

module attributes {stable_mosaic.version = 11 : i64} {
  func.func @_dwconv3_bn_sigmoid_kernel(%arg0: i32, %arg1: i32, %arg2: memref<1x4x3x128xbf16, #tpu.memory_space<vmem>>, %arg3: memref<1x1x3x128xbf16, #tpu.memory_space<vmem>>, %arg4: memref<1x1x3x128xbf16, #tpu.memory_space<vmem>>, %arg5: memref<1x6x1x1xf32, #tpu.memory_space<vmem>>, %arg6: memref<9x128xf32, #tpu.memory_space<vmem>>, %arg7: memref<1x128xf32, #tpu.memory_space<vmem>>, %arg8: memref<1x128xf32, #tpu.memory_space<vmem>>, %arg9: memref<1x4x3x128xbf16, #tpu.memory_space<vmem>>, %arg10: memref<1x6x5x128xf32, #tpu.memory_space<vmem>>) attributes {dimension_semantics = [#tpu.dimension_semantics<parallel>, #tpu.dimension_semantics<parallel>], iteration_bounds = array<i64: 2, 1>, scalar_prefetch = 0 : i64, scratch_operands = 1 : i64, tpu.core_type = #tpu.core_type<tc>, window_params = [{transform_indices = @transform_0, window_bounds = array<i64: 1, 4, 3, 128>}, {transform_indices = @transform_1, window_bounds = array<i64: 1, 1, 3, 128>}, {transform_indices = @transform_2, window_bounds = array<i64: 1, 1, 3, 128>}, {transform_indices = @transform_3, window_bounds = array<i64: 1, 6, 1, 1>}, {pipeline_mode = #tpu.pipeline_mode<synchronous>, transform_indices = @transform_4, window_bounds = array<i64: 9, 128>}, {pipeline_mode = #tpu.pipeline_mode<synchronous>, transform_indices = @transform_5, window_bounds = array<i64: 1, 128>}, {pipeline_mode = #tpu.pipeline_mode<synchronous>, transform_indices = @transform_6, window_bounds = array<i64: 1, 128>}, {transform_indices = @transform_7, window_bounds = array<i64: 1, 4, 3, 128>}]} {
    %c0 = arith.constant 0 : index
    %c0_0 = arith.constant 0 : index
    %c0_1 = arith.constant 0 : index
    %c0_2 = arith.constant 0 : index
    %0 = vector.load %arg5[%c0, %c0_0, %c0_1, %c0_2] : memref<1x6x1x1xf32, #tpu.memory_space<vmem>>, vector<1x6x1x1xf32>
    %cst = arith.constant 0.000000e+00 : f32
    %1 = vector.broadcast %cst : f32 to vector<1x6x1x1xf32>
    %2 = arith.cmpf one, %0, %1 : vector<1x6x1x1xf32>
    %c0_3 = arith.constant 0 : index
    %c0_4 = arith.constant 0 : index
    %c0_5 = arith.constant 0 : index
    %c0_6 = arith.constant 0 : index
    %3 = vector.load %arg3[%c0_3, %c0_4, %c0_5, %c0_6] : memref<1x1x3x128xbf16, #tpu.memory_space<vmem>>, vector<1x1x3x128xbf16>
    %c0_7 = arith.constant 0 : index
    %c0_8 = arith.constant 0 : index
    %c0_9 = arith.constant 0 : index
    %c0_10 = arith.constant 0 : index
    %4 = vector.load %arg2[%c0_7, %c0_8, %c0_9, %c0_10] : memref<1x4x3x128xbf16, #tpu.memory_space<vmem>>, vector<1x4x3x128xbf16>
    %c0_11 = arith.constant 0 : index
    %c0_12 = arith.constant 0 : index
    %c0_13 = arith.constant 0 : index
    %c0_14 = arith.constant 0 : index
    %5 = vector.load %arg4[%c0_11, %c0_12, %c0_13, %c0_14] : memref<1x1x3x128xbf16, #tpu.memory_space<vmem>>, vector<1x1x3x128xbf16>
    %6 = tpu.concatenate %3, %4, %5 in 1 : vector<1x1x3x128xbf16>, vector<1x4x3x128xbf16>, vector<1x1x3x128xbf16> -> vector<1x6x3x128xbf16>
    %c0_i32 = arith.constant 0 : i32
    %7 = arith.sitofp %c0_i32 : i32 to bf16
    %8 = vector.shape_cast %2 : vector<1x6x1x1xi1> to vector<1x6x1x1xi1>
    %9 = vector.broadcast %8 : vector<1x6x1x1xi1> to vector<1x6x3x128xi1>
    %10 = vector.broadcast %7 : bf16 to vector<1x6x3x128xbf16>
    %11 = arith.select %9, %6, %10 : vector<1x6x3x128xi1>, vector<1x6x3x128xbf16>
    %12 = arith.extf %11 : vector<1x6x3x128xbf16> to vector<1x6x3x128xf32>
    %cst_15 = arith.constant 0.000000e+00 : f32
    %13 = vector.broadcast %cst_15 : f32 to vector<1x6x1x128xf32>
    %c0_16 = arith.constant 0 : index
    %c0_17 = arith.constant 0 : index
    %c0_18 = arith.constant 0 : index
    %c0_19 = arith.constant 0 : index
    %14 = vector.load %arg10[%c0_16, %c0_17, %c0_18, %c0_19] : memref<1x6x5x128xf32, #tpu.memory_space<vmem>>, vector<1x6x1x128xf32>
    tpu.vector_store %arg10[%c0_16, %c0_17, %c0_18, %c0_19], %13 {strides = array<i32>} : memref<1x6x5x128xf32, #tpu.memory_space<vmem>>, vector<1x6x1x128xf32>,
    %c0_20 = arith.constant 0 : index
    %c0_21 = arith.constant 0 : index
    %c4 = arith.constant 4 : index
    %c0_22 = arith.constant 0 : index
    %15 = vector.load %arg10[%c0_20, %c0_21, %c4, %c0_22] : memref<1x6x5x128xf32, #tpu.memory_space<vmem>>, vector<1x6x1x128xf32>
    tpu.vector_store %arg10[%c0_20, %c0_21, %c4, %c0_22], %13 {strides = array<i32>} : memref<1x6x5x128xf32, #tpu.memory_space<vmem>>, vector<1x6x1x128xf32>,
    %c0_23 = arith.constant 0 : index
    %c0_24 = arith.constant 0 : index
    %c1 = arith.constant 1 : index
    %c0_25 = arith.constant 0 : index
    %16 = vector.load %arg10[%c0_23, %c0_24, %c1, %c0_25] : memref<1x6x5x128xf32, #tpu.memory_space<vmem>>, vector<1x6x3x128xf32>
    tpu.vector_store %arg10[%c0_23, %c0_24, %c1, %c0_25], %12 {strides = array<i32>} : memref<1x6x5x128xf32, #tpu.memory_space<vmem>>, vector<1x6x3x128xf32>,
    %cst_26 = arith.constant 0.000000e+00 : f32
    %17 = vector.broadcast %cst_26 : f32 to vector<1x4x3x128xf32>
    %c0_27 = arith.constant 0 : index
    %c0_28 = arith.constant 0 : index
    %c0_29 = arith.constant 0 : index
    %c0_30 = arith.constant 0 : index
    %18 = vector.load %arg10[%c0_27, %c0_28, %c0_29, %c0_30] : memref<1x6x5x128xf32, #tpu.memory_space<vmem>>, vector<1x4x3x128xf32>
    %c0_31 = arith.constant 0 : index
    %c0_32 = arith.constant 0 : index
    %19 = vector.load %arg6[%c0_31, %c0_32] : memref<9x128xf32, #tpu.memory_space<vmem>>, vector<1x128xf32>
    %20 = vector.shape_cast %19 : vector<1x128xf32> to vector<128xf32>
    %21 = vector.shape_cast %20 : vector<128xf32> to vector<1x1x1x128xf32>
    %22 = vector.broadcast %21 : vector<1x1x1x128xf32> to vector<1x4x3x128xf32>
    %23 = arith.mulf %18, %22 : vector<1x4x3x128xf32>
    %24 = arith.addf %17, %23 : vector<1x4x3x128xf32>
    %c0_33 = arith.constant 0 : index
    %c0_34 = arith.constant 0 : index
    %c1_35 = arith.constant 1 : index
    %c0_36 = arith.constant 0 : index
    %25 = vector.load %arg10[%c0_33, %c0_34, %c1_35, %c0_36] : memref<1x6x5x128xf32, #tpu.memory_space<vmem>>, vector<1x4x3x128xf32>
    %c1_37 = arith.constant 1 : index
    %c0_38 = arith.constant 0 : index
    %26 = vector.load %arg6[%c1_37, %c0_38] : memref<9x128xf32, #tpu.memory_space<vmem>>, vector<1x128xf32>
    %27 = vector.shape_cast %26 : vector<1x128xf32> to vector<128xf32>
    %28 = vector.shape_cast %27 : vector<128xf32> to vector<1x1x1x128xf32>
    %29 = vector.broadcast %28 : vector<1x1x1x128xf32> to vector<1x4x3x128xf32>
    %30 = arith.mulf %25, %29 : vector<1x4x3x128xf32>
    %31 = arith.addf %24, %30 : vector<1x4x3x128xf32>
    %c0_39 = arith.constant 0 : index
    %c0_40 = arith.constant 0 : index
    %c2 = arith.constant 2 : index
    %c0_41 = arith.constant 0 : index
    %32 = vector.load %arg10[%c0_39, %c0_40, %c2, %c0_41] : memref<1x6x5x128xf32, #tpu.memory_space<vmem>>, vector<1x4x3x128xf32>
    %c2_42 = arith.constant 2 : index
    %c0_43 = arith.constant 0 : index
    %33 = vector.load %arg6[%c2_42, %c0_43] : memref<9x128xf32, #tpu.memory_space<vmem>>, vector<1x128xf32>
    %34 = vector.shape_cast %33 : vector<1x128xf32> to vector<128xf32>
    %35 = vector.shape_cast %34 : vector<128xf32> to vector<1x1x1x128xf32>
    %36 = vector.broadcast %35 : vector<1x1x1x128xf32> to vector<1x4x3x128xf32>
    %37 = arith.mulf %32, %36 : vector<1x4x3x128xf32>
    %38 = arith.addf %31, %37 : vector<1x4x3x128xf32>
    %c0_44 = arith.constant 0 : index
    %c1_45 = arith.constant 1 : index
    %c0_46 = arith.constant 0 : index
    %c0_47 = arith.constant 0 : index
    %39 = vector.load %arg10[%c0_44, %c1_45, %c0_46, %c0_47] : memref<1x6x5x128xf32, #tpu.memory_space<vmem>>, vector<1x4x3x128xf32>
    %c3 = arith.constant 3 : index
    %c0_48 = arith.constant 0 : index
    %40 = vector.load %arg6[%c3, %c0_48] : memref<9x128xf32, #tpu.memory_space<vmem>>, vector<1x128xf32>
    %41 = vector.shape_cast %40 : vector<1x128xf32> to vector<128xf32>
    %42 = vector.shape_cast %41 : vector<128xf32> to vector<1x1x1x128xf32>
    %43 = vector.broadcast %42 : vector<1x1x1x128xf32> to vector<1x4x3x128xf32>
    %44 = arith.mulf %39, %43 : vector<1x4x3x128xf32>
    %45 = arith.addf %38, %44 : vector<1x4x3x128xf32>
    %c0_49 = arith.constant 0 : index
    %c1_50 = arith.constant 1 : index
    %c1_51 = arith.constant 1 : index
    %c0_52 = arith.constant 0 : index
    %46 = vector.load %arg10[%c0_49, %c1_50, %c1_51, %c0_52] : memref<1x6x5x128xf32, #tpu.memory_space<vmem>>, vector<1x4x3x128xf32>
    %c4_53 = arith.constant 4 : index
    %c0_54 = arith.constant 0 : index
    %47 = vector.load %arg6[%c4_53, %c0_54] : memref<9x128xf32, #tpu.memory_space<vmem>>, vector<1x128xf32>
    %48 = vector.shape_cast %47 : vector<1x128xf32> to vector<128xf32>
    %49 = vector.shape_cast %48 : vector<128xf32> to vector<1x1x1x128xf32>
    %50 = vector.broadcast %49 : vector<1x1x1x128xf32> to vector<1x4x3x128xf32>
    %51 = arith.mulf %46, %50 : vector<1x4x3x128xf32>
    %52 = arith.addf %45, %51 : vector<1x4x3x128xf32>
    %c0_55 = arith.constant 0 : index
    %c1_56 = arith.constant 1 : index
    %c2_57 = arith.constant 2 : index
    %c0_58 = arith.constant 0 : index
    %53 = vector.load %arg10[%c0_55, %c1_56, %c2_57, %c0_58] : memref<1x6x5x128xf32, #tpu.memory_space<vmem>>, vector<1x4x3x128xf32>
    %c5 = arith.constant 5 : index
    %c0_59 = arith.constant 0 : index
    %54 = vector.load %arg6[%c5, %c0_59] : memref<9x128xf32, #tpu.memory_space<vmem>>, vector<1x128xf32>
    %55 = vector.shape_cast %54 : vector<1x128xf32> to vector<128xf32>
    %56 = vector.shape_cast %55 : vector<128xf32> to vector<1x1x1x128xf32>
    %57 = vector.broadcast %56 : vector<1x1x1x128xf32> to vector<1x4x3x128xf32>
    %58 = arith.mulf %53, %57 : vector<1x4x3x128xf32>
    %59 = arith.addf %52, %58 : vector<1x4x3x128xf32>
    %c0_60 = arith.constant 0 : index
    %c2_61 = arith.constant 2 : index
    %c0_62 = arith.constant 0 : index
    %c0_63 = arith.constant 0 : index
    %60 = vector.load %arg10[%c0_60, %c2_61, %c0_62, %c0_63] : memref<1x6x5x128xf32, #tpu.memory_space<vmem>>, vector<1x4x3x128xf32>
    %c6 = arith.constant 6 : index
    %c0_64 = arith.constant 0 : index
    %61 = vector.load %arg6[%c6, %c0_64] : memref<9x128xf32, #tpu.memory_space<vmem>>, vector<1x128xf32>
    %62 = vector.shape_cast %61 : vector<1x128xf32> to vector<128xf32>
    %63 = vector.shape_cast %62 : vector<128xf32> to vector<1x1x1x128xf32>
    %64 = vector.broadcast %63 : vector<1x1x1x128xf32> to vector<1x4x3x128xf32>
    %65 = arith.mulf %60, %64 : vector<1x4x3x128xf32>
    %66 = arith.addf %59, %65 : vector<1x4x3x128xf32>
    %c0_65 = arith.constant 0 : index
    %c2_66 = arith.constant 2 : index
    %c1_67 = arith.constant 1 : index
    %c0_68 = arith.constant 0 : index
    %67 = vector.load %arg10[%c0_65, %c2_66, %c1_67, %c0_68] : memref<1x6x5x128xf32, #tpu.memory_space<vmem>>, vector<1x4x3x128xf32>
    %c7 = arith.constant 7 : index
    %c0_69 = arith.constant 0 : index
    %68 = vector.load %arg6[%c7, %c0_69] : memref<9x128xf32, #tpu.memory_space<vmem>>, vector<1x128xf32>
    %69 = vector.shape_cast %68 : vector<1x128xf32> to vector<128xf32>
    %70 = vector.shape_cast %69 : vector<128xf32> to vector<1x1x1x128xf32>
    %71 = vector.broadcast %70 : vector<1x1x1x128xf32> to vector<1x4x3x128xf32>
    %72 = arith.mulf %67, %71 : vector<1x4x3x128xf32>
    %73 = arith.addf %66, %72 : vector<1x4x3x128xf32>
    %c0_70 = arith.constant 0 : index
    %c2_71 = arith.constant 2 : index
    %c2_72 = arith.constant 2 : index
    %c0_73 = arith.constant 0 : index
    %74 = vector.load %arg10[%c0_70, %c2_71, %c2_72, %c0_73] : memref<1x6x5x128xf32, #tpu.memory_space<vmem>>, vector<1x4x3x128xf32>
    %c8 = arith.constant 8 : index
    %c0_74 = arith.constant 0 : index
    %75 = vector.load %arg6[%c8, %c0_74] : memref<9x128xf32, #tpu.memory_space<vmem>>, vector<1x128xf32>
    %76 = vector.shape_cast %75 : vector<1x128xf32> to vector<128xf32>
    %77 = vector.shape_cast %76 : vector<128xf32> to vector<1x1x1x128xf32>
    %78 = vector.broadcast %77 : vector<1x1x1x128xf32> to vector<1x4x3x128xf32>
    %79 = arith.mulf %74, %78 : vector<1x4x3x128xf32>
    %80 = arith.addf %73, %79 : vector<1x4x3x128xf32>
    %c0_75 = arith.constant 0 : index
    %c0_76 = arith.constant 0 : index
    %81 = vector.load %arg7[%c0_75, %c0_76] : memref<1x128xf32, #tpu.memory_space<vmem>>, vector<1x128xf32>
    %82 = vector.shape_cast %81 : vector<1x128xf32> to vector<1x1x1x128xf32>
    %83 = vector.broadcast %82 : vector<1x1x1x128xf32> to vector<1x4x3x128xf32>
    %84 = arith.mulf %80, %83 : vector<1x4x3x128xf32>
    %c0_77 = arith.constant 0 : index
    %c0_78 = arith.constant 0 : index
    %85 = vector.load %arg8[%c0_77, %c0_78] : memref<1x128xf32, #tpu.memory_space<vmem>>, vector<1x128xf32>
    %86 = vector.shape_cast %85 : vector<1x128xf32> to vector<1x1x1x128xf32>
    %87 = vector.broadcast %86 : vector<1x1x1x128xf32> to vector<1x4x3x128xf32>
    %88 = arith.addf %84, %87 : vector<1x4x3x128xf32>
    %89 = arith.negf %88 : vector<1x4x3x128xf32>
    %90 = math.exp %89 : vector<1x4x3x128xf32>
    %cst_79 = arith.constant 1.000000e+00 : f32
    %91 = vector.broadcast %cst_79 : f32 to vector<1x4x3x128xf32>
    %92 = arith.addf %91, %90 : vector<1x4x3x128xf32>
    %93 = arith.divf %91, %92 : vector<1x4x3x128xf32>
    %94 = arith.truncf %93 : vector<1x4x3x128xf32> to vector<1x4x3x128xbf16>
    %c0_80 = arith.constant 0 : index
    %c0_81 = arith.constant 0 : index
    %c0_82 = arith.constant 0 : index
    %c0_83 = arith.constant 0 : index
    %95 = vector.load %arg9[%c0_80, %c0_81, %c0_82, %c0_83] : memref<1x4x3x128xbf16, #tpu.memory_space<vmem>>, vector<1x4x3x128xbf16>
    tpu.vector_store %arg9[%c0_80, %c0_81, %c0_82, %c0_83], %94 {strides = array<i32>} : memref<1x4x3x128xbf16, #tpu.memory_space<vmem>>, vector<1x4x3x128xbf16>,
    return
  }
  func.func @transform_0(%arg0: i32, %arg1: i32) -> (i32, i32, i32, i32) {
    %c0_i32 = arith.constant 0 : i32
    %c0_i32_0 = arith.constant 0 : i32
    %c0_i32_1 = arith.constant 0 : i32
    return %arg0, %arg1, %c0_i32, %c0_i32_0 : i32, i32, i32, i32
  }
  func.func @transform_1(%arg0: i32, %arg1: i32) -> (i32, i32, i32, i32) {
    %c4_i32 = arith.constant 4 : i32
    %0 = arith.muli %arg1, %c4_i32 : i32
    %c1_i32 = arith.constant 1 : i32
    %1 = arith.subi %0, %c1_i32 : i32
    %c0_i32 = arith.constant 0 : i32
    %2 = arith.maxsi %1, %c0_i32 : i32
    %c0_i32_0 = arith.constant 0 : i32
    %c0_i32_1 = arith.constant 0 : i32
    %c0_i32_2 = arith.constant 0 : i32
    return %arg0, %2, %c0_i32_0, %c0_i32_1 : i32, i32, i32, i32
  }
  func.func @transform_2(%arg0: i32, %arg1: i32) -> (i32, i32, i32, i32) {
    %c4_i32 = arith.constant 4 : i32
    %0 = arith.muli %arg1, %c4_i32 : i32
    %c4_i32_0 = arith.constant 4 : i32
    %1 = arith.addi %0, %c4_i32_0 : i32
    %c3_i32 = arith.constant 3 : i32
    %2 = arith.minsi %1, %c3_i32 : i32
    %c0_i32 = arith.constant 0 : i32
    %c0_i32_1 = arith.constant 0 : i32
    %c0_i32_2 = arith.constant 0 : i32
    return %arg0, %2, %c0_i32, %c0_i32_1 : i32, i32, i32, i32
  }
  func.func @transform_3(%arg0: i32, %arg1: i32) -> (i32, i32, i32, i32) {
    %c0_i32 = arith.constant 0 : i32
    %c0_i32_0 = arith.constant 0 : i32
    %c0_i32_1 = arith.constant 0 : i32
    %c0_i32_2 = arith.constant 0 : i32
    return %arg1, %c0_i32, %c0_i32_0, %c0_i32_1 : i32, i32, i32, i32
  }
  func.func @transform_4(%arg0: i32, %arg1: i32) -> (i32, i32) {
    %c0_i32 = arith.constant 0 : i32
    %c0_i32_0 = arith.constant 0 : i32
    %c0_i32_1 = arith.constant 0 : i32
    return %c0_i32, %c0_i32_0 : i32, i32
  }
  func.func @transform_5(%arg0: i32, %arg1: i32) -> (i32, i32) {
    %c0_i32 = arith.constant 0 : i32
    %c0_i32_0 = arith.constant 0 : i32
    %c0_i32_1 = arith.constant 0 : i32
    return %c0_i32, %c0_i32_0 : i32, i32
  }
  func.func @transform_6(%arg0: i32, %arg1: i32) -> (i32, i32) {
    %c0_i32 = arith.constant 0 : i32
    %c0_i32_0 = arith.constant 0 : i32
    %c0_i32_1 = arith.constant 0 : i32
    return %c0_i32, %c0_i32_0 : i32, i32
  }
  func.func @transform_7(%arg0: i32, %arg1: i32) -> (i32, i32, i32, i32) {
    %c0_i32 = arith.constant 0 : i32
    %c0_i32_0 = arith.constant 0 : i32
    %c0_i32_1 = arith.constant 0 : i32
    return %arg0, %arg1, %c0_i32, %c0_i32_0 : i32, i32, i32, i32
  }
}

module attributes {stable_mosaic.version = 11 : i64} {
  func.func @_conv3x3_cmul_kernel(%arg0: i32, %arg1: i32, %arg2: memref<1x4x3x128xbf16, #tpu.memory_space<vmem>>, %arg3: memref<1x1x3x128xbf16, #tpu.memory_space<vmem>>, %arg4: memref<1x1x3x128xbf16, #tpu.memory_space<vmem>>, %arg5: memref<1x4x3x128xbf16, #tpu.memory_space<vmem>>, %arg6: memref<1x1x3x128xbf16, #tpu.memory_space<vmem>>, %arg7: memref<1x1x3x128xbf16, #tpu.memory_space<vmem>>, %arg8: memref<1x4x3x128xf32, #tpu.memory_space<vmem>>, %arg9: memref<1x4x3x128xf32, #tpu.memory_space<vmem>>, %arg10: memref<1x6x1x1xf32, #tpu.memory_space<vmem>>, %arg11: memref<9x256x256xbf16, #tpu.memory_space<vmem>>, %arg12: memref<1x256xf32, #tpu.memory_space<vmem>>, %arg13: memref<1x256xf32, #tpu.memory_space<vmem>>, %arg14: memref<1x4x3x128xf32, #tpu.memory_space<vmem>>, %arg15: memref<1x4x3x128xf32, #tpu.memory_space<vmem>>, %arg16: memref<1x6x5x256xbf16, #tpu.memory_space<vmem>>) attributes {dimension_semantics = [#tpu.dimension_semantics<parallel>, #tpu.dimension_semantics<parallel>], iteration_bounds = array<i64: 2, 1>, scalar_prefetch = 0 : i64, scratch_operands = 1 : i64, tpu.core_type = #tpu.core_type<tc>, window_params = [{transform_indices = @transform_0, window_bounds = array<i64: 1, 4, 3, 128>}, {transform_indices = @transform_1, window_bounds = array<i64: 1, 1, 3, 128>}, {transform_indices = @transform_2, window_bounds = array<i64: 1, 1, 3, 128>}, {transform_indices = @transform_3, window_bounds = array<i64: 1, 4, 3, 128>}, {transform_indices = @transform_4, window_bounds = array<i64: 1, 1, 3, 128>}, {transform_indices = @transform_5, window_bounds = array<i64: 1, 1, 3, 128>}, {transform_indices = @transform_6, window_bounds = array<i64: 1, 4, 3, 128>}, {transform_indices = @transform_7, window_bounds = array<i64: 1, 4, 3, 128>}, {transform_indices = @transform_8, window_bounds = array<i64: 1, 6, 1, 1>}, {pipeline_mode = #tpu.pipeline_mode<synchronous>, transform_indices = @transform_9, window_bounds = array<i64: 9, 256, 256>}, {pipeline_mode = #tpu.pipeline_mode<synchronous>, transform_indices = @transform_10, window_bounds = array<i64: 1, 256>}, {pipeline_mode = #tpu.pipeline_mode<synchronous>, transform_indices = @transform_11, window_bounds = array<i64: 1, 256>}, {transform_indices = @transform_12, window_bounds = array<i64: 1, 4, 3, 128>}, {transform_indices = @transform_13, window_bounds = array<i64: 1, 4, 3, 128>}]} {
    %c0 = arith.constant 0 : index
    %c0_0 = arith.constant 0 : index
    %c0_1 = arith.constant 0 : index
    %c0_2 = arith.constant 0 : index
    %0 = vector.load %arg10[%c0, %c0_0, %c0_1, %c0_2] : memref<1x6x1x1xf32, #tpu.memory_space<vmem>>, vector<1x6x1x1xf32>
    %cst = arith.constant 0.000000e+00 : f32
    %1 = vector.broadcast %cst : f32 to vector<1x6x1x1xf32>
    %2 = arith.cmpf one, %0, %1 : vector<1x6x1x1xf32>
    %c0_3 = arith.constant 0 : index
    %c0_4 = arith.constant 0 : index
    %c0_5 = arith.constant 0 : index
    %c0_6 = arith.constant 0 : index
    %3 = vector.load %arg3[%c0_3, %c0_4, %c0_5, %c0_6] : memref<1x1x3x128xbf16, #tpu.memory_space<vmem>>, vector<1x1x3x128xbf16>
    %c0_7 = arith.constant 0 : index
    %c0_8 = arith.constant 0 : index
    %c0_9 = arith.constant 0 : index
    %c0_10 = arith.constant 0 : index
    %4 = vector.load %arg2[%c0_7, %c0_8, %c0_9, %c0_10] : memref<1x4x3x128xbf16, #tpu.memory_space<vmem>>, vector<1x4x3x128xbf16>
    %c0_11 = arith.constant 0 : index
    %c0_12 = arith.constant 0 : index
    %c0_13 = arith.constant 0 : index
    %c0_14 = arith.constant 0 : index
    %5 = vector.load %arg4[%c0_11, %c0_12, %c0_13, %c0_14] : memref<1x1x3x128xbf16, #tpu.memory_space<vmem>>, vector<1x1x3x128xbf16>
    %6 = tpu.concatenate %3, %4, %5 in 1 : vector<1x1x3x128xbf16>, vector<1x4x3x128xbf16>, vector<1x1x3x128xbf16> -> vector<1x6x3x128xbf16>
    %c0_i32 = arith.constant 0 : i32
    %7 = arith.sitofp %c0_i32 : i32 to bf16
    %8 = vector.shape_cast %2 : vector<1x6x1x1xi1> to vector<1x6x1x1xi1>
    %9 = vector.broadcast %8 : vector<1x6x1x1xi1> to vector<1x6x3x128xi1>
    %10 = vector.broadcast %7 : bf16 to vector<1x6x3x128xbf16>
    %11 = arith.select %9, %6, %10 : vector<1x6x3x128xi1>, vector<1x6x3x128xbf16>
    %c0_15 = arith.constant 0 : index
    %c0_16 = arith.constant 0 : index
    %c0_17 = arith.constant 0 : index
    %c0_18 = arith.constant 0 : index
    %12 = vector.load %arg6[%c0_15, %c0_16, %c0_17, %c0_18] : memref<1x1x3x128xbf16, #tpu.memory_space<vmem>>, vector<1x1x3x128xbf16>
    %c0_19 = arith.constant 0 : index
    %c0_20 = arith.constant 0 : index
    %c0_21 = arith.constant 0 : index
    %c0_22 = arith.constant 0 : index
    %13 = vector.load %arg5[%c0_19, %c0_20, %c0_21, %c0_22] : memref<1x4x3x128xbf16, #tpu.memory_space<vmem>>, vector<1x4x3x128xbf16>
    %c0_23 = arith.constant 0 : index
    %c0_24 = arith.constant 0 : index
    %c0_25 = arith.constant 0 : index
    %c0_26 = arith.constant 0 : index
    %14 = vector.load %arg7[%c0_23, %c0_24, %c0_25, %c0_26] : memref<1x1x3x128xbf16, #tpu.memory_space<vmem>>, vector<1x1x3x128xbf16>
    %15 = tpu.concatenate %12, %13, %14 in 1 : vector<1x1x3x128xbf16>, vector<1x4x3x128xbf16>, vector<1x1x3x128xbf16> -> vector<1x6x3x128xbf16>
    %c0_i32_27 = arith.constant 0 : i32
    %16 = arith.sitofp %c0_i32_27 : i32 to bf16
    %17 = vector.shape_cast %2 : vector<1x6x1x1xi1> to vector<1x6x1x1xi1>
    %18 = vector.broadcast %17 : vector<1x6x1x1xi1> to vector<1x6x3x128xi1>
    %19 = vector.broadcast %16 : bf16 to vector<1x6x3x128xbf16>
    %20 = arith.select %18, %15, %19 : vector<1x6x3x128xi1>, vector<1x6x3x128xbf16>
    %cst_28 = arith.constant 0.000000e+00 : bf16
    %21 = vector.broadcast %cst_28 : bf16 to vector<1x6x1x256xbf16>
    %c0_29 = arith.constant 0 : index
    %c0_30 = arith.constant 0 : index
    %c0_31 = arith.constant 0 : index
    %c0_32 = arith.constant 0 : index
    %22 = vector.load %arg16[%c0_29, %c0_30, %c0_31, %c0_32] : memref<1x6x5x256xbf16, #tpu.memory_space<vmem>>, vector<1x6x1x256xbf16>
    tpu.vector_store %arg16[%c0_29, %c0_30, %c0_31, %c0_32], %21 {strides = array<i32>} : memref<1x6x5x256xbf16, #tpu.memory_space<vmem>>, vector<1x6x1x256xbf16>,
    %c0_33 = arith.constant 0 : index
    %c0_34 = arith.constant 0 : index
    %c4 = arith.constant 4 : index
    %c0_35 = arith.constant 0 : index
    %23 = vector.load %arg16[%c0_33, %c0_34, %c4, %c0_35] : memref<1x6x5x256xbf16, #tpu.memory_space<vmem>>, vector<1x6x1x256xbf16>
    tpu.vector_store %arg16[%c0_33, %c0_34, %c4, %c0_35], %21 {strides = array<i32>} : memref<1x6x5x256xbf16, #tpu.memory_space<vmem>>, vector<1x6x1x256xbf16>,
    %c0_36 = arith.constant 0 : index
    %c0_37 = arith.constant 0 : index
    %c1 = arith.constant 1 : index
    %c0_38 = arith.constant 0 : index
    %24 = vector.load %arg16[%c0_36, %c0_37, %c1, %c0_38] : memref<1x6x5x256xbf16, #tpu.memory_space<vmem>>, vector<1x6x3x128xbf16>
    tpu.vector_store %arg16[%c0_36, %c0_37, %c1, %c0_38], %11 {strides = array<i32>} : memref<1x6x5x256xbf16, #tpu.memory_space<vmem>>, vector<1x6x3x128xbf16>,
    %c0_39 = arith.constant 0 : index
    %c0_40 = arith.constant 0 : index
    %c1_41 = arith.constant 1 : index
    %c128 = arith.constant 128 : index
    %25 = vector.load %arg16[%c0_39, %c0_40, %c1_41, %c128] : memref<1x6x5x256xbf16, #tpu.memory_space<vmem>>, vector<1x6x3x128xbf16>
    tpu.vector_store %arg16[%c0_39, %c0_40, %c1_41, %c128], %20 {strides = array<i32>} : memref<1x6x5x256xbf16, #tpu.memory_space<vmem>>, vector<1x6x3x128xbf16>,
    %cst_42 = arith.constant 0.000000e+00 : f32
    %26 = vector.broadcast %cst_42 : f32 to vector<1x4x3x256xf32>
    %c0_43 = arith.constant 0 : index
    %c0_44 = arith.constant 0 : index
    %c0_45 = arith.constant 0 : index
    %c0_46 = arith.constant 0 : index
    %27 = vector.load %arg16[%c0_43, %c0_44, %c0_45, %c0_46] : memref<1x6x5x256xbf16, #tpu.memory_space<vmem>>, vector<1x4x3x256xbf16>
    %c0_47 = arith.constant 0 : index
    %c0_48 = arith.constant 0 : index
    %c0_49 = arith.constant 0 : index
    %28 = vector.load %arg11[%c0_47, %c0_48, %c0_49] : memref<9x256x256xbf16, #tpu.memory_space<vmem>>, vector<1x256x256xbf16>
    %29 = vector.shape_cast %28 : vector<1x256x256xbf16> to vector<256x256xbf16>
    %cst_50 = arith.constant dense<0.000000e+00> : vector<1x4x3x256xf32>
    %30 = tpu.matmul %27, %29, %cst_50 {dimension_numbers = #tpu.dot_dimension_numbers<[3], [0], [0, 1, 2], [1], [0, 0, 0, 1, 0, 2, 1, 1], [], []>} : vector<1x4x3x256xbf16>, vector<256x256xbf16>, vector<1x4x3x256xf32> -> vector<1x4x3x256xf32>
    %31 = arith.addf %26, %30 : vector<1x4x3x256xf32>
    %c0_51 = arith.constant 0 : index
    %c0_52 = arith.constant 0 : index
    %c1_53 = arith.constant 1 : index
    %c0_54 = arith.constant 0 : index
    %32 = vector.load %arg16[%c0_51, %c0_52, %c1_53, %c0_54] : memref<1x6x5x256xbf16, #tpu.memory_space<vmem>>, vector<1x4x3x256xbf16>
    %c1_55 = arith.constant 1 : index
    %c0_56 = arith.constant 0 : index
    %c0_57 = arith.constant 0 : index
    %33 = vector.load %arg11[%c1_55, %c0_56, %c0_57] : memref<9x256x256xbf16, #tpu.memory_space<vmem>>, vector<1x256x256xbf16>
    %34 = vector.shape_cast %33 : vector<1x256x256xbf16> to vector<256x256xbf16>
    %cst_58 = arith.constant dense<0.000000e+00> : vector<1x4x3x256xf32>
    %35 = tpu.matmul %32, %34, %cst_58 {dimension_numbers = #tpu.dot_dimension_numbers<[3], [0], [0, 1, 2], [1], [0, 0, 0, 1, 0, 2, 1, 1], [], []>} : vector<1x4x3x256xbf16>, vector<256x256xbf16>, vector<1x4x3x256xf32> -> vector<1x4x3x256xf32>
    %36 = arith.addf %31, %35 : vector<1x4x3x256xf32>
    %c0_59 = arith.constant 0 : index
    %c0_60 = arith.constant 0 : index
    %c2 = arith.constant 2 : index
    %c0_61 = arith.constant 0 : index
    %37 = vector.load %arg16[%c0_59, %c0_60, %c2, %c0_61] : memref<1x6x5x256xbf16, #tpu.memory_space<vmem>>, vector<1x4x3x256xbf16>
    %c2_62 = arith.constant 2 : index
    %c0_63 = arith.constant 0 : index
    %c0_64 = arith.constant 0 : index
    %38 = vector.load %arg11[%c2_62, %c0_63, %c0_64] : memref<9x256x256xbf16, #tpu.memory_space<vmem>>, vector<1x256x256xbf16>
    %39 = vector.shape_cast %38 : vector<1x256x256xbf16> to vector<256x256xbf16>
    %cst_65 = arith.constant dense<0.000000e+00> : vector<1x4x3x256xf32>
    %40 = tpu.matmul %37, %39, %cst_65 {dimension_numbers = #tpu.dot_dimension_numbers<[3], [0], [0, 1, 2], [1], [0, 0, 0, 1, 0, 2, 1, 1], [], []>} : vector<1x4x3x256xbf16>, vector<256x256xbf16>, vector<1x4x3x256xf32> -> vector<1x4x3x256xf32>
    %41 = arith.addf %36, %40 : vector<1x4x3x256xf32>
    %c0_66 = arith.constant 0 : index
    %c1_67 = arith.constant 1 : index
    %c0_68 = arith.constant 0 : index
    %c0_69 = arith.constant 0 : index
    %42 = vector.load %arg16[%c0_66, %c1_67, %c0_68, %c0_69] : memref<1x6x5x256xbf16, #tpu.memory_space<vmem>>, vector<1x4x3x256xbf16>
    %c3 = arith.constant 3 : index
    %c0_70 = arith.constant 0 : index
    %c0_71 = arith.constant 0 : index
    %43 = vector.load %arg11[%c3, %c0_70, %c0_71] : memref<9x256x256xbf16, #tpu.memory_space<vmem>>, vector<1x256x256xbf16>
    %44 = vector.shape_cast %43 : vector<1x256x256xbf16> to vector<256x256xbf16>
    %cst_72 = arith.constant dense<0.000000e+00> : vector<1x4x3x256xf32>
    %45 = tpu.matmul %42, %44, %cst_72 {dimension_numbers = #tpu.dot_dimension_numbers<[3], [0], [0, 1, 2], [1], [0, 0, 0, 1, 0, 2, 1, 1], [], []>} : vector<1x4x3x256xbf16>, vector<256x256xbf16>, vector<1x4x3x256xf32> -> vector<1x4x3x256xf32>
    %46 = arith.addf %41, %45 : vector<1x4x3x256xf32>
    %c0_73 = arith.constant 0 : index
    %c1_74 = arith.constant 1 : index
    %c1_75 = arith.constant 1 : index
    %c0_76 = arith.constant 0 : index
    %47 = vector.load %arg16[%c0_73, %c1_74, %c1_75, %c0_76] : memref<1x6x5x256xbf16, #tpu.memory_space<vmem>>, vector<1x4x3x256xbf16>
    %c4_77 = arith.constant 4 : index
    %c0_78 = arith.constant 0 : index
    %c0_79 = arith.constant 0 : index
    %48 = vector.load %arg11[%c4_77, %c0_78, %c0_79] : memref<9x256x256xbf16, #tpu.memory_space<vmem>>, vector<1x256x256xbf16>
    %49 = vector.shape_cast %48 : vector<1x256x256xbf16> to vector<256x256xbf16>
    %cst_80 = arith.constant dense<0.000000e+00> : vector<1x4x3x256xf32>
    %50 = tpu.matmul %47, %49, %cst_80 {dimension_numbers = #tpu.dot_dimension_numbers<[3], [0], [0, 1, 2], [1], [0, 0, 0, 1, 0, 2, 1, 1], [], []>} : vector<1x4x3x256xbf16>, vector<256x256xbf16>, vector<1x4x3x256xf32> -> vector<1x4x3x256xf32>
    %51 = arith.addf %46, %50 : vector<1x4x3x256xf32>
    %c0_81 = arith.constant 0 : index
    %c1_82 = arith.constant 1 : index
    %c2_83 = arith.constant 2 : index
    %c0_84 = arith.constant 0 : index
    %52 = vector.load %arg16[%c0_81, %c1_82, %c2_83, %c0_84] : memref<1x6x5x256xbf16, #tpu.memory_space<vmem>>, vector<1x4x3x256xbf16>
    %c5 = arith.constant 5 : index
    %c0_85 = arith.constant 0 : index
    %c0_86 = arith.constant 0 : index
    %53 = vector.load %arg11[%c5, %c0_85, %c0_86] : memref<9x256x256xbf16, #tpu.memory_space<vmem>>, vector<1x256x256xbf16>
    %54 = vector.shape_cast %53 : vector<1x256x256xbf16> to vector<256x256xbf16>
    %cst_87 = arith.constant dense<0.000000e+00> : vector<1x4x3x256xf32>
    %55 = tpu.matmul %52, %54, %cst_87 {dimension_numbers = #tpu.dot_dimension_numbers<[3], [0], [0, 1, 2], [1], [0, 0, 0, 1, 0, 2, 1, 1], [], []>} : vector<1x4x3x256xbf16>, vector<256x256xbf16>, vector<1x4x3x256xf32> -> vector<1x4x3x256xf32>
    %56 = arith.addf %51, %55 : vector<1x4x3x256xf32>
    %c0_88 = arith.constant 0 : index
    %c2_89 = arith.constant 2 : index
    %c0_90 = arith.constant 0 : index
    %c0_91 = arith.constant 0 : index
    %57 = vector.load %arg16[%c0_88, %c2_89, %c0_90, %c0_91] : memref<1x6x5x256xbf16, #tpu.memory_space<vmem>>, vector<1x4x3x256xbf16>
    %c6 = arith.constant 6 : index
    %c0_92 = arith.constant 0 : index
    %c0_93 = arith.constant 0 : index
    %58 = vector.load %arg11[%c6, %c0_92, %c0_93] : memref<9x256x256xbf16, #tpu.memory_space<vmem>>, vector<1x256x256xbf16>
    %59 = vector.shape_cast %58 : vector<1x256x256xbf16> to vector<256x256xbf16>
    %cst_94 = arith.constant dense<0.000000e+00> : vector<1x4x3x256xf32>
    %60 = tpu.matmul %57, %59, %cst_94 {dimension_numbers = #tpu.dot_dimension_numbers<[3], [0], [0, 1, 2], [1], [0, 0, 0, 1, 0, 2, 1, 1], [], []>} : vector<1x4x3x256xbf16>, vector<256x256xbf16>, vector<1x4x3x256xf32> -> vector<1x4x3x256xf32>
    %61 = arith.addf %56, %60 : vector<1x4x3x256xf32>
    %c0_95 = arith.constant 0 : index
    %c2_96 = arith.constant 2 : index
    %c1_97 = arith.constant 1 : index
    %c0_98 = arith.constant 0 : index
    %62 = vector.load %arg16[%c0_95, %c2_96, %c1_97, %c0_98] : memref<1x6x5x256xbf16, #tpu.memory_space<vmem>>, vector<1x4x3x256xbf16>
    %c7 = arith.constant 7 : index
    %c0_99 = arith.constant 0 : index
    %c0_100 = arith.constant 0 : index
    %63 = vector.load %arg11[%c7, %c0_99, %c0_100] : memref<9x256x256xbf16, #tpu.memory_space<vmem>>, vector<1x256x256xbf16>
    %64 = vector.shape_cast %63 : vector<1x256x256xbf16> to vector<256x256xbf16>
    %cst_101 = arith.constant dense<0.000000e+00> : vector<1x4x3x256xf32>
    %65 = tpu.matmul %62, %64, %cst_101 {dimension_numbers = #tpu.dot_dimension_numbers<[3], [0], [0, 1, 2], [1], [0, 0, 0, 1, 0, 2, 1, 1], [], []>} : vector<1x4x3x256xbf16>, vector<256x256xbf16>, vector<1x4x3x256xf32> -> vector<1x4x3x256xf32>
    %66 = arith.addf %61, %65 : vector<1x4x3x256xf32>
    %c0_102 = arith.constant 0 : index
    %c2_103 = arith.constant 2 : index
    %c2_104 = arith.constant 2 : index
    %c0_105 = arith.constant 0 : index
    %67 = vector.load %arg16[%c0_102, %c2_103, %c2_104, %c0_105] : memref<1x6x5x256xbf16, #tpu.memory_space<vmem>>, vector<1x4x3x256xbf16>
    %c8 = arith.constant 8 : index
    %c0_106 = arith.constant 0 : index
    %c0_107 = arith.constant 0 : index
    %68 = vector.load %arg11[%c8, %c0_106, %c0_107] : memref<9x256x256xbf16, #tpu.memory_space<vmem>>, vector<1x256x256xbf16>
    %69 = vector.shape_cast %68 : vector<1x256x256xbf16> to vector<256x256xbf16>
    %cst_108 = arith.constant dense<0.000000e+00> : vector<1x4x3x256xf32>
    %70 = tpu.matmul %67, %69, %cst_108 {dimension_numbers = #tpu.dot_dimension_numbers<[3], [0], [0, 1, 2], [1], [0, 0, 0, 1, 0, 2, 1, 1], [], []>} : vector<1x4x3x256xbf16>, vector<256x256xbf16>, vector<1x4x3x256xf32> -> vector<1x4x3x256xf32>
    %71 = arith.addf %66, %70 : vector<1x4x3x256xf32>
    %c0_109 = arith.constant 0 : index
    %c0_110 = arith.constant 0 : index
    %72 = vector.load %arg12[%c0_109, %c0_110] : memref<1x256xf32, #tpu.memory_space<vmem>>, vector<1x256xf32>
    %73 = vector.shape_cast %72 : vector<1x256xf32> to vector<1x1x1x256xf32>
    %74 = vector.broadcast %73 : vector<1x1x1x256xf32> to vector<1x4x3x256xf32>
    %75 = arith.mulf %71, %74 : vector<1x4x3x256xf32>
    %c0_111 = arith.constant 0 : index
    %c0_112 = arith.constant 0 : index
    %76 = vector.load %arg13[%c0_111, %c0_112] : memref<1x256xf32, #tpu.memory_space<vmem>>, vector<1x256xf32>
    %77 = vector.shape_cast %76 : vector<1x256xf32> to vector<1x1x1x256xf32>
    %78 = vector.broadcast %77 : vector<1x1x1x256xf32> to vector<1x4x3x256xf32>
    %79 = arith.addf %75, %78 : vector<1x4x3x256xf32>
    %80 = arith.negf %79 : vector<1x4x3x256xf32>
    %81 = math.exp %80 : vector<1x4x3x256xf32>
    %cst_113 = arith.constant 1.000000e+00 : f32
    %82 = vector.broadcast %cst_113 : f32 to vector<1x4x3x256xf32>
    %83 = arith.addf %82, %81 : vector<1x4x3x256xf32>
    %84 = arith.divf %82, %83 : vector<1x4x3x256xf32>
    %85 = vector.extract_strided_slice %84 {offsets = [0, 0, 0, 0], sizes = [1, 4, 3, 128], strides = [1, 1, 1, 1]} : vector<1x4x3x256xf32> to vector<1x4x3x128xf32>
    %86 = vector.extract_strided_slice %84 {offsets = [0, 0, 0, 128], sizes = [1, 4, 3, 128], strides = [1, 1, 1, 1]} : vector<1x4x3x256xf32> to vector<1x4x3x128xf32>
    %c0_114 = arith.constant 0 : index
    %c0_115 = arith.constant 0 : index
    %c0_116 = arith.constant 0 : index
    %c0_117 = arith.constant 0 : index
    %87 = vector.load %arg8[%c0_114, %c0_115, %c0_116, %c0_117] : memref<1x4x3x128xf32, #tpu.memory_space<vmem>>, vector<1x4x3x128xf32>
    %c0_118 = arith.constant 0 : index
    %c0_119 = arith.constant 0 : index
    %c0_120 = arith.constant 0 : index
    %c0_121 = arith.constant 0 : index
    %88 = vector.load %arg9[%c0_118, %c0_119, %c0_120, %c0_121] : memref<1x4x3x128xf32, #tpu.memory_space<vmem>>, vector<1x4x3x128xf32>
    %89 = arith.mulf %87, %85 : vector<1x4x3x128xf32>
    %90 = arith.mulf %88, %86 : vector<1x4x3x128xf32>
    %91 = arith.subf %89, %90 : vector<1x4x3x128xf32>
    %c0_122 = arith.constant 0 : index
    %c0_123 = arith.constant 0 : index
    %c0_124 = arith.constant 0 : index
    %c0_125 = arith.constant 0 : index
    %92 = vector.load %arg14[%c0_122, %c0_123, %c0_124, %c0_125] : memref<1x4x3x128xf32, #tpu.memory_space<vmem>>, vector<1x4x3x128xf32>
    tpu.vector_store %arg14[%c0_122, %c0_123, %c0_124, %c0_125], %91 {strides = array<i32>} : memref<1x4x3x128xf32, #tpu.memory_space<vmem>>, vector<1x4x3x128xf32>,
    %93 = arith.mulf %87, %86 : vector<1x4x3x128xf32>
    %94 = arith.mulf %88, %85 : vector<1x4x3x128xf32>
    %95 = arith.addf %93, %94 : vector<1x4x3x128xf32>
    %c0_126 = arith.constant 0 : index
    %c0_127 = arith.constant 0 : index
    %c0_128 = arith.constant 0 : index
    %c0_129 = arith.constant 0 : index
    %96 = vector.load %arg15[%c0_126, %c0_127, %c0_128, %c0_129] : memref<1x4x3x128xf32, #tpu.memory_space<vmem>>, vector<1x4x3x128xf32>
    tpu.vector_store %arg15[%c0_126, %c0_127, %c0_128, %c0_129], %95 {strides = array<i32>} : memref<1x4x3x128xf32, #tpu.memory_space<vmem>>, vector<1x4x3x128xf32>,
    return
  }
  func.func @transform_0(%arg0: i32, %arg1: i32) -> (i32, i32, i32, i32) {
    %c0_i32 = arith.constant 0 : i32
    %c0_i32_0 = arith.constant 0 : i32
    %c0_i32_1 = arith.constant 0 : i32
    return %arg0, %arg1, %c0_i32, %c0_i32_0 : i32, i32, i32, i32
  }
  func.func @transform_1(%arg0: i32, %arg1: i32) -> (i32, i32, i32, i32) {
    %c4_i32 = arith.constant 4 : i32
    %0 = arith.muli %arg1, %c4_i32 : i32
    %c1_i32 = arith.constant 1 : i32
    %1 = arith.subi %0, %c1_i32 : i32
    %c0_i32 = arith.constant 0 : i32
    %2 = arith.maxsi %1, %c0_i32 : i32
    %c0_i32_0 = arith.constant 0 : i32
    %c0_i32_1 = arith.constant 0 : i32
    %c0_i32_2 = arith.constant 0 : i32
    return %arg0, %2, %c0_i32_0, %c0_i32_1 : i32, i32, i32, i32
  }
  func.func @transform_2(%arg0: i32, %arg1: i32) -> (i32, i32, i32, i32) {
    %c4_i32 = arith.constant 4 : i32
    %0 = arith.muli %arg1, %c4_i32 : i32
    %c4_i32_0 = arith.constant 4 : i32
    %1 = arith.addi %0, %c4_i32_0 : i32
    %c3_i32 = arith.constant 3 : i32
    %2 = arith.minsi %1, %c3_i32 : i32
    %c0_i32 = arith.constant 0 : i32
    %c0_i32_1 = arith.constant 0 : i32
    %c0_i32_2 = arith.constant 0 : i32
    return %arg0, %2, %c0_i32, %c0_i32_1 : i32, i32, i32, i32
  }
  func.func @transform_3(%arg0: i32, %arg1: i32) -> (i32, i32, i32, i32) {
    %c0_i32 = arith.constant 0 : i32
    %c0_i32_0 = arith.constant 0 : i32
    %c0_i32_1 = arith.constant 0 : i32
    return %arg0, %arg1, %c0_i32, %c0_i32_0 : i32, i32, i32, i32
  }
  func.func @transform_4(%arg0: i32, %arg1: i32) -> (i32, i32, i32, i32) {
    %c4_i32 = arith.constant 4 : i32
    %0 = arith.muli %arg1, %c4_i32 : i32
    %c1_i32 = arith.constant 1 : i32
    %1 = arith.subi %0, %c1_i32 : i32
    %c0_i32 = arith.constant 0 : i32
    %2 = arith.maxsi %1, %c0_i32 : i32
    %c0_i32_0 = arith.constant 0 : i32
    %c0_i32_1 = arith.constant 0 : i32
    %c0_i32_2 = arith.constant 0 : i32
    return %arg0, %2, %c0_i32_0, %c0_i32_1 : i32, i32, i32, i32
  }
  func.func @transform_5(%arg0: i32, %arg1: i32) -> (i32, i32, i32, i32) {
    %c4_i32 = arith.constant 4 : i32
    %0 = arith.muli %arg1, %c4_i32 : i32
    %c4_i32_0 = arith.constant 4 : i32
    %1 = arith.addi %0, %c4_i32_0 : i32
    %c3_i32 = arith.constant 3 : i32
    %2 = arith.minsi %1, %c3_i32 : i32
    %c0_i32 = arith.constant 0 : i32
    %c0_i32_1 = arith.constant 0 : i32
    %c0_i32_2 = arith.constant 0 : i32
    return %arg0, %2, %c0_i32, %c0_i32_1 : i32, i32, i32, i32
  }
  func.func @transform_6(%arg0: i32, %arg1: i32) -> (i32, i32, i32, i32) {
    %c0_i32 = arith.constant 0 : i32
    %c0_i32_0 = arith.constant 0 : i32
    %c0_i32_1 = arith.constant 0 : i32
    return %arg0, %arg1, %c0_i32, %c0_i32_0 : i32, i32, i32, i32
  }
  func.func @transform_7(%arg0: i32, %arg1: i32) -> (i32, i32, i32, i32) {
    %c0_i32 = arith.constant 0 : i32
    %c0_i32_0 = arith.constant 0 : i32
    %c0_i32_1 = arith.constant 0 : i32
    return %arg0, %arg1, %c0_i32, %c0_i32_0 : i32, i32, i32, i32
  }
  func.func @transform_8(%arg0: i32, %arg1: i32) -> (i32, i32, i32, i32) {
    %c0_i32 = arith.constant 0 : i32
    %c0_i32_0 = arith.constant 0 : i32
    %c0_i32_1 = arith.constant 0 : i32
    %c0_i32_2 = arith.constant 0 : i32
    return %arg1, %c0_i32, %c0_i32_0, %c0_i32_1 : i32, i32, i32, i32
  }
  func.func @transform_9(%arg0: i32, %arg1: i32) -> (i32, i32, i32) {
    %c0_i32 = arith.constant 0 : i32
    %c0_i32_0 = arith.constant 0 : i32
    %c0_i32_1 = arith.constant 0 : i32
    %c0_i32_2 = arith.constant 0 : i32
    return %c0_i32, %c0_i32_0, %c0_i32_1 : i32, i32, i32
  }
  func.func @transform_10(%arg0: i32, %arg1: i32) -> (i32, i32) {
    %c0_i32 = arith.constant 0 : i32
    %c0_i32_0 = arith.constant 0 : i32
    %c0_i32_1 = arith.constant 0 : i32
    return %c0_i32, %c0_i32_0 : i32, i32
  }
  func.func @transform_11(%arg0: i32, %arg1: i32) -> (i32, i32) {
    %c0_i32 = arith.constant 0 : i32
    %c0_i32_0 = arith.constant 0 : i32
    %c0_i32_1 = arith.constant 0 : i32
    return %c0_i32, %c0_i32_0 : i32, i32
  }
  func.func @transform_12(%arg0: i32, %arg1: i32) -> (i32, i32, i32, i32) {
    %c0_i32 = arith.constant 0 : i32
    %c0_i32_0 = arith.constant 0 : i32
    %c0_i32_1 = arith.constant 0 : i32
    return %arg0, %arg1, %c0_i32, %c0_i32_0 : i32, i32, i32, i32
  }
  func.func @transform_13(%arg0: i32, %arg1: i32) -> (i32, i32, i32, i32) {
    %c0_i32 = arith.constant 0 : i32
    %c0_i32_0 = arith.constant 0 : i32
    %c0_i32_1 = arith.constant 0 : i32
    return %arg0, %arg1, %c0_i32, %c0_i32_0 : i32, i32, i32, i32
  }
}

module attributes {stable_mosaic.version = 11 : i64} {
  func.func @_matmul_bn_act_kernel(%arg0: i32, %arg1: memref<32x128xf32, #tpu.memory_space<vmem>>, %arg2: memref<128x128xbf16, #tpu.memory_space<vmem>>, %arg3: memref<1x128xf32, #tpu.memory_space<vmem>>, %arg4: memref<1x128xf32, #tpu.memory_space<vmem>>, %arg5: memref<32x128xf32, #tpu.memory_space<vmem>>) attributes {dimension_semantics = [#tpu.dimension_semantics<parallel>], iteration_bounds = array<i64: 1>, scalar_prefetch = 0 : i64, scratch_operands = 0 : i64, tpu.core_type = #tpu.core_type<tc>, window_params = [{transform_indices = @transform_0, window_bounds = array<i64: 32, 128>}, {pipeline_mode = #tpu.pipeline_mode<synchronous>, transform_indices = @transform_1, window_bounds = array<i64: 128, 128>}, {pipeline_mode = #tpu.pipeline_mode<synchronous>, transform_indices = @transform_2, window_bounds = array<i64: 1, 128>}, {pipeline_mode = #tpu.pipeline_mode<synchronous>, transform_indices = @transform_3, window_bounds = array<i64: 1, 128>}, {transform_indices = @transform_4, window_bounds = array<i64: 32, 128>}]} {
    %c0 = arith.constant 0 : index
    %c0_0 = arith.constant 0 : index
    %0 = vector.load %arg1[%c0, %c0_0] : memref<32x128xf32, #tpu.memory_space<vmem>>, vector<32x128xf32>
    %1 = math.absf %0 : vector<32x128xf32>
    %2 = arith.truncf %1 : vector<32x128xf32> to vector<32x128xbf16>
    %c0_1 = arith.constant 0 : index
    %c0_2 = arith.constant 0 : index
    %3 = vector.load %arg2[%c0_1, %c0_2] : memref<128x128xbf16, #tpu.memory_space<vmem>>, vector<128x128xbf16>
    %cst = arith.constant dense<0.000000e+00> : vector<32x128xf32>
    %4 = tpu.matmul %2, %3, %cst {dimension_numbers = #tpu.dot_dimension_numbers<[1], [0], [0], [1], [0, 0, 1, 1], [], []>} : vector<32x128xbf16>, vector<128x128xbf16>, vector<32x128xf32> -> vector<32x128xf32>
    %c0_3 = arith.constant 0 : index
    %c0_4 = arith.constant 0 : index
    %5 = vector.load %arg3[%c0_3, %c0_4] : memref<1x128xf32, #tpu.memory_space<vmem>>, vector<1x128xf32>
    %6 = vector.broadcast %5 : vector<1x128xf32> to vector<32x128xf32>
    %7 = arith.mulf %4, %6 : vector<32x128xf32>
    %c0_5 = arith.constant 0 : index
    %c0_6 = arith.constant 0 : index
    %8 = vector.load %arg4[%c0_5, %c0_6] : memref<1x128xf32, #tpu.memory_space<vmem>>, vector<1x128xf32>
    %9 = vector.broadcast %8 : vector<1x128xf32> to vector<32x128xf32>
    %10 = arith.addf %7, %9 : vector<32x128xf32>
    %cst_7 = arith.constant 0.000000e+00 : f32
    %11 = vector.broadcast %cst_7 : f32 to vector<32x128xf32>
    %12 = arith.maximumf %10, %11 : vector<32x128xf32>
    %c0_8 = arith.constant 0 : index
    %c0_9 = arith.constant 0 : index
    %13 = vector.load %arg5[%c0_8, %c0_9] : memref<32x128xf32, #tpu.memory_space<vmem>>, vector<32x128xf32>
    tpu.vector_store %arg5[%c0_8, %c0_9], %12 {strides = array<i32>} : memref<32x128xf32, #tpu.memory_space<vmem>>, vector<32x128xf32>,
    return
  }
  func.func @transform_0(%arg0: i32) -> (i32, i32) {
    %c0_i32 = arith.constant 0 : i32
    %c0_i32_0 = arith.constant 0 : i32
    return %arg0, %c0_i32 : i32, i32
  }
  func.func @transform_1(%arg0: i32) -> (i32, i32) {
    %c0_i32 = arith.constant 0 : i32
    %c0_i32_0 = arith.constant 0 : i32
    %c0_i32_1 = arith.constant 0 : i32
    return %c0_i32, %c0_i32_0 : i32, i32
  }
  func.func @transform_2(%arg0: i32) -> (i32, i32) {
    %c0_i32 = arith.constant 0 : i32
    %c0_i32_0 = arith.constant 0 : i32
    %c0_i32_1 = arith.constant 0 : i32
    return %c0_i32, %c0_i32_0 : i32, i32
  }
  func.func @transform_3(%arg0: i32) -> (i32, i32) {
    %c0_i32 = arith.constant 0 : i32
    %c0_i32_0 = arith.constant 0 : i32
    %c0_i32_1 = arith.constant 0 : i32
    return %c0_i32, %c0_i32_0 : i32, i32
  }
  func.func @transform_4(%arg0: i32) -> (i32, i32) {
    %c0_i32 = arith.constant 0 : i32
    %c0_i32_0 = arith.constant 0 : i32
    return %arg0, %c0_i32 : i32, i32
  }
}

</mosaic_0001>

<bundles_post_ra>
// kernel: spatial_path_forward.7
= control target key start
LH: loop header
LB: loop body
LE: loop exit
PB: predicated region body
PF: predicated region fallthrough
CT: control target
= control target key end

     0   :  { %v269_v0 = vmov 0   ;;  %vm126_vm0 = vcmask 523264   ;;  %s397_s1 = inlined_call_operand.vmem [shape: bf16[192,128], index: 1, kind: input, shape index: {}]   ;;  %s398_s0 = inlined_call_operand.vmem [shape: f32[32,192], index: 0, kind: input, shape index: {}]   ;;  %s399_s2 = inlined_call_operand.vmem [shape: f32[1,128], index: 2, kind: input, shape index: {}]   ;;  %s400_s3 = inlined_call_operand.vmem [shape: f32[1,128], index: 3, kind: input, shape index: {}]   ;;  %s401_s4 = inlined_call_operand.vmem [shape: f32[32,128], index: 4, kind: output, shape index: {}]  }
   0x1   :  { %133 = vmatprep.subr.bf16.mxu0 %v269_v0  ;;  %232 = vmatprep.subr.bf16.mxu1 %v269_v0  ;;  %v257_v1 = vld [vmem:[%s397_s1] sm:$0xff]   ;;  %v258_v2 = vld [vmem:[%s397_s1 + $0x8] sm:$0xff]   ;;  %v259_v3 = vld [vmem:[%s397_s1 + $0x10] sm:$0xff]  }
   0x2   :  { %134 = vmatpush1.bf16.msra.mxu0 %v257_v1  ;;  %244 = vmatpush1.bf16.msra.mxu1 %v257_v1  ;;  %v260_v4 = vld [vmem:[%s397_s1 + $0x18] sm:$0xff]   ;;  %v19_v5 = vld [vmem:[%s398_s0 + $0x8] sm:$0xff]  ;;  %v261_v10 = vld [vmem:[%s397_s1 + $0x20] sm:$0xff]  }
   0x3   :  { %135 = vmatprep.subr.bf16.mxu0 %v269_v0  ;;  %233 = vmatprep.subr.bf16.mxu1 %v269_v0  ;;  %v21_v6 = vld [vmem:[%s398_s0 + $0x18] sm:$0xff]  ;;  %v23_v7 = vld [vmem:[%s398_s0 + $0x28] sm:$0xff]  ;;  %v263_v13 = vld [vmem:[%s397_s1 + $0x30] sm:$0xff]  }
   0x4   :  { %v27_v8 = vpack.c.bf16 %v21_v6, %v19_v5  ;;  %v25_v9 = vld [vmem:[%s398_s0 + $0x38] sm:$0xff]  ;;  %v262_v12 = vld [vmem:[%s397_s1 + $0x28] sm:$0xff]   ;;  %v265_v15 = vld [vmem:[%s397_s1 + $0x40] sm:$0xff]  }
   0x5   :  { %v29_v11 = vpack.c.bf16 %v25_v9, %v23_v7  ;;  %v264_v14 = vld [vmem:[%s397_s1 + $0x38] sm:$0xff]   ;;  %v266_v16 = vld [vmem:[%s397_s1 + $0x48] sm:$0xff]   ;;  %v267_v17 = vld [vmem:[%s397_s1 + $0x50] sm:$0xff]  }
   0x6   :  { %136 = vmatpush1.bf16.msra.mxu0 %v258_v2  ;;  %245 = vmatpush1.bf16.msra.mxu1 %v258_v2  ;;  %v268_v18 = vld [vmem:[%s397_s1 + $0x58] sm:$0xff]   ;;  %v18_v19 = vld [vmem:[%s398_s0] sm:$0xff]  ;;  %v20_v20 = vld [vmem:[%s398_s0 + $0x10] sm:$0xff] }
   0x7   :  { %137 = vmatprep.subr.bf16.mxu0 %v269_v0  ;;  %234 = vmatprep.subr.bf16.mxu1 %v269_v0  ;;  %v22_v21 = vld [vmem:[%s398_s0 + $0x20] sm:$0xff]  ;;  %v24_v22 = vld [vmem:[%s398_s0 + $0x30] sm:$0xff]  ;;  %v26_v23 = vpack.c.bf16 %v20_v20, %v18_v19 }
   0x8   :  { %228 = vmatprep.mubr.msk.bf16.mxu0 %vm126_vm0, %v27_v8  ;;  %229 = vmatprep.mubr.msk.bf16.mxu1 %vm126_vm0, %v29_v11  ;;  %v28_v24 = vpack.c.bf16 %v24_v22, %v22_v21  ;;  %v230_v25 = vld [vmem:[%s399_s2] ss:$0 sm:$0xff] }
   0x9   :  { %v231_v27 = vld [vmem:[%s400_s3] ss:$0 sm:$0xff] }
   0xa   :  { %138 = vmatpush1.bf16.msra.mxu0 %v259_v3  ;;  %246 = vmatpush1.bf16.msra.mxu1 %v259_v3 }
   0xb   :  { %139 = vmatprep.subr.bf16.mxu0 %v269_v0  ;;  %235 = vmatprep.subr.bf16.mxu1 %v269_v0 }
   0xe   :  { %140 = vmatpush1.bf16.msra.mxu0 %v260_v4  ;;  %247 = vmatpush1.bf16.msra.mxu1 %v260_v4 }
   0xf   :  { %141 = vmatprep.subr.bf16.mxu0 %v269_v0  ;;  %236 = vmatprep.subr.bf16.mxu1 %v269_v0 }
  0x12   :  { %142 = vmatpush1.bf16.msra.mxu0 %v261_v10  ;;  %248 = vmatpush1.bf16.msra.mxu1 %v261_v10 }
  0x13   :  { %143 = vmatprep.subr.bf16.mxu0 %v269_v0  ;;  %237 = vmatprep.subr.bf16.mxu1 %v269_v0 }
  0x16   :  { %144 = vmatpush1.bf16.msra.mxu0 %v262_v12  ;;  %249 = vmatpush1.bf16.msra.mxu1 %v262_v12 }
  0x17   :  { %145 = vmatprep.subr.bf16.mxu0 %v269_v0  ;;  %238 = vmatprep.subr.bf16.mxu1 %v269_v0 }
  0x1a   :  { %146 = vmatpush1.bf16.msra.mxu0 %v263_v13  ;;  %250 = vmatpush1.bf16.msra.mxu1 %v263_v13 }
  0x1b   :  { %147 = vmatprep.subr.bf16.mxu0 %v269_v0  ;;  %239 = vmatprep.subr.bf16.mxu1 %v269_v0 }
  0x1e   :  { %148 = vmatpush1.bf16.msra.mxu0 %v264_v14  ;;  %251 = vmatpush1.bf16.msra.mxu1 %v264_v14 }
  0x1f   :  { %149 = vmatprep.subr.bf16.mxu0 %v269_v0  ;;  %240 = vmatprep.subr.bf16.mxu1 %v269_v0 }
  0x22   :  { %150 = vmatpush1.bf16.msra.mxu0 %v265_v15  ;;  %252 = vmatpush1.bf16.msra.mxu1 %v265_v15 }
  0x23   :  { %151 = vmatprep.subr.bf16.mxu0 %v269_v0  ;;  %241 = vmatprep.subr.bf16.mxu1 %v269_v0 }
  0x26   :  { %152 = vmatpush1.bf16.msra.mxu0 %v266_v16  ;;  %253 = vmatpush1.bf16.msra.mxu1 %v266_v16 }
  0x27   :  { %153 = vmatprep.subr.bf16.mxu0 %v269_v0  ;;  %242 = vmatprep.subr.bf16.mxu1 %v269_v0 }
  0x2a   :  { %154 = vmatpush1.bf16.msra.mxu0 %v267_v17  ;;  %254 = vmatpush1.bf16.msra.mxu1 %v267_v17 }
  0x2b   :  { %155 = vmatprep.subr.bf16.mxu0 %v269_v0  ;;  %243 = vmatprep.subr.bf16.mxu1 %v269_v0 }
  0x2e   :  { %156 = vmatpush1.bf16.msra.mxu0 %v268_v18  ;;  %255 = vmatpush1.bf16.msra.mxu1 %v268_v18 }
  0x31   :  { %166 = vmatmul.mubr.bf16.vlgmr.msra.gmra.mrb[0].mxu0 %v26_v23  ;;  %174 = vmatmul.mubr.bf16.vlgmr.msra.gmra.mrb[0].mxu1 %v28_v24 }
 0x104   :  { %v167_v26 = vpop.f32.mrb[0].mxu0  ;;  %v175_v28 = vpop.f32.mrb[0].mxu1 }
 0x105   :  { %v189_v29 = vmul.f32 %v230_v25, %v167_v26  ;;  %v191_v30 = vmul.f32 %v230_v25, %v175_v28  ;;  %v169_v31 = vpop.f32.mrb[1].mxu0  ;;  %v177_v32 = vpop.f32.mrb[1].mxu1 }
 0x106   :  { %v170_v33 = vpop.f32.mrb[2].mxu0  ;;  %v178_v34 = vpop.f32.mrb[2].mxu1 }
 0x107   :  { %v200_v35 = vadd.f32 %v231_v27, %v189_v29  ;;  %v202_v36 = vadd.f32 %v231_v27, %v191_v30  ;;  %v190_v37 = vmul.f32 %v230_v25, %v170_v33  ;;  %v192_v38 = vmul.f32 %v230_v25, %v178_v34  ;;  %v172_v39 = vpop.f32.mrb[3].mxu0  ;;  %v180_v40 = vpop.f32.mrb[3].mxu1 }
 0x109   :  { %v204_v41 = vmax.f32 %v200_v35, 0.0  ;;  %v206_v42 = vmax.f32 %v202_v36, 0.0  ;;  %v201_v43 = vadd.f32 %v231_v27, %v190_v37  ;;  %v203_v44 = vadd.f32 %v231_v27, %v192_v38 }
 0x10b   :  { %208 = vst [vmem:[%s401_s4] sm:$0xff] %v204_v41  ;;  %210 = vst [vmem:[%s401_s4 + $0x10] sm:$0xff] %v206_v42  ;;  %v205_v45 = vmax.f32 %v201_v43, 0.0  ;;  %v207_v46 = vmax.f32 %v203_v44, 0.0 }
 0x10d   :  { %209 = vst [vmem:[%s401_s4 + $0x8] sm:$0xff] %v205_v45  ;;  %211 = vst [vmem:[%s401_s4 + $0x18] sm:$0xff] %v207_v46 }

// kernel: spatial_path_forward.10
= control target key start
LH: loop header
LB: loop body
LE: loop exit
PB: predicated region body
PF: predicated region fallthrough
CT: control target
= control target key end

     0   :  { %s1054_s24 = smov 0   ;;  %s1056_s25 = smov 0   ;;  %s1203_s0 = inlined_call_operand.vmem [shape: f32[2,4,3,128], index: 0, kind: input, shape index: {}, may-alias: {0,1,2}]   ;;  %s1204_s1 = inlined_call_operand.vmem [shape: f32[2,4,3,128], index: 1, kind: input, shape index: {}, may-alias: {0,1,2}]   ;;  %s1205_s2 = inlined_call_operand.vmem [shape: f32[2,4,3,128], index: 2, kind: input, shape index: {}, may-alias: {0,1,2}]   ;;  %s1206_s3 = inlined_call_operand.vmem [shape: f32[1,6,1,1], index: 3, kind: input, shape index: {}]   ;;  %s1207_s4 = inlined_call_operand.vmem [shape: f32[9,128], index: 4, kind: input, shape index: {}]   ;;  %s1208_s5 = inlined_call_operand.vmem [shape: f32[1,128], index: 5, kind: input, shape index: {}]   ;;  %s1209_s6 = inlined_call_operand.vmem [shape: f32[1,128], index: 6, kind: input, shape index: {}]   ;;  %s1210_s7 = inlined_call_operand.vmem [shape: bf16[2,4,3,128], index: 7, kind: output, shape index: {}]  }
   0x1   :  { %s1058_s26 = smov 0  }
   0x2 LB: > { %s29_s27 = sadd.s32 1, %s1006_s25  ;;  %p912_p0 = scmp.ge.s32.totalorder %s1010_s26, 1  ;;  %s1010_s26 = sphi %s1058_s26, %s17_s26   ;;  %s1006_s25 = sphi %s1056_s25, %s1214_s25   ;;  %s1002_s24 = sphi %s1054_s24, %s1213_s24  }
   0x3   : > { %p31_p1 = scmp.ge.s32.totalorder %s29_s27, 2  ;;  %p329_p2 = scmp.lt.s32.totalorder %s1010_s26, 3 }
   0x5   : > { %s1216_s27 = smov (%p31_p1, %s29_s27), 0  ;;  %p330_p3 = pnand %p912_p0, %p329_p2 }
   0x6   : > { %v455_v0 = vld [vmem:[%s1206_s3 + $0x2] sm:$0x1] (!%p330_p3)  ;;  %v477_v1 = vlaneseq (!%p330_p3)  ;;  %v453_v2 = vld [vmem:[%s1206_s3] sm:$0x1] (!%p330_p3)  ;;  %v1012_v3 = vmov (!%p330_p3), 0   ;;  %v1013_v6 = vmov (!%p330_p3), 0.0  }
   0x7   : > { %333 = sbr.rel (%p330_p3) target bundleno = 212 (0xd4), region = 48  ;;  %971 = vset.pattern.permute.xlu1 (!%p330_p3), %v1012_v3  ;;  %970 = vset.pattern.permute.xlu0 (!%p330_p3), %v1012_v3  ;;  %vm461_vm0 = vcmp.ne.f32.partialorder (!%p330_p3), %v455_v0, 0.0  ;;  %vm459_vm1 = vcmp.ne.f32.partialorder (!%p330_p3), %v453_v2, 0.0  ;;  %v456_v4 = vld [vmem:[%s1206_s3 + $0x3] sm:$0x1] (!%p330_p3)  ;;  %p398_p4 = scmp.lt.s32.totalorder (!%p330_p3), %s1002_s24, 1 }
   0x8   : > { %v454_v5 = vld [vmem:[%s1206_s3 + $0x1] sm:$0x1] (!%p330_p3)  ;;  %533 = vst [vmem:[#allocation2 + $0x10] sm:$0x1] (!%p330_p3), %v1013_v6  ;;  %539 = vst [vmem:[#allocation2 + $0x14] sm:$0x1] (!%p330_p3), %v1013_v6 }
   0x9   : > { %531 = vst [vmem:[#allocation2] sm:$0x1] (!%p330_p3), %v1013_v6  ;;  %532 = vst [vmem:[#allocation2 + $0x8] sm:$0x1] (!%p330_p3), %v1013_v6  ;;  %v473_v7 = vsel (!%p330_p3), %vm461_vm0, 1, %v1012_v3  ;;  %v478_v8 = vshrl.u32 (!%p330_p3), %v477_v1, 7 }
   0xa   : > { %534 = vst [vmem:[#allocation2 + $0x18] sm:$0x1] (!%p330_p3), %v1013_v6  ;;  %535 = vst [vmem:[#allocation2 + $0x20] sm:$0x1] (!%p330_p3), %v1013_v6  ;;  %vm462_vm2 = vcmp.ne.f32.partialorder (!%p330_p3), %v456_v4, 0.0  ;;  %v471_v9 = vsel (!%p330_p3), %vm459_vm1, 1, %v1012_v3 }
   0xb   : > { %536 = vst [vmem:[#allocation2 + $0x28] sm:$0x1] (!%p330_p3), %v1013_v6  ;;  %537 = vst [vmem:[#allocation2 + $0x4] sm:$0x1] (!%p330_p3), %v1013_v6  ;;  %vm460_vm3 = vcmp.ne.f32.partialorder (!%p330_p3), %v454_v5, 0.0  ;;  %v479_v12 = vsub.s32 (!%p330_p3), 0, %v478_v8 }
   0xc   : > { %538 = vst [vmem:[#allocation2 + $0xc] sm:$0x1] (!%p330_p3), %v1013_v6  ;;  %540 = vst [vmem:[#allocation2 + $0x1c] sm:$0x1] (!%p330_p3), %v1013_v6  ;;  %v458_v10 = vld [vmem:[%s1206_s3 + $0x5] sm:$0x1] (!%p330_p3) }
   0xd   : > { %541 = vst [vmem:[#allocation2 + $0x24] sm:$0x1] (!%p330_p3), %v1013_v6  ;;  %542 = vst [vmem:[#allocation2 + $0x2c] sm:$0x1] (!%p330_p3), %v1013_v6  ;;  %v457_v11 = vld [vmem:[%s1206_s3 + $0x4] sm:$0x1] (!%p330_p3)  ;;  %v488_v15 = vrot.slane (!%p330_p3), %v473_v7, %v479_v12  ;;  %v480_v16 = vrot.slane (!%p330_p3), %v471_v9, %v479_v12 }
   0xe   : > { %v474_v13 = vsel %vm462_vm2, 1, %v1012_v3  ;;  %v472_v14 = vsel %vm460_vm3, 1, %v1012_v3  ;;  %vm464_vm4 = vcmp.ne.f32.partialorder %v458_v10, 0.0  ;;  %vm463_vm5 = vcmp.ne.f32.partialorder %v457_v11, 0.0  ;;  %s1218_s24 = smov (!%p398_p4, %s1002_s24), 1 }
   0xf   : > { %508 = vperm.xlu1 %971, %v488_v15   ;;  %502 = vperm.xlu0 %970, %v480_v16   ;;  %v492_v17 = vrot.slane %v474_v13, %v479_v12  ;;  %v484_v18 = vrot.slane %v472_v14, %v479_v12  ;;  %v476_v19 = vsel %vm464_vm4, 1, %v1012_v3  ;;  %v475_v20 = vsel %vm463_vm5, 1, %v1012_v3  ;;  %s1099_s17 = sshll.u32 %s1218_s24, 4  ;;  %v921_v35 = vld [vmem:[%s1207_s4] ss:$0 sm:$0xff]  ;;  %s942_s12 = sshll.u32 %s1218_s24, 3 }
  0x10   : > { %v500_v21 = vrot.slane %v476_v19, %v479_v12  ;;  %v496_v22 = vrot.slane %v475_v20, %v479_v12  ;;  %s1105_s20 = scalar_lea.vmem %s1203_s0, %s1099_s17  ;;  %s418_s23 = scalar_lea.vmem %s1204_s1, %s1099_s17  ;;  %v922_v36 = vld [vmem:[%s1207_s4 + $0x1] ss:$0 sm:$0xff]  ;;  %v1124_v41 = vld [vmem:[%s1207_s4 + $0x2] ss:$0 sm:$0xff]  ;;  %v1132_v50 = vld [vmem:[%s1207_s4 + $0x3] ss:$0 sm:$0xff] }
  0x11   : > { %v467_v23 = vld [vmem:[%s1105_s20 + $0x4] sm:$0x7]  ;;  %v465_v24 = vld [vmem:[%s418_s23] sm:$0x7]  ;;  %v468_v29 = vld [vmem:[%s1105_s20 + $0x8] sm:$0x7]  ;;  %s451_s15 = scalar_lea.vmem %s1210_s7, %s942_s12 }
  0x12   : > { %v466_v30 = vld [vmem:[%s1105_s20] sm:$0x7]  ;;  %s941_s9 = sadd.s32 12, %s1099_s17  ;;  %v469_v59 = vld [vmem:[%s1105_s20 + $0xc] sm:$0x7]  ;;  %vm754_vm12 = vcmask 1041408  }
  0x13   : > { %511 = vperm.xlu1 %971, %v492_v17   ;;  %505 = vperm.xlu0 %970, %v484_v18   ;;  %s434_s14 = scalar_lea.vmem %s1205_s2, %s941_s9  ;;  %v1141_v6 = vld [vmem:[%s1207_s4 + $0x4] ss:$0 sm:$0xff]  ;;  %vm755_vm13 = vsmask.f32 1280 }
  0x14   : > { %v470_v53 = vld [vmem:[%s434_s14] sm:$0x7]  ;;  %vm1182_vm14 = vmand %vm754_vm12, %vm755_vm13 }
  0x17   : > { %517 = vperm.xlu1 %971, %v500_v21   ;;  %514 = vperm.xlu0 %970, %v496_v22   ;;  %v926_v21 = vld [vmem:[%s1207_s4 + $0x5] ss:$0 sm:$0xff]  ;;  %v1154_v22 = vld [vmem:[%s1207_s4 + $0x6] ss:$0 sm:$0xff] }
  0x8e   : > { %v509_v25 = vpop.permute.xlu1 %508  ;;  %v503_v26 = vpop.permute.xlu0 %502 }
  0x8f   : > { %vm521_vm6 = vcmp.eq.s32.totalorder %v509_v25, 1  ;;  %vm519_vm7 = vcmp.eq.s32.totalorder %v503_v26, 1 }
  0x90   : > { %v527_v27 = vsel %vm521_vm6, %v467_v23, 0.0  ;;  %v525_v28 = vsel %vm519_vm7, %v465_v24, 0.0 }
  0x91   : > { %545 = vst [vmem:[#allocation2 + $0x11] sm:$0x7] %v527_v27  ;;  %543 = vst [vmem:[#allocation2 + $0x1] sm:$0x7] %v525_v28 }
  0x92   : > { %v512_v31 = vpop.permute.xlu1 %511  ;;  %v506_v32 = vpop.permute.xlu0 %505 }
  0x93   : > { %vm522_vm8 = vcmp.eq.s32.totalorder %v512_v31, 1  ;;  %vm520_vm9 = vcmp.eq.s32.totalorder %v506_v32, 1  ;;  %v928_v31 = vld [vmem:[%s1207_s4 + $0x7] ss:$0 sm:$0xff] }
  0x94   : > { %v528_v33 = vsel %vm522_vm8, %v468_v29, 0.0  ;;  %v526_v34 = vsel %vm520_vm9, %v466_v30, 0.0 }
  0x95   : > { %546 = vst [vmem:[#allocation2 + $0x19] sm:$0x7] %v528_v33  ;;  %544 = vst [vmem:[#allocation2 + $0x9] sm:$0x7] %v526_v34 }
  0x96   : > { %v518_v47 = vpop.permute.xlu1 %517  ;;  %v515_v54 = vpop.permute.xlu0 %514 }
  0x97   : > { %vm524_vm10 = vcmp.eq.s32.totalorder %v518_v47, 1  ;;  %vm523_vm11 = vcmp.eq.s32.totalorder %v515_v54, 1 }
  0x98   : > { %v551_v37 = vld [vmem:[#allocation2 + $0x10] sm:$0x7]  ;;  %v549_v44 = vld [vmem:[#allocation2] sm:$0x7]  ;;  %v530_v15 = vsel %vm524_vm10, %v470_v53, 0.0  ;;  %v529_v20 = vsel %vm523_vm11, %v469_v59, 0.0 }
  0x99   : > { %v568_v38 = vld [vmem:[#allocation2 + $0x11] sm:$0x7]  ;;  %v560_v39 = vmul.f32 %v921_v35, %v551_v37  ;;  %v566_v45 = vld [vmem:[#allocation2 + $0x1] sm:$0x7]  ;;  %v558_v48 = vmul.f32 %v921_v35, %v549_v44  ;;  %548 = vst [vmem:[#allocation2 + $0x29] sm:$0x7] %v530_v15 }
  0x9a   : > { %v577_v40 = vmul.f32 %v922_v36, %v568_v38  ;;  %v585_v42 = vld [vmem:[#allocation2 + $0x12] sm:$0x7]  ;;  %v583_v46 = vld [vmem:[#allocation2 + $0x2] sm:$0x7]  ;;  %v575_v49 = vmul.f32 %v922_v36, %v566_v45  ;;  %547 = vst [vmem:[#allocation2 + $0x21] sm:$0x7] %v529_v20 }
  0x9b   : > { %v594_v51 = vmul.f32 %v1124_v41, %v585_v42  ;;  %v592_v56 = vmul.f32 %v1124_v41, %v583_v46  ;;  %v602_v7 = vld [vmem:[#allocation2 + $0x10] sm:$0x7]  ;;  %v929_v42 = vld [vmem:[%s1207_s4 + $0x8] ss:$0 sm:$0xff] }
  0x9c   : > { %v581_v43 = vadd.f32 %v577_v40, %v560_v39  ;;  %v603_v52 = vld [vmem:[#allocation2 + $0x18] sm:$0x7]  ;;  %v579_v55 = vadd.f32 %v575_v49, %v558_v48  ;;  %v550_v62 = vld [vmem:[#allocation2 + $0x8] sm:$0x7]  ;;  %v619_v16 = vld [vmem:[#allocation2 + $0x11] sm:$0x7]  ;;  %v611_v23 = vmul.f32 %v1132_v50, %v602_v7 }
  0x9d   : > { %v552_v57 = vld [vmem:[#allocation2 + $0x18] sm:$0x7]  ;;  %v612_v61 = vmul.f32 %v1132_v50, %v603_v52  ;;  %v567_v63 = vld [vmem:[#allocation2 + $0x9] sm:$0x7]  ;;  %v559_v2 = vmul.f32 %v921_v35, %v550_v62  ;;  %v653_v24 = vld [vmem:[#allocation2 + $0x10] sm:$0x7]  ;;  %v628_v32 = vmul.f32 %v1141_v6, %v619_v16 }
  0x9e   : > { %v569_v58 = vld [vmem:[#allocation2 + $0x19] sm:$0x7]  ;;  %v598_v60 = vadd.f32 %v594_v51, %v581_v43  ;;  %v584_v0 = vld [vmem:[#allocation2 + $0xa] sm:$0x7]  ;;  %v596_v1 = vadd.f32 %v592_v56, %v579_v55  ;;  %v576_v3 = vmul.f32 %v922_v36, %v567_v63  ;;  %v561_v8 = vmul.f32 %v921_v35, %v552_v57  ;;  %v636_v26 = vld [vmem:[#allocation2 + $0x12] sm:$0x7] }
  0x9f   : > { %v601_v4 = vld [vmem:[#allocation2 + $0x8] sm:$0x7]  ;;  %v578_v10 = vmul.f32 %v922_v36, %v569_v58  ;;  %v620_v11 = vld [vmem:[#allocation2 + $0x19] sm:$0x7]  ;;  %v593_v13 = vmul.f32 %v1124_v41, %v584_v0  ;;  %v670_v33 = vld [vmem:[#allocation2 + $0x11] sm:$0x7]  ;;  %v662_v37 = vmul.f32 %v1154_v22, %v653_v24  ;;  %v645_v43 = vmul.f32 %v926_v21, %v636_v26 }
  0xa0   : > { %v618_v5 = vld [vmem:[#allocation2 + $0x9] sm:$0x7]  ;;  %v610_v9 = vmul.f32 %v1132_v50, %v601_v4  ;;  %v580_v12 = vadd.f32 %v576_v3, %v559_v2  ;;  %v616_v17 = vadd.f32 %v612_v61, %v598_v60  ;;  %v586_v27 = vld [vmem:[#allocation2 + $0x1a] sm:$0x7]  ;;  %v629_v28 = vmul.f32 %v1141_v6, %v620_v11  ;;  %v687_v44 = vld [vmem:[#allocation2 + $0x12] sm:$0x7] }
  0xa1   : > { %v635_v14 = vld [vmem:[#allocation2 + $0xa] sm:$0x7]  ;;  %v627_v19 = vmul.f32 %v1141_v6, %v618_v5  ;;  %v582_v34 = vadd.f32 %v578_v10, %v561_v8  ;;  %v637_v35 = vld [vmem:[#allocation2 + $0x1a] sm:$0x7]  ;;  %v595_v45 = vmul.f32 %v1124_v41, %v586_v27  ;;  %v679_v47 = vmul.f32 %v928_v31, %v670_v33  ;;  %v604_v59 = vld [vmem:[#allocation2 + $0x20] sm:$0x7] }
  0xa2   : > { %v614_v18 = vadd.f32 %v610_v9, %v596_v1  ;;  %v597_v25 = vadd.f32 %v593_v13, %v580_v12  ;;  %v644_v30 = vmul.f32 %v926_v21, %v635_v14  ;;  %v633_v38 = vadd.f32 %v629_v28, %v616_v17  ;;  %v654_v39 = vld [vmem:[#allocation2 + $0x18] sm:$0x7]  ;;  %v621_v60 = vld [vmem:[#allocation2 + $0x21] sm:$0x7]  ;;  %v930_v41 = vld [vmem:[%s1208_s5] ss:$0 sm:$0xff] }
  0xa3   : > { %v646_v48 = vmul.f32 %v926_v21, %v637_v35  ;;  %v671_v49 = vld [vmem:[#allocation2 + $0x19] sm:$0x7]  ;;  %v599_v52 = vadd.f32 %v595_v45, %v582_v34  ;;  %v663_v53 = vmul.f32 %v1154_v22, %v654_v39  ;;  %v696_v55 = vmul.f32 %v929_v42, %v687_v44  ;;  %v655_v0 = vld [vmem:[#allocation2 + $0x20] sm:$0x7]  ;;  %v656_v12 = vld [vmem:[#allocation2 + $0x28] sm:$0x7] }
  0xa4   : > { %v631_v29 = vadd.f32 %v627_v19, %v614_v18  ;;  %v615_v36 = vadd.f32 %v611_v23, %v597_v25  ;;  %v688_v57 = vld [vmem:[#allocation2 + $0x1a] sm:$0x7]  ;;  %v680_v61 = vmul.f32 %v928_v31, %v671_v49  ;;  %v613_v63 = vmul.f32 %v1132_v50, %v604_v59  ;;  %v672_v1 = vld [vmem:[#allocation2 + $0x21] sm:$0x7]  ;;  %v931_v8 = vld [vmem:[%s1209_s6] ss:$0 sm:$0xff] }
  0xa5   : > { %v650_v56 = vadd.f32 %v646_v48, %v633_v38  ;;  %v638_v3 = vld [vmem:[#allocation2 + $0x22] sm:$0x7]  ;;  %v664_v4 = vmul.f32 %v1154_v22, %v655_v0  ;;  %v697_v5 = vmul.f32 %v929_v42, %v688_v57  ;;  %v630_v10 = vmul.f32 %v1141_v6, %v621_v60  ;;  %v673_v18 = vld [vmem:[#allocation2 + $0x29] sm:$0x7] }
  0xa6   : > { %v648_v40 = vadd.f32 %v644_v30, %v631_v29  ;;  %v632_v46 = vadd.f32 %v628_v32, %v615_v36  ;;  %v617_v9 = vadd.f32 %v613_v63, %v599_v52  ;;  %v689_v11 = vld [vmem:[#allocation2 + $0x22] sm:$0x7]  ;;  %v681_v14 = vmul.f32 %v928_v31, %v672_v1  ;;  %v690_v27 = vld [vmem:[#allocation2 + $0x2a] sm:$0x7]  ;;  %v766_v63 = vld [vmem:[%s451_s15 + $0x6] sm:$0x3] }
  0xa7   : > { %v668_v13 = vadd.f32 %v664_v4, %v650_v56  ;;  %v647_v16 = vmul.f32 %v926_v21, %v638_v3  ;;  %v698_v20 = vmul.f32 %v929_v42, %v689_v11  ;;  %v665_v24 = vmul.f32 %v1154_v22, %v656_v12  ;;  %v763_v59 = vld [vmem:[%s451_s15 + $0x4] sm:$0x3] }
  0xa8   : > { %v666_v51 = vadd.f32 %v662_v37, %v648_v40  ;;  %v649_v54 = vadd.f32 %v645_v43, %v632_v46  ;;  %v634_v15 = vadd.f32 %v630_v10, %v617_v9  ;;  %v682_v6 = vmul.f32 %v928_v31, %v673_v18 }
  0xa9   : > { %v685_v19 = vadd.f32 %v681_v14, %v668_v13  ;;  %v699_v34 = vmul.f32 %v929_v42, %v690_v27 }
  0xaa   : > { %v683_v58 = vadd.f32 %v679_v47, %v666_v51  ;;  %v667_v62 = vadd.f32 %v663_v53, %v649_v54  ;;  %v651_v25 = vadd.f32 %v647_v16, %v634_v15  ;;  %v757_v51 = vld [vmem:[%s451_s15] sm:$0x3] }
  0xab   : > { %v702_v28 = vadd.f32 %v698_v20, %v685_v19 }
  0xac   : > { %v700_v2 = vadd.f32 %v696_v55, %v683_v58  ;;  %v684_v7 = vadd.f32 %v680_v61, %v667_v62  ;;  %v669_v30 = vadd.f32 %v665_v24, %v651_v25  ;;  %v760_v55 = vld [vmem:[%s451_s15 + $0x2] sm:$0x3] }
  0xad   : > { %v713_v33 = vmul.f32 %v930_v41, %v702_v28 }
  0xae   : > { %v711_v50 = vmul.f32 %v930_v41, %v700_v2  ;;  %v701_v17 = vadd.f32 %v697_v5, %v684_v7  ;;  %v686_v35 = vadd.f32 %v682_v6, %v669_v30 }
  0xaf   : > { %v724_v36 = vadd.f32 %v931_v8, %v713_v33 }
  0xb0   : > { %v722_v23 = vadd.f32 %v931_v8, %v711_v50  ;;  %v712_v26 = vmul.f32 %v930_v41, %v701_v17  ;;  %v703_v37 = vadd.f32 %v699_v34, %v686_v35 }
  0xb1   : > { %v934_v38 = vmul.f32 -1.442695, %v724_v36 }
  0xb2   : > { %v932_v29 = vmul.f32 -1.442695, %v722_v23  ;;  %v723_v32 = vadd.f32 %v931_v8, %v712_v26  ;;  %v714_v39 = vmul.f32 %v930_v41, %v703_v37 }
  0xb4   : > { %972 = vpow2.f32 %v932_v29  ;;  %v933_v21 = vmul.f32 -1.442695, %v723_v32  ;;  %v725_v22 = vadd.f32 %v931_v8, %v714_v39 }
  0xb6   : > { %974 = vpow2.f32 %v933_v21  ;;  %v935_v40 = vmul.f32 -1.442695, %v725_v22 }
  0xb7   : > { %976 = vpow2.f32 %v934_v38 }
  0xb8   : > { %978 = vpow2.f32 %v935_v40 }
  0xbe   : > { %v973_v43 = vpop.eup %972 }
  0xbf   : > { %v738_v44 = vadd.f32 1.0, %v973_v43 }
  0xc0   : > { %v975_v31 = vpop.eup %974 }
  0xc1   : > { %980 = vrcp.f32 %v738_v44  ;;  %v739_v45 = vadd.f32 1.0, %v975_v31  ;;  %v977_v46 = vpop.eup %976 }
  0xc2   : > { %v740_v42 = vadd.f32 1.0, %v977_v46  ;;  %v979_v47 = vpop.eup %978 }
  0xc3   : > { %982 = vrcp.f32 %v739_v45  ;;  %v741_v48 = vadd.f32 1.0, %v979_v47 }
  0xc4   : > { %984 = vrcp.f32 %v740_v42 }
  0xc5   : > { %986 = vrcp.f32 %v741_v48 }
  0xcb   : > { %v981_v49 = vpop.eup %980 }
  0xcc   : > { %v750_v53 = vpack.c.bf16 %v981_v49, %v981_v49 }
  0xcd   : > { %v983_v54 = vpop.eup %982 }
  0xce   : > { %v758_v56 = vsel %vm1182_vm14, %v750_v53, %v757_v51  ;;  %v751_v57 = vpack.c.bf16 %v983_v54, %v983_v54  ;;  %v985_v58 = vpop.eup %984 }
  0xcf   : > { %759 = vst [vmem:[%s451_s15] sm:$0x3] %v758_v56  ;;  %v752_v61 = vpack.c.bf16 %v985_v58, %v985_v58  ;;  %v987_v41 = vpop.eup %986 }
  0xd0   : > { %v761_v60 = vsel %vm1182_vm14, %v751_v57, %v760_v55  ;;  %v753_v0 = vpack.c.bf16 %v987_v41, %v987_v41 }
  0xd1   : > { %762 = vst [vmem:[%s451_s15 + $0x2] sm:$0x3] %v761_v60  ;;  %v764_v62 = vsel %vm1182_vm14, %v752_v61, %v763_v59 }
  0xd2   : > { %765 = vst [vmem:[%s451_s15 + $0x4] sm:$0x3] %v764_v62  ;;  %v767_v1 = vsel %vm1182_vm14, %v753_v0, %v766_v63 }
  0xd3   : > { %768 = vst [vmem:[%s451_s15 + $0x6] sm:$0x3] %v767_v1 }
  0xd4 PF: > { %s17_s26 = sadd.s32 1, %s1010_s26   ;;  %s1213_s24 = smov %s1006_s25 }
  0xd5   : > { %p14_p5 = scmp.ge.s32.totalorder %s17_s26, 4   ;;  %s1214_s25 = smov %s1216_s27 }
  0xd7   :  { %16 = sbr.rel (!%p14_p5) target bundleno = 2 (0x2), region = 89 }

// kernel: spatial_path_forward.11
= control target key start
LH: loop header
LB: loop body
LE: loop exit
PB: predicated region body
PF: predicated region fallthrough
CT: control target
= control target key end

     0   :  { %s1080_s24 = smov 0   ;;  %s1082_s25 = smov 0   ;;  %s1214_s0 = inlined_call_operand.vmem [shape: bf16[2,4,3,128], index: 0, kind: input, shape index: {}, may-alias: {0,1,2}]   ;;  %s1215_s1 = inlined_call_operand.vmem [shape: bf16[2,4,3,128], index: 1, kind: input, shape index: {}, may-alias: {0,1,2}]   ;;  %s1216_s2 = inlined_call_operand.vmem [shape: bf16[2,4,3,128], index: 2, kind: input, shape index: {}, may-alias: {0,1,2}]   ;;  %s1217_s3 = inlined_call_operand.vmem [shape: f32[1,6,1,1], index: 3, kind: input, shape index: {}]   ;;  %s1218_s4 = inlined_call_operand.vmem [shape: f32[9,128], index: 4, kind: input, shape index: {}]   ;;  %s1219_s5 = inlined_call_operand.vmem [shape: f32[1,128], index: 5, kind: input, shape index: {}]   ;;  %s1220_s6 = inlined_call_operand.vmem [shape: f32[1,128], index: 6, kind: input, shape index: {}]   ;;  %s1221_s7 = inlined_call_operand.vmem [shape: bf16[2,4,3,128], index: 7, kind: output, shape index: {}]  }
   0x1   :  { %s1084_s26 = smov 0  }
   0x2 LB: > { %s29_s27 = sadd.s32 1, %s1032_s25  ;;  %p938_p0 = scmp.ge.s32.totalorder %s1036_s26, 1  ;;  %s1036_s26 = sphi %s1084_s26, %s17_s26   ;;  %s1032_s25 = sphi %s1082_s25, %s1225_s25   ;;  %s1028_s24 = sphi %s1080_s24, %s1224_s24  }
   0x3   : > { %p31_p1 = scmp.ge.s32.totalorder %s29_s27, 2  ;;  %p329_p2 = scmp.lt.s32.totalorder %s1036_s26, 3 }
   0x5   : > { %s1227_s27 = smov (%p31_p1, %s29_s27), 0  ;;  %p330_p3 = pnand %p938_p0, %p329_p2 }
   0x6   : > { %v457_v0 = vld [vmem:[%s1217_s3 + $0x2] sm:$0x1] (!%p330_p3)  ;;  %v479_v1 = vlaneseq (!%p330_p3)  ;;  %v455_v2 = vld [vmem:[%s1217_s3] sm:$0x1] (!%p330_p3)  ;;  %v1038_v3 = vmov (!%p330_p3), 0   ;;  %v1039_v6 = vmov (!%p330_p3), 0.0  }
   0x7   : > { %333 = sbr.rel (%p330_p3) target bundleno = 218 (0xda), region = 48  ;;  %997 = vset.pattern.permute.xlu1 (!%p330_p3), %v1038_v3  ;;  %996 = vset.pattern.permute.xlu0 (!%p330_p3), %v1038_v3  ;;  %vm463_vm0 = vcmp.ne.f32.partialorder (!%p330_p3), %v457_v0, 0.0  ;;  %vm461_vm1 = vcmp.ne.f32.partialorder (!%p330_p3), %v455_v2, 0.0  ;;  %v458_v4 = vld [vmem:[%s1217_s3 + $0x3] sm:$0x1] (!%p330_p3)  ;;  %p398_p4 = scmp.lt.s32.totalorder (!%p330_p3), %s1028_s24, 1 }
   0x8   : > { %v456_v5 = vld [vmem:[%s1217_s3 + $0x1] sm:$0x1] (!%p330_p3)  ;;  %559 = vst [vmem:[#allocation2 + $0x10] sm:$0x1] (!%p330_p3), %v1039_v6  ;;  %565 = vst [vmem:[#allocation2 + $0x14] sm:$0x1] (!%p330_p3), %v1039_v6 }
   0x9   : > { %557 = vst [vmem:[#allocation2] sm:$0x1] (!%p330_p3), %v1039_v6  ;;  %558 = vst [vmem:[#allocation2 + $0x8] sm:$0x1] (!%p330_p3), %v1039_v6  ;;  %v475_v7 = vsel (!%p330_p3), %vm463_vm0, 1, %v1038_v3  ;;  %v480_v8 = vshrl.u32 (!%p330_p3), %v479_v1, 7 }
   0xa   : > { %560 = vst [vmem:[#allocation2 + $0x18] sm:$0x1] (!%p330_p3), %v1039_v6  ;;  %561 = vst [vmem:[#allocation2 + $0x20] sm:$0x1] (!%p330_p3), %v1039_v6  ;;  %vm464_vm2 = vcmp.ne.f32.partialorder (!%p330_p3), %v458_v4, 0.0  ;;  %v473_v9 = vsel (!%p330_p3), %vm461_vm1, 1, %v1038_v3 }
   0xb   : > { %562 = vst [vmem:[#allocation2 + $0x28] sm:$0x1] (!%p330_p3), %v1039_v6  ;;  %563 = vst [vmem:[#allocation2 + $0x4] sm:$0x1] (!%p330_p3), %v1039_v6  ;;  %vm462_vm3 = vcmp.ne.f32.partialorder (!%p330_p3), %v456_v5, 0.0  ;;  %v481_v12 = vsub.s32 (!%p330_p3), 0, %v480_v8 }
   0xc   : > { %564 = vst [vmem:[#allocation2 + $0xc] sm:$0x1] (!%p330_p3), %v1039_v6  ;;  %566 = vst [vmem:[#allocation2 + $0x1c] sm:$0x1] (!%p330_p3), %v1039_v6  ;;  %v460_v10 = vld [vmem:[%s1217_s3 + $0x5] sm:$0x1] (!%p330_p3) }
   0xd   : > { %567 = vst [vmem:[#allocation2 + $0x24] sm:$0x1] (!%p330_p3), %v1039_v6  ;;  %568 = vst [vmem:[#allocation2 + $0x2c] sm:$0x1] (!%p330_p3), %v1039_v6  ;;  %v459_v11 = vld [vmem:[%s1217_s3 + $0x4] sm:$0x1] (!%p330_p3)  ;;  %v490_v15 = vrot.slane (!%p330_p3), %v475_v7, %v481_v12  ;;  %v482_v16 = vrot.slane (!%p330_p3), %v473_v9, %v481_v12 }
   0xe   : > { %v476_v13 = vsel %vm464_vm2, 1, %v1038_v3  ;;  %v474_v14 = vsel %vm462_vm3, 1, %v1038_v3  ;;  %vm466_vm4 = vcmp.ne.f32.partialorder %v460_v10, 0.0  ;;  %vm465_vm5 = vcmp.ne.f32.partialorder %v459_v11, 0.0  ;;  %s1229_s24 = smov (!%p398_p4, %s1028_s24), 1 }
   0xf   : > { %510 = vperm.xlu1 %997, %v490_v15   ;;  %504 = vperm.xlu0 %996, %v482_v16   ;;  %v494_v17 = vrot.slane %v476_v13, %v481_v12  ;;  %v486_v18 = vrot.slane %v474_v14, %v481_v12  ;;  %v478_v19 = vsel %vm466_vm4, 1, %v1038_v3  ;;  %v477_v20 = vsel %vm465_vm5, 1, %v1038_v3  ;;  %s1130_s17 = sshll.u32 %s1229_s24, 3  ;;  %v947_v55 = vld [vmem:[%s1218_s4] ss:$0 sm:$0xff] }
  0x10   : > { %v502_v21 = vrot.slane %v478_v19, %v481_v12  ;;  %v498_v22 = vrot.slane %v477_v20, %v481_v12  ;;  %s1136_s20 = scalar_lea.vmem %s1214_s0, %s1130_s17  ;;  %s418_s23 = scalar_lea.vmem %s1215_s1, %s1130_s17  ;;  %v948_v56 = vld [vmem:[%s1218_s4 + $0x1] ss:$0 sm:$0xff]  ;;  %v949_v59 = vld [vmem:[%s1218_s4 + $0x2] ss:$0 sm:$0xff]  ;;  %v950_v13 = vld [vmem:[%s1218_s4 + $0x3] ss:$0 sm:$0xff] }
  0x11   : > { %v469_v27 = vld [vmem:[%s1136_s20 + $0x2] sm:$0x3]  ;;  %v467_v29 = vld [vmem:[%s418_s23] sm:$0x3]  ;;  %s967_s24 = sadd.s32 6, %s1130_s17  ;;  %s451_s13 = scalar_lea.vmem %s1221_s7, %s1130_s17  ;;  %vm780_vm2 = vcmask 1041408  }
  0x12   : > { %v470_v39 = vld [vmem:[%s1136_s20 + $0x4] sm:$0x3]  ;;  %v468_v41 = vld [vmem:[%s1136_s20] sm:$0x3]  ;;  %s434_s30 = scalar_lea.vmem %s1216_s2, %s967_s24  ;;  %v471_v53 = vld [vmem:[%s1136_s20 + $0x6] sm:$0x3] }
  0x13   : > { %513 = vperm.xlu1 %997, %v494_v17   ;;  %507 = vperm.xlu0 %996, %v486_v18   ;;  %v472_v51 = vld [vmem:[%s434_s30] sm:$0x3]  ;;  %v951_v19 = vld [vmem:[%s1218_s4 + $0x4] ss:$0 sm:$0xff]  ;;  %vm781_vm3 = vsmask.f32 1280 }
  0x14   : > { %vm1193_vm4 = vmand %vm780_vm2, %vm781_vm3 }
  0x17   : > { %519 = vperm.xlu1 %997, %v502_v21   ;;  %516 = vperm.xlu0 %996, %v498_v22  }
  0x8e   : > { %v511_v23 = vpop.permute.xlu1 %510  ;;  %v505_v24 = vpop.permute.xlu0 %504 }
  0x8f   : > { %vm523_vm6 = vcmp.eq.s32.totalorder %v511_v23, 1  ;;  %vm521_vm7 = vcmp.eq.s32.totalorder %v505_v24, 1 }
  0x90   : > { %v529_v25 = vsel %vm523_vm6, 1, %v1038_v3  ;;  %v527_v26 = vsel %vm521_vm7, 1, %v1038_v3 }
  0x91   : > { %v535_v28 = vpack.c.b16 %v529_v25, %v529_v25  ;;  %v533_v30 = vpack.c.b16 %v527_v26, %v527_v26 }
  0x92   : > { %v514_v31 = vpop.permute.xlu1 %513  ;;  %v508_v32 = vpop.permute.xlu0 %507 }
  0x93   : > { %vm541_vm8 = vcmp.ne.s16.totalorder %v535_v28, 0  ;;  %vm539_vm9 = vcmp.ne.s16.totalorder %v533_v30, 0  ;;  %vm524_vm10 = vcmp.eq.s32.totalorder %v514_v31, 1  ;;  %vm522_vm11 = vcmp.eq.s32.totalorder %v508_v32, 1  ;;  %v952_v30 = vld [vmem:[%s1218_s4 + $0x5] ss:$0 sm:$0xff] }
  0x94   : > { %v547_v33 = vsel %vm541_vm8, %v469_v27, 0  ;;  %v545_v34 = vsel %vm539_vm9, %v467_v29, 0  ;;  %v530_v35 = vsel %vm524_vm10, 1, %v1038_v3  ;;  %v528_v36 = vsel %vm522_vm11, 1, %v1038_v3 }
  0x95   : > { %v553_v37 = vunpack.c.l.bf16 %v547_v33  ;;  %v551_v38 = vunpack.c.l.bf16 %v545_v34  ;;  %v536_v40 = vpack.c.b16 %v530_v35, %v530_v35  ;;  %v534_v42 = vpack.c.b16 %v528_v36, %v528_v36 }
  0x96   : > { %v520_v43 = vpop.permute.xlu1 %519  ;;  %v517_v44 = vpop.permute.xlu0 %516 }
  0x97   : > { %571 = vst [vmem:[#allocation2 + $0x11] sm:$0x7] %v553_v37  ;;  %569 = vst [vmem:[#allocation2 + $0x1] sm:$0x7] %v551_v38  ;;  %vm542_vm12 = vcmp.ne.s16.totalorder %v536_v40, 0  ;;  %vm540_vm13 = vcmp.ne.s16.totalorder %v534_v42, 0 }
  0x98   : > { %vm526_vm14 = vcmp.eq.s32.totalorder %v520_v43, 1  ;;  %vm525_vm15 = vcmp.eq.s32.totalorder %v517_v44, 1  ;;  %v548_v45 = vsel %vm542_vm12, %v470_v39, 0  ;;  %v546_v46 = vsel %vm540_vm13, %v468_v41, 0  ;;  %v953_v37 = vld [vmem:[%s1218_s4 + $0x6] ss:$0 sm:$0xff] }
  0x99   : > { %v532_v47 = vsel %vm526_vm14, 1, %v1038_v3  ;;  %v531_v48 = vsel %vm525_vm15, 1, %v1038_v3  ;;  %v554_v49 = vunpack.c.l.bf16 %v548_v45  ;;  %v552_v50 = vunpack.c.l.bf16 %v546_v46 }
  0x9a   : > { %v538_v52 = vpack.c.b16 %v532_v47, %v532_v47  ;;  %v537_v54 = vpack.c.b16 %v531_v48, %v531_v48 }
  0x9b   : > { %572 = vst [vmem:[#allocation2 + $0x19] sm:$0x7] %v554_v49  ;;  %570 = vst [vmem:[#allocation2 + $0x9] sm:$0x7] %v552_v50 }
  0x9c   : > { %vm544_vm0 = vcmp.ne.s16.totalorder %v538_v52, 0  ;;  %vm543_vm1 = vcmp.ne.s16.totalorder %v537_v54, 0 }
  0x9d   : > { %v550_v57 = vsel %vm544_vm0, %v472_v51, 0  ;;  %v549_v58 = vsel %vm543_vm1, %v471_v53, 0 }
  0x9e   : > { %v556_v60 = vunpack.c.l.bf16 %v550_v57  ;;  %v555_v61 = vunpack.c.l.bf16 %v549_v58  ;;  %v577_v62 = vld [vmem:[#allocation2 + $0x10] sm:$0x7]  ;;  %v575_v5 = vld [vmem:[#allocation2] sm:$0x7] }
  0x9f   : > { %v594_v63 = vld [vmem:[#allocation2 + $0x11] sm:$0x7]  ;;  %v586_v1 = vmul.f32 %v947_v55, %v577_v62  ;;  %v592_v6 = vld [vmem:[#allocation2 + $0x1] sm:$0x7]  ;;  %v584_v8 = vmul.f32 %v947_v55, %v575_v5 }
  0xa0   : > { %v611_v0 = vld [vmem:[#allocation2 + $0x12] sm:$0x7]  ;;  %v603_v2 = vmul.f32 %v948_v56, %v594_v63  ;;  %574 = vst [vmem:[#allocation2 + $0x29] sm:$0x7] %v556_v60  ;;  %573 = vst [vmem:[#allocation2 + $0x21] sm:$0x7] %v555_v61  ;;  %v601_v9 = vmul.f32 %v948_v56, %v592_v6 }
  0xa1   : > { %v620_v4 = vmul.f32 %v949_v59, %v611_v0  ;;  %v609_v7 = vld [vmem:[#allocation2 + $0x2] sm:$0x7]  ;;  %v628_v38 = vld [vmem:[#allocation2 + $0x10] sm:$0x7] }
  0xa2   : > { %v607_v3 = vadd.f32 %v603_v2, %v586_v1  ;;  %v578_v10 = vld [vmem:[#allocation2 + $0x18] sm:$0x7]  ;;  %v605_v20 = vadd.f32 %v601_v9, %v584_v8  ;;  %v618_v21 = vmul.f32 %v949_v59, %v609_v7  ;;  %v576_v27 = vld [vmem:[#allocation2 + $0x8] sm:$0x7]  ;;  %v645_v42 = vld [vmem:[#allocation2 + $0x11] sm:$0x7] }
  0xa3   : > { %v595_v11 = vld [vmem:[#allocation2 + $0x19] sm:$0x7]  ;;  %v587_v15 = vmul.f32 %v947_v55, %v578_v10  ;;  %v593_v28 = vld [vmem:[#allocation2 + $0x9] sm:$0x7]  ;;  %v585_v33 = vmul.f32 %v947_v55, %v576_v27  ;;  %v679_v49 = vld [vmem:[#allocation2 + $0x10] sm:$0x7] }
  0xa4   : > { %v612_v12 = vld [vmem:[#allocation2 + $0x1a] sm:$0x7]  ;;  %v624_v14 = vadd.f32 %v620_v4, %v607_v3  ;;  %v604_v16 = vmul.f32 %v948_v56, %v595_v11  ;;  %v610_v29 = vld [vmem:[#allocation2 + $0xa] sm:$0x7]  ;;  %v622_v31 = vadd.f32 %v618_v21, %v605_v20  ;;  %v602_v34 = vmul.f32 %v948_v56, %v593_v28  ;;  %v954_v55 = vld [vmem:[%s1218_s4 + $0x7] ss:$0 sm:$0xff] }
  0xa5   : > { %v629_v17 = vld [vmem:[#allocation2 + $0x18] sm:$0x7]  ;;  %v621_v25 = vmul.f32 %v949_v59, %v612_v12  ;;  %v627_v35 = vld [vmem:[#allocation2 + $0x8] sm:$0x7]  ;;  %v619_v46 = vmul.f32 %v949_v59, %v610_v29  ;;  %v637_v56 = vmul.f32 %v950_v13, %v628_v38  ;;  %v662_v62 = vld [vmem:[#allocation2 + $0x12] sm:$0x7]  ;;  %v654_v4 = vmul.f32 %v951_v19, %v645_v42 }
  0xa6   : > { %v646_v18 = vld [vmem:[#allocation2 + $0x19] sm:$0x7]  ;;  %v638_v22 = vmul.f32 %v950_v13, %v629_v17  ;;  %v608_v24 = vadd.f32 %v604_v16, %v587_v15  ;;  %v644_v36 = vld [vmem:[#allocation2 + $0x9] sm:$0x7]  ;;  %v636_v40 = vmul.f32 %v950_v13, %v627_v35  ;;  %v606_v45 = vadd.f32 %v602_v34, %v585_v33  ;;  %v696_v63 = vld [vmem:[#allocation2 + $0x11] sm:$0x7] }
  0xa7   : > { %v663_v23 = vld [vmem:[#allocation2 + $0x1a] sm:$0x7]  ;;  %v655_v26 = vmul.f32 %v951_v19, %v646_v18  ;;  %v661_v41 = vld [vmem:[#allocation2 + $0xa] sm:$0x7]  ;;  %v630_v47 = vld [vmem:[#allocation2 + $0x20] sm:$0x7]  ;;  %v653_v51 = vmul.f32 %v951_v19, %v644_v36  ;;  %v688_v5 = vmul.f32 %v953_v37, %v679_v49  ;;  %v671_v16 = vmul.f32 %v952_v30, %v662_v62 }
  0xa8   : > { %v642_v32 = vadd.f32 %v638_v22, %v624_v14  ;;  %v625_v39 = vadd.f32 %v621_v25, %v608_v24  ;;  %v672_v44 = vmul.f32 %v952_v30, %v663_v23  ;;  %v647_v48 = vld [vmem:[#allocation2 + $0x21] sm:$0x7]  ;;  %v640_v50 = vadd.f32 %v636_v40, %v622_v31  ;;  %v682_v0 = vld [vmem:[#allocation2 + $0x28] sm:$0x7]  ;;  %v713_v10 = vld [vmem:[#allocation2 + $0x12] sm:$0x7] }
  0xa9   : > { %v639_v52 = vmul.f32 %v950_v13, %v630_v47  ;;  %v664_v53 = vld [vmem:[#allocation2 + $0x22] sm:$0x7]  ;;  %v623_v58 = vadd.f32 %v619_v46, %v606_v45  ;;  %v670_v60 = vmul.f32 %v952_v30, %v661_v41  ;;  %v656_v2 = vmul.f32 %v951_v19, %v647_v48  ;;  %v955_v9 = vld [vmem:[%s1218_s4 + $0x8] ss:$0 sm:$0xff]  ;;  %v680_v11 = vld [vmem:[#allocation2 + $0x18] sm:$0x7] }
  0xaa   : > { %v659_v43 = vadd.f32 %v655_v26, %v642_v32  ;;  %v681_v54 = vld [vmem:[#allocation2 + $0x20] sm:$0x7]  ;;  %v657_v59 = vadd.f32 %v653_v51, %v640_v50  ;;  %v673_v7 = vmul.f32 %v952_v30, %v664_v53  ;;  %v705_v17 = vmul.f32 %v954_v55, %v696_v63  ;;  %v699_v21 = vld [vmem:[#allocation2 + $0x29] sm:$0x7]  ;;  %v697_v19 = vld [vmem:[#allocation2 + $0x19] sm:$0x7] }
  0xab   : > { %v698_v61 = vld [vmem:[#allocation2 + $0x21] sm:$0x7]  ;;  %v643_v1 = vadd.f32 %v639_v52, %v625_v39  ;;  %v690_v3 = vmul.f32 %v953_v37, %v681_v54  ;;  %v641_v6 = vadd.f32 %v637_v56, %v623_v58  ;;  %v691_v20 = vmul.f32 %v953_v37, %v682_v0  ;;  %v716_v29 = vld [vmem:[#allocation2 + $0x2a] sm:$0x7]  ;;  %v956_v31 = vld [vmem:[%s1219_s5] ss:$0 sm:$0xff] }
  0xac   : > { %v676_v57 = vadd.f32 %v672_v44, %v659_v43  ;;  %v715_v8 = vld [vmem:[#allocation2 + $0x22] sm:$0x7]  ;;  %v674_v12 = vadd.f32 %v670_v60, %v657_v59  ;;  %v707_v15 = vmul.f32 %v954_v55, %v698_v61  ;;  %v722_v26 = vmul.f32 %v955_v9, %v713_v10  ;;  %v714_v32 = vld [vmem:[#allocation2 + $0x1a] sm:$0x7]  ;;  %v957_v39 = vld [vmem:[%s1220_s6] ss:$0 sm:$0xff] }
  0xad   : > { %v660_v13 = vadd.f32 %v656_v2, %v643_v1  ;;  %v658_v18 = vadd.f32 %v654_v4, %v641_v6  ;;  %v724_v25 = vmul.f32 %v955_v9, %v715_v8  ;;  %v689_v27 = vmul.f32 %v953_v37, %v680_v11  ;;  %v792_v11 = vld [vmem:[%s451_s13 + $0x6] sm:$0x3] }
  0xae   : > { %v694_v14 = vadd.f32 %v690_v3, %v676_v57  ;;  %v692_v22 = vadd.f32 %v688_v5, %v674_v12  ;;  %v708_v30 = vmul.f32 %v954_v55, %v699_v21  ;;  %v706_v36 = vmul.f32 %v954_v55, %v697_v19  ;;  %v789_v3 = vld [vmem:[%s451_s13 + $0x4] sm:$0x3] }
  0xaf   : > { %v677_v23 = vadd.f32 %v673_v7, %v660_v13  ;;  %v675_v28 = vadd.f32 %v671_v16, %v658_v18  ;;  %v725_v41 = vmul.f32 %v955_v9, %v716_v29  ;;  %v723_v43 = vmul.f32 %v955_v9, %v714_v32  ;;  %v783_v7 = vld [vmem:[%s451_s13] sm:$0x3]  ;;  %v786_v13 = vld [vmem:[%s451_s13 + $0x2] sm:$0x3] }
  0xb0   : > { %v711_v24 = vadd.f32 %v707_v15, %v694_v14  ;;  %v709_v33 = vadd.f32 %v705_v17, %v692_v22 }
  0xb1   : > { %v695_v34 = vadd.f32 %v691_v20, %v677_v23  ;;  %v693_v38 = vadd.f32 %v689_v27, %v675_v28 }
  0xb2   : > { %v728_v35 = vadd.f32 %v724_v25, %v711_v24  ;;  %v726_v40 = vadd.f32 %v722_v26, %v709_v33 }
  0xb3   : > { %v712_v37 = vadd.f32 %v708_v30, %v695_v34  ;;  %v710_v44 = vadd.f32 %v706_v36, %v693_v38 }
  0xb4   : > { %v739_v42 = vmul.f32 %v956_v31, %v728_v35  ;;  %v737_v46 = vmul.f32 %v956_v31, %v726_v40 }
  0xb5   : > { %v729_v45 = vadd.f32 %v725_v41, %v712_v37  ;;  %v727_v48 = vadd.f32 %v723_v43, %v710_v44 }
  0xb6   : > { %v750_v47 = vadd.f32 %v957_v39, %v739_v42  ;;  %v748_v50 = vadd.f32 %v957_v39, %v737_v46 }
  0xb7   : > { %v740_v49 = vmul.f32 %v956_v31, %v729_v45  ;;  %v738_v52 = vmul.f32 %v956_v31, %v727_v48 }
  0xb8   : > { %v960_v51 = vmul.f32 -1.442695, %v750_v47  ;;  %v958_v54 = vmul.f32 -1.442695, %v748_v50 }
  0xb9   : > { %v751_v53 = vadd.f32 %v957_v39, %v740_v49  ;;  %v749_v55 = vadd.f32 %v957_v39, %v738_v52 }
  0xba   : > { %998 = vpow2.f32 %v960_v51 }
  0xbb   : > { %1000 = vpow2.f32 %v958_v54  ;;  %v961_v56 = vmul.f32 -1.442695, %v751_v53  ;;  %v959_v57 = vmul.f32 -1.442695, %v749_v55 }
  0xbd   : > { %1002 = vpow2.f32 %v961_v56 }
  0xbe   : > { %1004 = vpow2.f32 %v959_v57 }
  0xc4   : > { %v999_v58 = vpop.eup %998 }
  0xc5   : > { %v766_v60 = vadd.f32 1.0, %v999_v58  ;;  %v1001_v61 = vpop.eup %1000 }
  0xc6   : > { %v764_v62 = vadd.f32 1.0, %v1001_v61 }
  0xc7   : > { %1006 = vrcp.f32 %v766_v60  ;;  %v1003_v63 = vpop.eup %1002 }
  0xc8   : > { %v1005_v59 = vpop.eup %1004  ;;  %v767_v0 = vadd.f32 1.0, %v1003_v63  ;;  %1008 = vrcp.f32 %v764_v62 }
  0xc9   : > { %v765_v1 = vadd.f32 1.0, %v1005_v59 }
  0xca   : > { %1010 = vrcp.f32 %v767_v0 }
  0xcb   : > { %1012 = vrcp.f32 %v765_v1 }
  0xd1   : > { %v1007_v2 = vpop.eup %1006 }
  0xd2   : > { %v778_v5 = vpack.c.bf16 %v1007_v2, %v1007_v2  ;;  %v1009_v6 = vpop.eup %1008 }
  0xd3   : > { %v776_v8 = vpack.c.bf16 %v1009_v6, %v1009_v6 }
  0xd4   : > { %v790_v9 = vsel %vm1193_vm4, %v778_v5, %v789_v3  ;;  %v1011_v10 = vpop.eup %1010 }
  0xd5   : > { %791 = vst [vmem:[%s451_s13 + $0x4] sm:$0x3] %v790_v9  ;;  %v1013_v12 = vpop.eup %1012  ;;  %v779_v14 = vpack.c.bf16 %v1011_v10, %v1011_v10  ;;  %v784_v15 = vsel %vm1193_vm4, %v776_v8, %v783_v7 }
  0xd6   : > { %v777_v16 = vpack.c.bf16 %v1013_v12, %v1013_v12  ;;  %785 = vst [vmem:[%s451_s13] sm:$0x3] %v784_v15 }
  0xd7   : > { %v793_v17 = vsel %vm1193_vm4, %v779_v14, %v792_v11 }
  0xd8   : > { %v787_v18 = vsel %vm1193_vm4, %v777_v16, %v786_v13  ;;  %794 = vst [vmem:[%s451_s13 + $0x6] sm:$0x3] %v793_v17 }
  0xd9   : > { %788 = vst [vmem:[%s451_s13 + $0x2] sm:$0x3] %v787_v18 }
  0xda PF: > { %s17_s26 = sadd.s32 1, %s1036_s26   ;;  %s1224_s24 = smov %s1032_s25 }
  0xdb   : > { %p14_p5 = scmp.ge.s32.totalorder %s17_s26, 4   ;;  %s1225_s25 = smov %s1227_s27 }
  0xdd   :  { %16 = sbr.rel (!%p14_p5) target bundleno = 2 (0x2), region = 89 }

// kernel: spatial_path_forward.13
= control target key start
LH: loop header
LB: loop body
LE: loop exit
PB: predicated region body
PF: predicated region fallthrough
CT: control target
= control target key end

     0   :  { %s345_s0 = inlined_call_operand.vmem [shape: f32[32,128], index: 0, kind: input, shape index: {}]   ;;  %s346_s1 = inlined_call_operand.vmem [shape: bf16[128,128], index: 1, kind: input, shape index: {}]   ;;  %s347_s2 = inlined_call_operand.vmem [shape: f32[1,128], index: 2, kind: input, shape index: {}]   ;;  %s348_s3 = inlined_call_operand.vmem [shape: f32[1,128], index: 3, kind: input, shape index: {}]   ;;  %s349_s4 = inlined_call_operand.hbm [shape: f32[32,128], index: 4, kind: output, shape index: {}]  }
   0x1   :  { %v231_v0 = vld [vmem:[%s346_s1] sm:$0xff]   ;;  %v232_v1 = vld [vmem:[%s346_s1 + $0x8] sm:$0xff]   ;;  %v233_v2 = vld [vmem:[%s346_s1 + $0x10] sm:$0xff]  }
   0x2   :  { %208 = vmatprep.subr.bf16.mxu0 %v231_v0  ;;  %v234_v3 = vld [vmem:[%s346_s1 + $0x18] sm:$0xff]   ;;  %v19_v4 = vld [vmem:[%s345_s0] sm:$0xff]  ;;  %v20_v5 = vld [vmem:[%s345_s0 + $0x8] sm:$0xff] }
   0x3   :  { %209 = vmatpush3.bf16.msra.mxu0 %v231_v0  ;;  %v23_v6 = vand.u32 2147483647, %v19_v4  ;;  %v24_v7 = vand.u32 2147483647, %v20_v5 }
   0x4   :  { %210 = vmatprep.subr.bf16.mxu0 %v232_v1 }
   0x7   :  { %211 = vmatpush3.bf16.msra.mxu0 %v232_v1 }
   0x8   :  { %212 = vmatprep.subr.bf16.mxu0 %v233_v2 }
   0x9   :  { %9 = vsyncpa [#allocation3], 0  ;;  %v27_v8 = vpack.c.bf16 %v24_v7, %v23_v6  ;;  %v235_v9 = vld [vmem:[%s346_s1 + $0x20] sm:$0xff]   ;;  %v236_v10 = vld [vmem:[%s346_s1 + $0x28] sm:$0xff]  }
   0xa   :  { %v237_v11 = vld [vmem:[%s346_s1 + $0x30] sm:$0xff]   ;;  %v22_v13 = vld [vmem:[%s345_s0 + $0x18] sm:$0xff]  ;;  %v196_v18 = vld [vmem:[%s347_s2] ss:$0 sm:$0xff] }
   0xb   :  { %213 = vmatpush3.bf16.msra.mxu0 %v233_v2  ;;  %224 = vmatprep.mubr.bf16.mxu0 %v27_v8  ;;  %v21_v12 = vld [vmem:[%s345_s0 + $0x10] sm:$0xff]  ;;  %v238_v14 = vld [vmem:[%s346_s1 + $0x38] sm:$0xff]   ;;  %v26_v16 = vand.u32 2147483647, %v22_v13  ;;  %v197_v20 = vld [vmem:[%s348_s3] ss:$0 sm:$0xff] }
   0xc   :  { %214 = vmatprep.subr.bf16.mxu0 %v234_v3  ;;  %v25_v15 = vand.u32 2147483647, %v21_v12  ;;  %s263_s0 = smov [#allocation2]  }
   0xd   :  { %s177_s1 = sshll.u32 %s263_s0, 4  ;;  %s178_s1 = int_to_ptr.vmem [resolvable:$true] %s177_s1 }
   0xe   :  { %v28_v17 = vpack.c.bf16 %v26_v16, %v25_v15  ;;  %s239_s2 = scalar_lea.vmem %s178_s1, 512  ;;  %p244_p1 = scmp.lt.s32.totalorder %s178_s1, %s178_s1 }
   0xf   :  { %215 = vmatpush3.bf16.msra.mxu0 %v234_v3  ;;  %p240_p0 = scmp.ne.s32.totalorder %s178_s1, %s239_s2  ;;  %p245_p2 = scmp.lt.s32.totalorder %s239_s2, %s239_s2 }
  0x10   :  { %216 = vmatprep.subr.bf16.mxu0 %v235_v9 }
  0x11   :  { %p246_p3 = por %p245_p2, %p244_p1 }
  0x13   :  { %217 = vmatpush3.bf16.msra.mxu0 %v235_v9  ;;  %p247_p4 = pnand %p246_p3, %p240_p0 }
  0x14   :  { %218 = vmatprep.subr.bf16.mxu0 %v236_v10 }
  0x17   :  { %219 = vmatpush3.bf16.msra.mxu0 %v236_v10 }
  0x18   :  { %220 = vmatprep.subr.bf16.mxu0 %v237_v11 }
  0x1b   :  { %221 = vmatpush3.bf16.msra.mxu0 %v237_v11 }
  0x1c   :  { %222 = vmatprep.subr.bf16.mxu0 %v238_v14 }
  0x1f   :  { %223 = vmatpush3.bf16.msra.mxu0 %v238_v14 }
  0x22   :  { %225 = vmatmul.mubr.bf16.vlgmr.msra.gmra.mrb[0].mxu0 %v28_v17 }
  0xf5   :  { %v226_v19 = vpop.f32.mrb[0].mxu0 }
  0xf6   :  { %v151_v21 = vmul.f32 %v226_v19, %v196_v18  ;;  %v127_v22 = vpop.f32.mrb[1].mxu0 }
  0xf7   :  { %v149_v23 = vmul.f32 %v196_v18, %v127_v22  ;;  %v227_v24 = vpop.f32.mrb[2].mxu0 }
  0xf8   :  { %v162_v25 = vadd.f32 %v197_v20, %v151_v21  ;;  %v152_v26 = vmul.f32 %v227_v24, %v196_v18  ;;  %v130_v27 = vpop.f32.mrb[3].mxu0 }
  0xf9   :  { %v160_v28 = vadd.f32 %v197_v20, %v149_v23  ;;  %v150_v29 = vmul.f32 %v196_v18, %v130_v27 }
  0xfa   :  { %v166_v30 = vmax.f32 %v162_v25, 0.0  ;;  %v163_v31 = vadd.f32 %v197_v20, %v152_v26 }
  0xfb   :  { %v164_v32 = vmax.f32 %v160_v28, 0.0  ;;  %v161_v33 = vadd.f32 %v197_v20, %v150_v29 }
  0xfc   :  { %170 = vst [vmem:[#allocation2 + $0x10] sm:$0xff] %v166_v30  ;;  %v167_v34 = vmax.f32 %v163_v31, 0.0 }
  0xfd   :  { %168 = vst [vmem:[#allocation2] sm:$0xff] %v164_v32  ;;  %v165_v35 = vmax.f32 %v161_v33, 0.0 }
  0xfe   :  { %171 = vst [vmem:[#allocation2 + $0x18] sm:$0xff] %v167_v34 }
  0xff   :  { %169 = vst [vmem:[#allocation2 + $0x8] sm:$0xff] %v165_v35 }
 0x100   :  { %250 = shalt.err (!%p247_p4)
}
 0x101   :  { %s251_s18 = scalar_lea.hbm %s349_s4, 512 }
 0x102   :  { %p252_p5 = scmp.ne.s32.totalorder %s349_s4, %s251_s18  ;;  %p255_p6 = scmp.lt.u32.totalorder %s251_s18, %s349_s4 }
 0x104   :  { %p257_p7 = pnand %p255_p6, %p252_p5 }
 0x106   :  { %260 = shalt.err (!%p257_p7)
}
 0x107   :  { %s264_s23 = smov 128   ;;  %s265_s24 = smov 8  }
 0x108   :  { %183 = dma.vmem_to_hbm [thread:$0]  %s178_s1, 512, %s349_s4, [#allocation3], %s264_s23, %s264_s23, %s265_s24  }
 0x109   :  { %261 = dma.done.wait [#allocation3], 512  }
 0x10a   :  { %262 = vsyncadd [#allocation3], 4294966784 }
 0x10b   :  { %187 = vsyncpa [#allocation3], 1 }

// kernel: spatial_path_forward.12
= control target key start
LH: loop header
LB: loop body
LE: loop exit
PB: predicated region body
PF: predicated region fallthrough
CT: control target
= control target key end

     0   :  { %s7560_s25 = smov 0   ;;  %s7562_s26 = smov 0   ;;  %s9216_s0 = inlined_call_operand.vmem [shape: bf16[2,4,3,128], index: 0, kind: input, shape index: {}, may-alias: {0,1,2}]   ;;  %s9217_s1 = inlined_call_operand.vmem [shape: bf16[2,4,3,128], index: 1, kind: input, shape index: {}, may-alias: {0,1,2}]   ;;  %s9218_s2 = inlined_call_operand.vmem [shape: bf16[2,4,3,128], index: 2, kind: input, shape index: {}, may-alias: {0,1,2}]   ;;  %s9219_s3 = inlined_call_operand.vmem [shape: bf16[2,4,3,128], index: 3, kind: input, shape index: {}, may-alias: {3,4,5}]   ;;  %s9220_s4 = inlined_call_operand.vmem [shape: bf16[2,4,3,128], index: 4, kind: input, shape index: {}, may-alias: {3,4,5}]   ;;  %s9221_s5 = inlined_call_operand.vmem [shape: bf16[2,4,3,128], index: 5, kind: input, shape index: {}, may-alias: {3,4,5}]   ;;  %s9222_s6 = inlined_call_operand.vmem [shape: f32[2,4,3,128], index: 6, kind: input, shape index: {}]   ;;  %s9223_s7 = inlined_call_operand.vmem [shape: f32[2,4,3,128], index: 7, kind: input, shape index: {}]   ;;  %s9224_s8 = inlined_call_operand.vmem [shape: f32[1,6,1,1], index: 8, kind: input, shape index: {}]   ;;  %s9225_s9 = inlined_call_operand.vmem [shape: bf16[9,256,256], index: 9, kind: input, shape index: {}]   ;;  %s9226_s10 = inlined_call_operand.vmem [shape: f32[1,256], index: 10, kind: input, shape index: {}]   ;;  %s9227_s11 = inlined_call_operand.vmem [shape: f32[1,256], index: 11, kind: input, shape index: {}]   ;;  %s9228_s12 = inlined_call_operand.vmem [shape: f32[2,4,3,128], index: 12, kind: output, shape index: {0}]   ;;  %s9229_s13 = inlined_call_operand.vmem [shape: f32[2,4,3,128], index: 13, kind: output, shape index: {1}]  }
   0x1   :  { %s7564_s27 = smov 0  }
   0x2 LB: > { %s36_s28 = sadd.s32 1, %s7481_s26  ;;  %p6295_p0 = scmp.ge.s32.totalorder %s7485_s27, 1  ;;  %s7485_s27 = sphi %s7564_s27, %s24_s27   ;;  %s7481_s26 = sphi %s7562_s26, %s9241_s26   ;;  %s7477_s25 = sphi %s7560_s25, %s9240_s25  }
   0x3   : > { %p38_p1 = scmp.ge.s32.totalorder %s36_s28, 2  ;;  %p597_p2 = scmp.lt.s32.totalorder %s7485_s27, 3 }
   0x5   : > { %s9243_s28 = smov (%p38_p1, %s36_s28), 0  ;;  %p598_p3 = pnand %p6295_p0, %p597_p2 }
   0x6   : > { %v868_v0 = vld [vmem:[%s9224_s8 + $0x1] sm:$0x1] (!%p598_p3)  ;;  %v891_v1 = vlaneseq (!%p598_p3)  ;;  %v7487_v2 = vmov (!%p598_p3), 0   ;;  %v867_v3 = vld [vmem:[%s9224_s8] sm:$0x1] (!%p598_p3)  ;;  %vm975_vm6 = vcmask (!%p598_p3), 1040384  }
   0x7   : > { %601 = sbr.rel (%p598_p3) target bundleno = 736 (0x2e0), region = 68  ;;  %6982 = vset.pattern.permute.xlu1 (!%p598_p3), %v7487_v2  ;;  %6981 = vset.pattern.permute.xlu0 (!%p598_p3), %v7487_v2  ;;  %vm874_vm0 = vcmp.ne.f32.partialorder (!%p598_p3), %v868_v0, 0.0  ;;  %vm873_vm1 = vcmp.ne.f32.partialorder (!%p598_p3), %v867_v3, 0.0  ;;  %v870_v6 = vld [vmem:[%s9224_s8 + $0x3] sm:$0x1] (!%p598_p3)  ;;  %vm978_vm8 = vcmask (!%p598_p3), 1044484  }
   0x8   : > { %v886_v4 = vsel (!%p598_p3), %vm874_vm0, 1, %v7487_v2  ;;  %v7589_v5 = vshrl.u32 (!%p598_p3), %v891_v1, 7  ;;  %v885_v7 = vsel (!%p598_p3), %vm873_vm1, 1, %v7487_v2  ;;  %vm876_vm2 = vcmp.ne.f32.partialorder (!%p598_p3), %v870_v6, 0.0  ;;  %v869_v8 = vld [vmem:[%s9224_s8 + $0x2] sm:$0x1] (!%p598_p3) }
   0x9   : > { %v872_v9 = vld [vmem:[%s9224_s8 + $0x5] sm:$0x1] (!%p598_p3)  ;;  %v888_v11 = vsel (!%p598_p3), %vm876_vm2, 1, %v7487_v2  ;;  %vm875_vm3 = vcmp.ne.f32.partialorder (!%p598_p3), %v869_v8, 0.0  ;;  %v871_v12 = vld [vmem:[%s9224_s8 + $0x4] sm:$0x1] (!%p598_p3) }
   0xa   : > { %v7602_v10 = vsub.s32 (!%p598_p3), 0, %v7589_v5  ;;  %v887_v13 = vsel (!%p598_p3), %vm875_vm3, 1, %v7487_v2  ;;  %vm878_vm4 = vcmp.ne.f32.partialorder (!%p598_p3), %v872_v9, 0.0  ;;  %vm877_vm5 = vcmp.ne.f32.partialorder (!%p598_p3), %v871_v12, 0.0  ;;  %v6983_v14 = vld [vmem:[%s9225_s9 + $0x104] ss:$8 sps:$4 sm:$0xff] (!%p598_p3)  }
   0xb   : > { %v6985_v17 = vld [vmem:[%s9225_s9 + $0x204] ss:$8 sps:$4 sm:$0xff] (!%p598_p3)   ;;  %v6987_v18 = vld [vmem:[%s9225_s9 + $0x100] ss:$8 sps:$4 sm:$0xff] (!%p598_p3)   ;;  %1654 = vmatprep.subr.bf16.mxu0 (!%p598_p3), %v6983_v14  ;;  %v6989_v20 = vld [vmem:[%s9225_s9 + $0x114] ss:$8 sps:$4 sm:$0xff] (!%p598_p3)  }
   0xc   : > { %v898_v15 = vrot.slane (!%p598_p3), %v886_v4, %v7602_v10  ;;  %v894_v16 = vrot.slane (!%p598_p3), %v885_v7, %v7602_v10  ;;  %v6988_v19 = vld [vmem:[%s9225_s9 + $0x200] ss:$8 sps:$4 sm:$0xff] (!%p598_p3)   ;;  %v906_v21 = vrot.slane (!%p598_p3), %v888_v11, %v7602_v10  ;;  %v902_v22 = vrot.slane (!%p598_p3), %v887_v13, %v7602_v10  ;;  %v6991_v23 = vld [vmem:[%s9225_s9 + $0x214] ss:$8 sps:$4 sm:$0xff] (!%p598_p3)   ;;  %v6993_v24 = vld [vmem:[%s9225_s9 + $0x110] ss:$8 sps:$4 sm:$0xff] (!%p598_p3)   ;;  %2430 = vmatprep.subr.bf16.mxu1 (!%p598_p3), %v6985_v17 }
   0xd   : > { %v890_v25 = vsel (!%p598_p3), %vm878_vm4, 1, %v7487_v2  ;;  %v889_v26 = vsel (!%p598_p3), %vm877_vm5, 1, %v7487_v2  ;;  %1655 = vmatpush1.bf16.msra.mxu0 (!%p598_p3), %v6987_v18  ;;  %v6994_v27 = vld [vmem:[%s9225_s9 + $0x210] ss:$8 sps:$4 sm:$0xff] (!%p598_p3)   ;;  %2431 = vmatpush1.bf16.msra.mxu1 (!%p598_p3), %v6988_v19  ;;  %v6995_v28 = vld [vmem:[%s9225_s9 + $0x124] ss:$8 sps:$4 sm:$0xff] (!%p598_p3)  }
   0xe   : > { %919 = vperm.xlu1 %6982, %v898_v15   ;;  %916 = vperm.xlu0 %6981, %v894_v16   ;;  %v6997_v29 = vld [vmem:[%s9225_s9 + $0x224] ss:$8 sps:$4 sm:$0xff]   ;;  %v914_v30 = vrot.slane %v890_v25, %v7602_v10  ;;  %v910_v31 = vrot.slane %v889_v26, %v7602_v10  ;;  %v6999_v32 = vld [vmem:[%s9225_s9 + $0x120] ss:$8 sps:$4 sm:$0xff]   ;;  %vm976_vm7 = vsmask.f32 256 }
   0xf   : > { %1656 = vmatprep.subr.bf16.mxu0 %v6989_v20  ;;  %2432 = vmatprep.subr.bf16.mxu1 %v6991_v23  ;;  %v7000_v33 = vld [vmem:[%s9225_s9 + $0x220] ss:$8 sps:$4 sm:$0xff]   ;;  %v7001_v34 = vld [vmem:[%s9225_s9 + $0x134] ss:$8 sps:$4 sm:$0xff]   ;;  %vm979_vm9 = vsmask.f32 4352  ;;  %vm977_vm10 = vmand %vm975_vm6, %vm976_vm7 }
  0x10   : > { %v7003_v35 = vld [vmem:[%s9225_s9 + $0x234] ss:$8 sps:$4 sm:$0xff]   ;;  %v7005_v36 = vld [vmem:[%s9225_s9 + $0x130] ss:$8 sps:$4 sm:$0xff]   ;;  %v7007_v38 = vld [vmem:[%s9225_s9 + $0x144] ss:$8 sps:$4 sm:$0xff]  }
  0x11   : > { %1657 = vmatpush1.bf16.msra.mxu0 %v6993_v24  ;;  %2433 = vmatpush1.bf16.msra.mxu1 %v6994_v27  ;;  %v7006_v37 = vld [vmem:[%s9225_s9 + $0x230] ss:$8 sps:$4 sm:$0xff]   ;;  %v985_v39 = vld [vmem:[#allocation2 + $0x8] sm:$0x11]  ;;  %vm980_vm11 = vmand %vm978_vm8, %vm979_vm9  ;;  %vm1000_vm13 = vcmask 1042434   ;;  %vm1003_vm0 = vcmask 1046534  }
  0x12   : > { %925 = vperm.xlu1 %6982, %v906_v21   ;;  %922 = vperm.xlu0 %6981, %v902_v22   ;;  %v982_v40 = vld [vmem:[#allocation2] sm:$0x11]  ;;  %vm7675_vm12 = vmor %vm980_vm11, %vm977_vm10  ;;  %v7013_v47 = vld [vmem:[%s9225_s9 + $0x154] ss:$8 sps:$4 sm:$0xff]   ;;  %vm1001_vm14 = vsmask.f32 2304 }
  0x13   : > { %1658 = vmatprep.subr.bf16.mxu0 %v6995_v28  ;;  %2434 = vmatprep.subr.bf16.mxu1 %v6997_v29  ;;  %v7009_v41 = vld [vmem:[%s9225_s9 + $0x244] ss:$8 sps:$4 sm:$0xff]   ;;  %v986_v43 = vsel %vm7675_vm12, 0, %v985_v39  ;;  %v983_v44 = vsel %vm7675_vm12, 0, %v982_v40  ;;  %v7011_v45 = vld [vmem:[%s9225_s9 + $0x140] ss:$8 sps:$4 sm:$0xff]   ;;  %vm1002_vm1 = vmand %vm1000_vm13, %vm1001_vm14 }
  0x14   : > { %987 = vst [vmem:[#allocation2 + $0x8] sm:$0x11] %v986_v43  ;;  %984 = vst [vmem:[#allocation2] sm:$0x11] %v983_v44  ;;  %v7012_v46 = vld [vmem:[%s9225_s9 + $0x240] ss:$8 sps:$4 sm:$0xff]  }
  0x15   : > { %1659 = vmatpush1.bf16.msra.mxu0 %v6999_v32  ;;  %2435 = vmatpush1.bf16.msra.mxu1 %v7000_v33  ;;  %v7015_v48 = vld [vmem:[%s9225_s9 + $0x254] ss:$8 sps:$4 sm:$0xff]   ;;  %v7017_v50 = vld [vmem:[%s9225_s9 + $0x150] ss:$8 sps:$4 sm:$0xff]   ;;  %v7019_v55 = vld [vmem:[%s9225_s9 + $0x164] ss:$8 sps:$4 sm:$0xff]  }
  0x16   : > { %931 = vperm.xlu1 %6982, %v914_v30   ;;  %928 = vperm.xlu0 %6981, %v910_v31   ;;  %v991_v49 = vld [vmem:[#allocation2 + $0x18] sm:$0x11]  ;;  %v988_v53 = vld [vmem:[#allocation2 + $0x10] sm:$0x11]  ;;  %v7021_v56 = vld [vmem:[%s9225_s9 + $0x264] ss:$8 sps:$4 sm:$0xff]  }
  0x17   : > { %1660 = vmatprep.subr.bf16.mxu0 %v7001_v34  ;;  %2436 = vmatprep.subr.bf16.mxu1 %v7003_v35  ;;  %v7018_v51 = vld [vmem:[%s9225_s9 + $0x250] ss:$8 sps:$4 sm:$0xff]   ;;  %v992_v52 = vsel %vm7675_vm12, 0, %v991_v49  ;;  %v989_v54 = vsel %vm7675_vm12, 0, %v988_v53  ;;  %v7023_v57 = vld [vmem:[%s9225_s9 + $0x160] ss:$8 sps:$4 sm:$0xff]  }
  0x18   : > { %993 = vst [vmem:[#allocation2 + $0x18] sm:$0x11] %v992_v52  ;;  %990 = vst [vmem:[#allocation2 + $0x10] sm:$0x11] %v989_v54  ;;  %v7024_v58 = vld [vmem:[%s9225_s9 + $0x260] ss:$8 sps:$4 sm:$0xff]  }
  0x19   : > { %1661 = vmatpush1.bf16.msra.mxu0 %v7005_v36  ;;  %2437 = vmatpush1.bf16.msra.mxu1 %v7006_v37  ;;  %v997_v59 = vld [vmem:[#allocation2 + $0x28] sm:$0x11]  ;;  %v994_v61 = vld [vmem:[#allocation2 + $0x20] sm:$0x11]  ;;  %v7025_v63 = vld [vmem:[%s9225_s9 + $0x174] ss:$8 sps:$4 sm:$0xff]  }
  0x1a   : > { %1662 = vmatprep.subr.bf16.mxu0 %v7007_v38  ;;  %2438 = vmatprep.subr.bf16.mxu1 %v7009_v41  ;;  %v998_v60 = vsel %vm7675_vm12, 0, %v997_v59  ;;  %v995_v62 = vsel %vm7675_vm12, 0, %v994_v61  ;;  %v7027_v0 = vld [vmem:[%s9225_s9 + $0x274] ss:$8 sps:$4 sm:$0xff]   ;;  %v7029_v1 = vld [vmem:[%s9225_s9 + $0x170] ss:$8 sps:$4 sm:$0xff]  }
  0x1b   : > { %999 = vst [vmem:[#allocation2 + $0x28] sm:$0x11] %v998_v60  ;;  %996 = vst [vmem:[#allocation2 + $0x20] sm:$0x11] %v995_v62  ;;  %v7030_v3 = vld [vmem:[%s9225_s9 + $0x270] ss:$8 sps:$4 sm:$0xff]  }
  0x1c   : > { %v7031_v4 = vld [vmem:[%s9225_s9 + $0x184] ss:$8 sps:$4 sm:$0xff]   ;;  %v7035_v7 = vld [vmem:[%s9225_s9 + $0x180] ss:$8 sps:$4 sm:$0xff]   ;;  %v7037_v9 = vld [vmem:[%s9225_s9 + $0x194] ss:$8 sps:$4 sm:$0xff]  }
  0x1d   : > { %1663 = vmatpush1.bf16.msra.mxu0 %v7011_v45  ;;  %2439 = vmatpush1.bf16.msra.mxu1 %v7012_v46  ;;  %v7033_v6 = vld [vmem:[%s9225_s9 + $0x284] ss:$8 sps:$4 sm:$0xff]   ;;  %v7036_v8 = vld [vmem:[%s9225_s9 + $0x280] ss:$8 sps:$4 sm:$0xff]   ;;  %v7039_v11 = vld [vmem:[%s9225_s9 + $0x294] ss:$8 sps:$4 sm:$0xff]  }
  0x1e   : > { %1664 = vmatprep.subr.bf16.mxu0 %v7013_v47  ;;  %2440 = vmatprep.subr.bf16.mxu1 %v7015_v48  ;;  %v7041_v12 = vld [vmem:[%s9225_s9 + $0x190] ss:$8 sps:$4 sm:$0xff]   ;;  %v7043_v14 = vld [vmem:[%s9225_s9 + $0x1a4] ss:$8 sps:$4 sm:$0xff]   ;;  %v7047_v16 = vld [vmem:[%s9225_s9 + $0x1a0] ss:$8 sps:$4 sm:$0xff]  }
  0x1f   : > { %v7042_v13 = vld [vmem:[%s9225_s9 + $0x290] ss:$8 sps:$4 sm:$0xff]   ;;  %v7045_v15 = vld [vmem:[%s9225_s9 + $0x2a4] ss:$8 sps:$4 sm:$0xff]   ;;  %v7048_v17 = vld [vmem:[%s9225_s9 + $0x2a0] ss:$8 sps:$4 sm:$0xff]  }
  0x20   : > { %v7049_v18 = vld [vmem:[%s9225_s9 + $0x1b4] ss:$8 sps:$4 sm:$0xff]   ;;  %v7053_v20 = vld [vmem:[%s9225_s9 + $0x1b0] ss:$8 sps:$4 sm:$0xff]   ;;  %v7055_v22 = vld [vmem:[%s9225_s9 + $0x1c4] ss:$8 sps:$4 sm:$0xff]  }
  0x21   : > { %1665 = vmatpush1.bf16.msra.mxu0 %v7017_v50  ;;  %2441 = vmatpush1.bf16.msra.mxu1 %v7018_v51  ;;  %v7051_v19 = vld [vmem:[%s9225_s9 + $0x2b4] ss:$8 sps:$4 sm:$0xff]   ;;  %v7054_v21 = vld [vmem:[%s9225_s9 + $0x2b0] ss:$8 sps:$4 sm:$0xff]   ;;  %v7057_v23 = vld [vmem:[%s9225_s9 + $0x2c4] ss:$8 sps:$4 sm:$0xff]  }
  0x22   : > { %1666 = vmatprep.subr.bf16.mxu0 %v7019_v55  ;;  %2442 = vmatprep.subr.bf16.mxu1 %v7021_v56  ;;  %v7059_v24 = vld [vmem:[%s9225_s9 + $0x1c0] ss:$8 sps:$4 sm:$0xff]   ;;  %v7061_v26 = vld [vmem:[%s9225_s9 + $0x1d4] ss:$8 sps:$4 sm:$0xff]   ;;  %v7065_v28 = vld [vmem:[%s9225_s9 + $0x1d0] ss:$8 sps:$4 sm:$0xff]  }
  0x23   : > { %v7060_v25 = vld [vmem:[%s9225_s9 + $0x2c0] ss:$8 sps:$4 sm:$0xff]   ;;  %v7063_v27 = vld [vmem:[%s9225_s9 + $0x2d4] ss:$8 sps:$4 sm:$0xff]   ;;  %v7066_v29 = vld [vmem:[%s9225_s9 + $0x2d0] ss:$8 sps:$4 sm:$0xff]  }
  0x24   : > { %v7067_v30 = vld [vmem:[%s9225_s9 + $0x1e4] ss:$8 sps:$4 sm:$0xff]   ;;  %vm1004_vm15 = vsmask.f32 6400  ;;  %v7071_v32 = vld [vmem:[%s9225_s9 + $0x1e0] ss:$8 sps:$4 sm:$0xff]  }
  0x25   : > { %1667 = vmatpush1.bf16.msra.mxu0 %v7023_v57  ;;  %2443 = vmatpush1.bf16.msra.mxu1 %v7024_v58  ;;  %v7069_v31 = vld [vmem:[%s9225_s9 + $0x2e4] ss:$8 sps:$4 sm:$0xff]   ;;  %v7072_v33 = vld [vmem:[%s9225_s9 + $0x2e0] ss:$8 sps:$4 sm:$0xff]   ;;  %v7073_v34 = vld [vmem:[%s9225_s9 + $0x1f4] ss:$8 sps:$4 sm:$0xff]  }
  0x26   : > { %1668 = vmatprep.subr.bf16.mxu0 %v7025_v63  ;;  %2444 = vmatprep.subr.bf16.mxu1 %v7027_v0  ;;  %v7075_v35 = vld [vmem:[%s9225_s9 + $0x2f4] ss:$8 sps:$4 sm:$0xff]   ;;  %v1007_v36 = vld [vmem:[#allocation2] sm:$0x44]  ;;  %v1010_v37 = vld [vmem:[#allocation2 + $0x8] sm:$0x44] }
  0x27   : > { %vm1005_vm2 = vmand %vm1003_vm0, %vm1004_vm15  ;;  %v1013_v38 = vld [vmem:[#allocation2 + $0x10] sm:$0x44]  ;;  %v1016_v39 = vld [vmem:[#allocation2 + $0x18] sm:$0x44]  ;;  %p738_p4 = scmp.lt.s32.totalorder %s7477_s25, 1  ;;  %vm1121_vm11 = vcmask 1041408  }
  0x28   : > { %v7077_v40 = vld [vmem:[%s9225_s9 + $0x1f0] ss:$8 sps:$4 sm:$0xff]   ;;  %vm7827_vm3 = vmor %vm1005_vm2, %vm1002_vm1  ;;  %v7081_v43 = vld [vmem:[%s9225_s9 + $0x4] ss:$8 sps:$4 sm:$0xff]   ;;  %v7488_v51 = vmov 1983009808  }
  0x29   : > { %1669 = vmatpush1.bf16.msra.mxu0 %v7029_v1  ;;  %2445 = vmatpush1.bf16.msra.mxu1 %v7030_v3  ;;  %v7078_v42 = vld [vmem:[%s9225_s9 + $0x2f0] ss:$8 sps:$4 sm:$0xff]   ;;  %v1008_v44 = vsel %vm7827_vm3, 0, %v1007_v36  ;;  %v1011_v45 = vsel %vm7827_vm3, 0, %v1010_v37  ;;  %v1014_v46 = vsel %vm7827_vm3, 0, %v1013_v38  ;;  %v1017_v47 = vsel %vm7827_vm3, 0, %v1016_v39 }
  0x2a   : > { %1670 = vmatprep.subr.bf16.mxu0 %v7031_v4  ;;  %2446 = vmatprep.subr.bf16.mxu1 %v7033_v6  ;;  %1009 = vst [vmem:[#allocation2] sm:$0x44] %v1008_v44  ;;  %1012 = vst [vmem:[#allocation2 + $0x8] sm:$0x44] %v1011_v45  ;;  %v7084_v48 = vld [vmem:[%s9225_s9 + $0x304] ss:$8 sps:$4 sm:$0xff]   ;;  %v1032_v52 = vunpack.c.l.s4 %v7488_v51 }
  0x2b   : > { %1015 = vst [vmem:[#allocation2 + $0x10] sm:$0x44] %v1014_v46  ;;  %1018 = vst [vmem:[#allocation2 + $0x18] sm:$0x44] %v1017_v47  ;;  %v1019_v49 = vld [vmem:[#allocation2 + $0x20] sm:$0x44] }
  0x2c   : > { %v1020_v50 = vsel %vm7827_vm3, 0, %v1019_v49  ;;  %s9245_s25 = smov (!%p738_p4, %s7477_s25), 1  ;;  %v1033_v53 = vunpack.c.0.s8 %v1032_v52  ;;  %v7489_v54 = vmov 1966171168   ;;  %vm1122_vm6 = vsmask.f32 7938 }
  0x2d   : > { %1671 = vmatpush1.bf16.msra.mxu0 %v7035_v7  ;;  %2447 = vmatpush1.bf16.msra.mxu1 %v7036_v8  ;;  %1021 = vst [vmem:[#allocation2 + $0x20] sm:$0x44] %v1020_v50  ;;  %s7855_s30 = sshll.u32 %s9245_s25, 3  ;;  %v1338_v55 = vunpack.c.l.s4 %v7489_v54  ;;  %v1124_v36 = vld [vmem:[#allocation2] sm:$0x3]  ;;  %vm7899_vm12 = vmand %vm1121_vm11, %vm1122_vm6 }
  0x2e   : > { %1672 = vmatprep.subr.bf16.mxu0 %v7037_v9  ;;  %2448 = vmatprep.subr.bf16.mxu1 %v7039_v11  ;;  %s7861_s16 = scalar_lea.vmem %s9216_s0, %s7855_s30  ;;  %s7867_s19 = scalar_lea.vmem %s9219_s3, %s7855_s30  ;;  %v7882_v62 = vsub.s32 %v1033_v53, %v7589_v5  ;;  %v1238_v37 = vld [vmem:[#allocation2 + $0x4] sm:$0x3] }
  0x2f   : > { %s758_s22 = scalar_lea.vmem %s9217_s1, %s7855_s30  ;;  %s800_s29 = scalar_lea.vmem %s9220_s4, %s7855_s30  ;;  %v880_v58 = vld [vmem:[%s7861_s16] sm:$0x3]  ;;  %v1339_v4 = vunpack.c.0.s8 %v1338_v55  ;;  %v881_v39 = vld [vmem:[%s7861_s16 + $0x2] sm:$0x3] }
  0x30   : > { %v964_v60 = vld [vmem:[%s7867_s19] sm:$0x3]  ;;  %s6939_s14 = sadd.s32 6, %s7855_s30  ;;  %v965_v45 = vld [vmem:[%s7867_s19 + $0x2] sm:$0x3] }
  0x31   : > { %1673 = vmatpush1.bf16.msra.mxu0 %v7041_v12  ;;  %2449 = vmatpush1.bf16.msra.mxu1 %v7042_v13  ;;  %v879_v0 = vld [vmem:[%s758_s22] sm:$0x3]  ;;  %s774_s17 = scalar_lea.vmem %s9218_s2, %s6939_s14  ;;  %s816_s21 = scalar_lea.vmem %s9221_s5, %s6939_s14 }
  0x32   : > { %1674 = vmatprep.subr.bf16.mxu0 %v7043_v14  ;;  %2450 = vmatprep.subr.bf16.mxu1 %v7045_v15  ;;  %v963_v3 = vld [vmem:[%s800_s29] sm:$0x3]  ;;  %s9149_s14 = sshll.u32 %s9245_s25, 4 }
  0x33   : > { %s9183_s24 = scalar_lea.vmem %s9229_s13, %s9149_s14 }
  0x35   : > { %1675 = vmatpush1.bf16.msra.mxu0 %v7047_v16  ;;  %2451 = vmatpush1.bf16.msra.mxu1 %v7048_v17  ;;  %v7889_v17 = vsub.s32 %v1339_v4, %v7589_v5  ;;  %v1133_v4 = vld [vmem:[#allocation2 + $0x18] sm:$0x3] }
  0x36   : > { %1676 = vmatprep.subr.bf16.mxu0 %v7049_v18  ;;  %2452 = vmatprep.subr.bf16.mxu1 %v7051_v19 }
  0x39   : > { %1677 = vmatpush1.bf16.msra.mxu0 %v7053_v20  ;;  %2453 = vmatpush1.bf16.msra.mxu1 %v7054_v21 }
  0x3a   : > { %1678 = vmatprep.subr.bf16.mxu0 %v7055_v22  ;;  %2454 = vmatprep.subr.bf16.mxu1 %v7057_v23 }
  0x3d   : > { %1679 = vmatpush1.bf16.msra.mxu0 %v7059_v24  ;;  %2455 = vmatpush1.bf16.msra.mxu1 %v7060_v25  ;;  %v882_v24 = vld [vmem:[%s7861_s16 + $0x4] sm:$0x3] }
  0x3e   : > { %1680 = vmatprep.subr.bf16.mxu0 %v7061_v26  ;;  %2456 = vmatprep.subr.bf16.mxu1 %v7063_v27  ;;  %v966_v25 = vld [vmem:[%s7867_s19 + $0x4] sm:$0x3] }
  0x41   : > { %1681 = vmatpush1.bf16.msra.mxu0 %v7065_v28  ;;  %2457 = vmatpush1.bf16.msra.mxu1 %v7066_v29  ;;  %v1127_v28 = vld [vmem:[#allocation2 + $0x8] sm:$0x3]  ;;  %v1241_v29 = vld [vmem:[#allocation2 + $0xc] sm:$0x3] }
  0x42   : > { %1682 = vmatprep.subr.bf16.mxu0 %v7067_v30  ;;  %2458 = vmatprep.subr.bf16.mxu1 %v7069_v31 }
  0x45   : > { %1683 = vmatpush1.bf16.msra.mxu0 %v7071_v32  ;;  %2459 = vmatpush1.bf16.msra.mxu1 %v7072_v33 }
  0x46   : > { %1684 = vmatprep.subr.bf16.mxu0 %v7073_v34  ;;  %2460 = vmatprep.subr.bf16.mxu1 %v7075_v35 }
  0x49   : > { %1685 = vmatpush1.bf16.msra.mxu0 %v7077_v40  ;;  %2461 = vmatpush1.bf16.msra.mxu1 %v7078_v42 }
  0x4a   : > { %1926 = vmatprep.subr.bf16.mxu0 %v7081_v43  ;;  %2943 = vmatprep.subr.bf16.mxu1 %v7084_v48 }
  0x8d   : > { %v920_v56 = vpop.permute.xlu1 %919  ;;  %v917_v57 = vpop.permute.xlu0 %916 }
  0x8e   : > { %vm934_vm4 = vcmp.eq.s32.totalorder %v920_v56, 1  ;;  %vm933_vm5 = vcmp.eq.s32.totalorder %v917_v57, 1 }
  0x8f   : > { %v940_v59 = vsel %vm934_vm4, 1, %v7487_v2  ;;  %v939_v61 = vsel %vm933_vm5, 1, %v7487_v2 }
  0x90   : > { %v946_v63 = vpack.c.b16 %v940_v59, %v940_v59  ;;  %v945_v1 = vpack.c.b16 %v939_v61, %v939_v61 }
  0x91   : > { %v926_v6 = vpop.permute.xlu1 %925  ;;  %v923_v7 = vpop.permute.xlu0 %922 }
  0x92   : > { %vm952_vm7 = vcmp.ne.s16.totalorder %v946_v63, 0  ;;  %vm951_vm8 = vcmp.ne.s16.totalorder %v945_v1, 0  ;;  %vm936_vm9 = vcmp.eq.s32.totalorder %v926_v6, 1  ;;  %vm935_vm10 = vcmp.eq.s32.totalorder %v923_v7, 1 }
  0x93   : > { %v958_v8 = vsel %vm952_vm7, %v880_v58, 0  ;;  %v970_v9 = vsel %vm952_vm7, %v964_v60, 0  ;;  %v957_v11 = vsel %vm951_vm8, %v879_v0, 0  ;;  %v969_v12 = vsel %vm951_vm8, %v963_v3, 0  ;;  %v884_v3 = vld [vmem:[%s774_s17] sm:$0x3]  ;;  %s9155_s17 = scalar_lea.vmem %s9222_s6, %s9149_s14 }
  0x94   : > { %v1044_v13 = vrot.slane %v958_v8, %v7882_v62  ;;  %v1161_v14 = vrot.slane %v970_v9, %v7882_v62  ;;  %v1037_v15 = vrot.slane %v957_v11, %v7882_v62  ;;  %v1154_v16 = vrot.slane %v969_v12, %v7882_v62  ;;  %v968_v9 = vld [vmem:[%s816_s21] sm:$0x3]  ;;  %v1247_v12 = vld [vmem:[#allocation2 + $0x1c] sm:$0x3]  ;;  %s9161_s21 = scalar_lea.vmem %s9223_s7, %s9149_s14 }
  0x95   : > { %v942_v18 = vsel %vm936_vm9, 1, %v7487_v2  ;;  %v941_v19 = vsel %vm935_vm10, 1, %v7487_v2  ;;  %v932_v26 = vpop.permute.xlu1 %931  ;;  %v929_v27 = vpop.permute.xlu0 %928 }
  0x96   : > { %v1081_v20 = vshrl.u32 %v1044_v13, 16  ;;  %v1084_v21 = vshll.u32 %v1044_v13, 16  ;;  %v1198_v22 = vshrl.u32 %v1161_v14, 16  ;;  %v1201_v23 = vshll.u32 %v1161_v14, 16 }
  0x97   : > { %v1074_v30 = vshrl.u32 %v1037_v15, 16  ;;  %v1077_v31 = vshll.u32 %v1037_v15, 16  ;;  %v1191_v32 = vshrl.u32 %v1154_v16, 16  ;;  %v1194_v33 = vshll.u32 %v1154_v16, 16  ;;  %v883_v16 = vld [vmem:[%s7861_s16 + $0x6] sm:$0x3] }
  0x98   : > { %v1083_v34 = vrot.slane %v1081_v20, 7  ;;  %v1200_v35 = vrot.slane %v1198_v22, 7  ;;  %v948_v38 = vpack.c.b16 %v942_v18, %v942_v18  ;;  %v947_v40 = vpack.c.b16 %v941_v19, %v941_v19  ;;  %v967_v19 = vld [vmem:[%s7867_s19 + $0x6] sm:$0x3]  ;;  %s9177_s19 = scalar_lea.vmem %s9228_s12, %s9149_s14 }
  0x99   : > { %v1076_v43 = vrot.slane %v1074_v30, 7  ;;  %v1193_v44 = vrot.slane %v1191_v32, 7  ;;  %vm938_vm13 = vcmp.eq.s32.totalorder %v932_v26, 1  ;;  %vm937_vm14 = vcmp.eq.s32.totalorder %v929_v27, 1  ;;  %v1130_v32 = vld [vmem:[#allocation2 + $0x10] sm:$0x3] }
  0x9a   : > { %v1086_v46 = vor.u32 %v1084_v21, %v1083_v34  ;;  %v1203_v47 = vor.u32 %v1201_v23, %v1200_v35  ;;  %vm954_vm15 = vcmp.ne.s16.totalorder %v948_v38, 0  ;;  %vm7904_vm0 = vcmp.ne.s16.totalorder %v947_v40, 0 }
  0x9b   : > { %v1079_v49 = vor.u32 %v1077_v31, %v1076_v43  ;;  %v1196_v50 = vor.u32 %v1194_v33, %v1193_v44  ;;  %v960_v51 = vsel %vm954_vm15, %v882_v24, 0  ;;  %v972_v52 = vsel %vm954_vm15, %v966_v25, 0  ;;  %v1244_v33 = vld [vmem:[#allocation2 + $0x14] sm:$0x3] }
  0x9c   : > { %v1128_v53 = vsel %vm7899_vm12, %v1086_v46, %v1127_v28  ;;  %v1242_v54 = vsel %vm7899_vm12, %v1203_v47, %v1241_v29  ;;  %v1058_v55 = vrot.slane %v960_v51, %v7882_v62  ;;  %v1175_v56 = vrot.slane %v972_v52, %v7882_v62  ;;  %v1139_v52 = vld [vmem:[#allocation2 + $0x28] sm:$0x3] }
  0x9d   : > { %1129 = vst [vmem:[#allocation2 + $0x8] sm:$0x3] %v1128_v53  ;;  %1243 = vst [vmem:[#allocation2 + $0xc] sm:$0x3] %v1242_v54  ;;  %v1125_v57 = vsel %vm7899_vm12, %v1079_v49, %v1124_v36  ;;  %v1239_v58 = vsel %vm7899_vm12, %v1196_v50, %v1238_v37  ;;  %v959_v59 = vsel %vm7904_vm0, %v881_v39, 0  ;;  %v971_v60 = vsel %vm7904_vm0, %v965_v45, 0 }
  0x9e   : > { %1126 = vst [vmem:[#allocation2] sm:$0x3] %v1125_v57  ;;  %1240 = vst [vmem:[#allocation2 + $0x4] sm:$0x3] %v1239_v58  ;;  %v1095_v61 = vshrl.u32 %v1058_v55, 16  ;;  %v1098_v63 = vshll.u32 %v1058_v55, 16  ;;  %v1051_v6 = vrot.slane %v959_v59, %v7882_v62  ;;  %v1168_v7 = vrot.slane %v971_v60, %v7882_v62 }
  0x9f   : > { %v1212_v0 = vshrl.u32 %v1175_v56, 16  ;;  %v1215_v1 = vshll.u32 %v1175_v56, 16  ;;  %v944_v8 = vsel %vm938_vm13, 1, %v7487_v2  ;;  %v943_v11 = vsel %vm937_vm14, 1, %v7487_v2  ;;  %v1253_v57 = vld [vmem:[#allocation2 + $0x2c] sm:$0x3] }
  0xa0   : > { %v1097_v13 = vrot.slane %v1095_v61, 7  ;;  %v950_v15 = vpack.c.b16 %v944_v8, %v944_v8  ;;  %v949_v18 = vpack.c.b16 %v943_v11, %v943_v11  ;;  %v1088_v20 = vshrl.u32 %v1051_v6, 16 }
  0xa1   : > { %v1214_v14 = vrot.slane %v1212_v0, 7  ;;  %v1091_v21 = vshll.u32 %v1051_v6, 16  ;;  %v1205_v22 = vshrl.u32 %v1168_v7, 16  ;;  %v1208_v23 = vshll.u32 %v1168_v7, 16 }
  0xa2   : > { %v1100_v24 = vor.u32 %v1098_v63, %v1097_v13  ;;  %vm956_vm1 = vcmp.ne.s16.totalorder %v950_v15, 0  ;;  %vm7936_vm2 = vcmp.ne.s16.totalorder %v949_v18, 0  ;;  %v1090_v27 = vrot.slane %v1088_v20, 7  ;;  %v1250_v13 = vld [vmem:[#allocation2 + $0x24] sm:$0x3] }
  0xa3   : > { %v1217_v25 = vor.u32 %v1215_v1, %v1214_v14  ;;  %v1207_v2 = vrot.slane %v1205_v22, 7  ;;  %v962_v28 = vsel %vm956_vm1, %v884_v3, 0  ;;  %v974_v29 = vsel %vm956_vm1, %v968_v9, 0  ;;  %v1136_v1 = vld [vmem:[#allocation2 + $0x20] sm:$0x3] }
  0xa4   : > { %v1134_v30 = vsel %vm7899_vm12, %v1100_v24, %v1133_v4  ;;  %v1072_v34 = vrot.slane %v962_v28, %v7882_v62  ;;  %v1189_v35 = vrot.slane %v974_v29, %v7882_v62  ;;  %v1093_v36 = vor.u32 %v1091_v21, %v1090_v27  ;;  %v6349_v51 = vld.sshfl [vmem:[#allocation2 + $0x8] sm:$0x55 pattern:$0x75316420] }
  0xa5   : > { %v1248_v31 = vsel %vm7899_vm12, %v1217_v25, %v1247_v12  ;;  %1135 = vst [vmem:[#allocation2 + $0x18] sm:$0x3] %v1134_v30  ;;  %v1210_v37 = vor.u32 %v1208_v23, %v1207_v2  ;;  %v961_v38 = vsel %vm7936_vm2, %v883_v16, 0  ;;  %v973_v39 = vsel %vm7936_vm2, %v967_v19, 0 }
  0xa6   : > { %1249 = vst [vmem:[#allocation2 + $0x1c] sm:$0x3] %v1248_v31  ;;  %v6348_v40 = vld.sshfl [vmem:[#allocation2] sm:$0x55 pattern:$0x75316420]  ;;  %v1131_v47 = vsel %vm7899_vm12, %v1093_v36, %v1130_v32  ;;  %v1065_v49 = vrot.slane %v961_v38, %v7882_v62  ;;  %v1182_v50 = vrot.slane %v973_v39, %v7882_v62  ;;  %v1358_v3 = vcombine.high %v6349_v51, %v6349_v51 }
  0xa7   : > { %v1109_v43 = vshrl.u32 %v1072_v34, 16  ;;  %v1112_v44 = vshll.u32 %v1072_v34, 16  ;;  %v1226_v45 = vshrl.u32 %v1189_v35, 16  ;;  %v1229_v46 = vshll.u32 %v1189_v35, 16  ;;  %1132 = vst [vmem:[#allocation2 + $0x10] sm:$0x3] %v1131_v47 }
  0xa8   : > { %v1245_v48 = vsel %vm7899_vm12, %v1210_v37, %v1244_v33  ;;  %v1336_v55 = vcombine.high %v6348_v40, %v6348_v40  ;;  %v7957_v56 = vrot.slane %v6348_v40, %v7889_v17  ;;  %v1102_v58 = vshrl.u32 %v1065_v49, 16  ;;  %v6454_v9 = vld.sshfl [vmem:[#allocation2] sm:$0x5a pattern:$0x75316420] }
  0xa9   : > { %1246 = vst [vmem:[#allocation2 + $0x14] sm:$0x3] %v1245_v48  ;;  %v1111_v53 = vrot.slane %v1109_v43, 7  ;;  %v1228_v54 = vrot.slane %v1226_v45, 7  ;;  %v1105_v59 = vshll.u32 %v1065_v49, 16  ;;  %v1219_v60 = vshrl.u32 %v1182_v50, 16 }
  0xaa   : > { %v1222_v61 = vshll.u32 %v1182_v50, 16  ;;  %v7960_v62 = vrot.slane %v1336_v55, %v7889_v17  ;;  %v1104_v4 = vrot.slane %v1102_v58, 7  ;;  %v7963_v7 = vrot.slane %v6349_v51, %v7889_v17  ;;  %v6455_v22 = vld.sshfl [vmem:[#allocation2 + $0x8] sm:$0x5a pattern:$0x75316420] }
  0xab   : > { %v1114_v63 = vor.u32 %v1112_v44, %v1111_v53  ;;  %v1231_v0 = vor.u32 %v1229_v46, %v1228_v54  ;;  %v1221_v6 = vrot.slane %v1219_v60, 7  ;;  %v1417_v8 = vunpack.i.h.s16 %v7957_v56 }
  0xac   : > { %v7971_v15 = vrot.slane %v1358_v3, %v7889_v17  ;;  %v1419_v16 = vunpack.i.h.s16 %v7960_v62  ;;  %v1107_v18 = vor.u32 %v1105_v59, %v1104_v4  ;;  %v1420_v23 = vunpack.i.h.s16 %v7963_v7 }
  0xad   : > { %v1140_v11 = vsel %vm7899_vm12, %v1114_v63, %v1139_v52  ;;  %v1254_v12 = vsel %vm7899_vm12, %v1231_v0, %v1253_v57  ;;  %v6351_v14 = vld.sshfl [vmem:[#allocation2 + $0x18] sm:$0x55 pattern:$0x75316420]  ;;  %v1224_v19 = vor.u32 %v1222_v61, %v1221_v6  ;;  %v6352_v24 = vpack.i.b16 %v7960_v62, %v1417_v8 }
  0xae   : > { %1141 = vst [vmem:[#allocation2 + $0x28] sm:$0x3] %v1140_v11  ;;  %1255 = vst [vmem:[#allocation2 + $0x2c] sm:$0x3] %v1254_v12  ;;  %v1402_v20 = vcombine.high %v6351_v14, %v6351_v14  ;;  %v7975_v21 = vrot.slane %v6351_v14, %v7889_v17  ;;  %v2108_v26 = vcombine.high %v6454_v9, %v6454_v9 }
  0xaf   : > { %v6457_v25 = vld.sshfl [vmem:[#allocation2 + $0x18] sm:$0x5a pattern:$0x75316420]  ;;  %v2115_v27 = vrot.slane %v6454_v9, %v7889_v17  ;;  %v1137_v2 = vsel %vm7899_vm12, %v1107_v18, %v1136_v1  ;;  %v1251_v28 = vsel %vm7899_vm12, %v1224_v19, %v1250_v13  ;;  %v1430_v34 = vpack.i.b16 %v1420_v23, %v1419_v16 }
  0xb0   : > { %v6350_v29 = vld.sshfl [vmem:[#allocation2 + $0x10] sm:$0x55 pattern:$0x75316420]  ;;  %v7985_v30 = vrot.slane %v1402_v20, %v7889_v17  ;;  %v1426_v31 = vunpack.i.h.s16 %v7975_v21  ;;  %1138 = vst [vmem:[#allocation2 + $0x20] sm:$0x3] %v1137_v2  ;;  %v7992_v35 = vpack.i.b16 %v7971_v15, %v1420_v23  ;;  %v2122_v37 = vrot.slane %v2108_v26, %v7889_v17 }
  0xb1   : > { %1252 = vst [vmem:[#allocation2 + $0x24] sm:$0x3] %v1251_v28  ;;  %v1380_v32 = vcombine.high %v6350_v29, %v6350_v29  ;;  %v7989_v33 = vrot.slane %v6350_v29, %v7889_v17  ;;  %v6456_v36 = vld.sshfl [vmem:[#allocation2 + $0x10] sm:$0x5a pattern:$0x75316420]  ;;  %v2123_v38 = vcombine.high %v2115_v27, %v2115_v27  ;;  %v2131_v39 = vcombine.high %v6455_v22, %v6455_v22 }
  0xb2   : > { %v7995_v42 = vpack.i.b16 %v7985_v30, %v1426_v31  ;;  %v1435_v44 = vcombine.low %v6352_v24, %v1430_v34  ;;  %v2138_v45 = vrot.slane %v6455_v22, %v7889_v17  ;;  %v2154_v47 = vcombine.high %v6456_v36, %v6456_v36 }
  0xb3   : > { %v7999_v40 = vrot.slane %v1380_v32, %v7889_v17  ;;  %v1423_v43 = vunpack.i.h.s16 %v7989_v33  ;;  %v8004_v46 = vrot.slane %v2131_v39, %v7889_v17  ;;  %v2161_v48 = vrot.slane %v6456_v36, %v7889_v17 }
  0xb4   : > { %v2177_v49 = vcombine.high %v6457_v25, %v6457_v25  ;;  %v1444_v52 = vrot.slane %v1435_v44, %v7889_v17  ;;  %v8014_v53 = vcombine.high %v2138_v45, %v2138_v45  ;;  %v8017_v54 = vrot.slane %v2154_v47, %v7889_v17 }
  0xb5   : > { %v1425_v50 = vunpack.i.h.s16 %v7999_v40  ;;  %v8011_v51 = vpack.i.b16 %v7999_v40, %v1423_v43  ;;  %v8019_v55 = vcombine.high %v2161_v48, %v2161_v48  ;;  %v2184_v57 = vrot.slane %v6457_v25, %v7889_v17 }
  0xb6   : > { %v8023_v58 = vrot.slane %v2177_v49, %v7889_v17  ;;  %v2197_v61 = vunpack.i.h.s16 %v8004_v46  ;;  %v6458_v63 = vpack.i.b16 %v8004_v46, %v2123_v38  ;;  %v6386_v4 = vpack.i.b16 %v7963_v7, %v7960_v62  ;;  %v7079_v49 = vld [vmem:[%s9225_s9] ss:$8 sps:$4 sm:$0xff]  }
  0xb7   : > { %v1433_v59 = vpack.i.b16 %v1426_v31, %v1425_v50  ;;  %v1436_v60 = vcombine.low %v7971_v15, %v8011_v51  ;;  %v8029_v0 = vcombine.high %v2184_v57, %v2184_v57  ;;  %v6388_v13 = vpack.i.b16 %v7975_v21, %v7999_v40 }
  0xb8   : > { %v2203_v1 = vunpack.i.h.s16 %v8023_v58  ;;  %v6460_v3 = vpack.i.b16 %v8023_v58, %v8019_v55  ;;  %v6459_v9 = vpack.i.b16 %v8014_v53, %v2197_v61  ;;  %v2211_v11 = vcombine.low %v2122_v37, %v6458_v63  ;;  %v6529_v26 = vld.sshfl [vmem:[#allocation2 + $0x20] sm:$0x55 pattern:$0x75316420] }
  0xb9   : > { %v1437_v6 = vcombine.low %v1433_v59, %v7985_v30  ;;  %v1451_v8 = vrot.slane %v1436_v60, %v7889_v17  ;;  %v1707_v14 = vcombine.low %v7957_v56, %v6386_v4  ;;  %v1708_v16 = vcombine.low %v7992_v35, %v7989_v33  ;;  %v7082_v60 = vld [vmem:[%s9225_s9 + $0x300] ss:$8 sps:$4 sm:$0xff]  }
  0xba   : > { %v6461_v12 = vpack.i.b16 %v8029_v0, %v2203_v1  ;;  %v2212_v19 = vcombine.low %v6459_v9, %v8017_v54  ;;  %v2220_v20 = vrot.slane %v2211_v11, %v7889_v17  ;;  %v1709_v24 = vcombine.low %v6388_v13, %v7995_v42  ;;  %v7085_v11 = vld [vmem:[%s9225_s9 + $0x10] ss:$8 sps:$4 sm:$0xff]   ;;  %v6671_v13 = vld.sshfl [vmem:[#allocation2 + $0x20] sm:$0x5a pattern:$0x75316420] }
  0xbb   : > { %v1458_v18 = vrot.slane %v1437_v6, %v7889_v17  ;;  %v1460_v62 = vcombine.high %v1444_v52, %v1451_v8  ;;  %v1459_v23 = vcombine.low %v1444_v52, %v1451_v8  ;;  %v8050_v25 = vrot.slane %v1707_v14, %v7889_v17 }
  0xbc   : > { %v2213_v22 = vcombine.low %v6460_v3, %v6461_v12  ;;  %v2227_v2 = vrot.slane %v2212_v19, %v7889_v17  ;;  %v8058_v32 = vrot.slane %v1708_v16, %v7889_v17  ;;  %v8061_v34 = vrot.slane %v1709_v24, %v7889_v17  ;;  %v7087_v3 = vld [vmem:[%s9225_s9 + $0x14] ss:$8 sps:$4 sm:$0xff]  }
  0xbd   : > { %v1461_v27 = vcombine.high %v1458_v18, %v1458_v18  ;;  %v1475_v56 = vrot.slane %v1460_v62, %v7889_v17  ;;  %v1482_v28 = vrot.slane %v1458_v18, %v7889_v17  ;;  %v1468_v31 = vrot.slane %v1459_v23, %v7889_v17  ;;  %v7090_v12 = vld [vmem:[%s9225_s9 + $0x314] ss:$8 sps:$4 sm:$0xff]   ;;  %v7093_v18 = vld [vmem:[%s9225_s9 + $0x24] ss:$8 sps:$4 sm:$0xff]  }
  0xbe   : > { %v2234_v29 = vrot.slane %v2213_v22, %v7889_v17  ;;  %v2236_v37 = vcombine.high %v2220_v20, %v2227_v2  ;;  %v2235_v38 = vcombine.low %v2220_v20, %v2227_v2  ;;  %v2691_v39 = vcombine.high %v6529_v26, %v6529_v26  ;;  %v1022_v62 = vld [vmem:[#allocation2 + $0x28] sm:$0x44] }
  0xbf   : > { %v1489_v36 = vrot.slane %v1461_v27, %v7889_v17  ;;  %v1490_v45 = vcombine.low %v1468_v31, %v1482_v28  ;;  %v1732_v47 = vcombine.high %v8050_v25, %v8058_v32  ;;  %v1733_v57 = vcombine.high %v8061_v34, %v8061_v34  ;;  %v7088_v28 = vld [vmem:[%s9225_s9 + $0x310] ss:$8 sps:$4 sm:$0xff]  }
  0xc0   : > { %v2237_v44 = vcombine.high %v2234_v29, %v2234_v29  ;;  %v2251_v50 = vrot.slane %v2236_v37, %v7889_v17  ;;  %v2258_v52 = vrot.slane %v2234_v29, %v7889_v17  ;;  %v2244_v61 = vrot.slane %v2235_v38, %v7889_v17  ;;  %v7094_v38 = vld [vmem:[%s9225_s9 + $0x320] ss:$8 sps:$4 sm:$0xff]  }
  0xc1   : > { %v1491_v48 = vcombine.low %v1475_v56, %v1489_v36  ;;  %v2698_v63 = vrot.slane %v6529_v26, %v7889_v17  ;;  %v2705_v1 = vrot.slane %v2691_v39, %v7889_v17  ;;  %v1747_v4 = vrot.slane %v1732_v47, %v7889_v17 }
  0xc2   : > { %v2265_v59 = vrot.slane %v2237_v44, %v7889_v17  ;;  %v1761_v6 = vrot.slane %v1733_v57, %v7889_v17  ;;  %v6530_v8 = vpack.i.b16 %v7989_v33, %v7971_v15  ;;  %v2725_v9 = vcombine.low %v8011_v51, %v7975_v21 }
  0xc3   : > { %1686 = vmatprep.mubr.bf16.mxu0 %v1491_v48  ;;  %v2716_v16 = vunpack.i.h.s16 %v2698_v63  ;;  %v2266_v19 = vcombine.low %v2244_v61, %v2258_v52  ;;  %v6532_v22 = vpack.i.b16 %v2698_v63, %v7985_v30  ;;  %v3220_v24 = vunpack.i.h.s16 %v7971_v15  ;;  %v7091_v15 = vld [vmem:[%s9225_s9 + $0x20] ss:$8 sps:$4 sm:$0xff]   ;;  %v6740_v61 = vld.sshfl [vmem:[#allocation2 + $0x10] sm:$0x55 pattern:$0x75316420] }
  0xc4   : > { %v2267_v14 = vcombine.low %v2251_v50, %v2265_v59  ;;  %1687 = vmatmul.mubr.bf16.vlgmr.msra.gmra.mrb[0].mxu0 %v1490_v45  ;;  %v1763_v21 = vcombine.low %v1747_v4, %v1761_v6  ;;  %v2724_v51 = vcombine.low %v7963_v7, %v6530_v8  ;;  %v8100_v20 = vrot.slane %v2725_v9, %v7889_v17  ;;  %v7105_v50 = vld [vmem:[%s9225_s9 + $0x44] ss:$8 sps:$4 sm:$0xff]  }
  0xc5   : > { %1927 = vmatpush1.bf16.msra.mxu0 %v7079_v49  ;;  %v6533_v23 = vpack.i.b16 %v2705_v1, %v2716_v16  ;;  %v3226_v26 = vunpack.i.h.s16 %v7985_v30  ;;  %v3237_v7 = vcombine.low %v7999_v40, %v7995_v42  ;;  %v3718_v56 = vcombine.high %v6671_v13, %v6671_v13  ;;  %v7096_v42 = vld [vmem:[%s9225_s9 + $0x324] ss:$8 sps:$4 sm:$0xff]   ;;  %v7099_v40 = vld [vmem:[%s9225_s9 + $0x34] ss:$8 sps:$4 sm:$0xff]   ;;  %v7097_v49 = vld [vmem:[%s9225_s9 + $0x30] ss:$8 sps:$4 sm:$0xff]  }
  0xc6   : > { %2462 = vmatprep.mubr.bf16.mxu1 %v2267_v14  ;;  %1928 = vmatprep.subr.bf16.mxu0 %v7087_v3  ;;  %v8106_v27 = vrot.slane %v2724_v51, %v7889_v17  ;;  %v3231_v30 = vpack.i.b16 %v1423_v43, %v3220_v24  ;;  %v3738_v37 = vunpack.i.h.s16 %v8017_v54  ;;  %v1023_v33 = vsel %vm7827_vm3, 0, %v1022_v62 }
  0xc7   : > { %2463 = vmatmul.mubr.bf16.vlgmr.msra.gmra.mrb[0].mxu1 %v2266_v19  ;;  %1958 = vmatprep.mubr.bf16.mxu0 %v1763_v21  ;;  %v2726_v2 = vcombine.low %v6532_v22, %v6533_v23  ;;  %v3234_v29 = vpack.i.b16 %v2716_v16, %v3226_v26  ;;  %v3252_v36 = vrot.slane %v3237_v7, %v7889_v17  ;;  %v7111_v16 = vld [vmem:[%s9225_s9 + $0x54] ss:$8 sps:$4 sm:$0xff]  }
  0xc8   : > { %2944 = vmatpush1.bf16.msra.mxu1 %v7082_v60  ;;  %v2749_v31 = vcombine.high %v8106_v27, %v8100_v20  ;;  %v3236_v39 = vcombine.low %v7992_v35, %v3231_v30  ;;  %v3725_v45 = vrot.slane %v6671_v13, %v7889_v17  ;;  %1024 = vst [vmem:[#allocation2 + $0x28] sm:$0x44] %v1023_v33  ;;  %v7102_v35 = vld [vmem:[%s9225_s9 + $0x334] ss:$8 sps:$4 sm:$0xff]   ;;  %v7103_v13 = vld [vmem:[%s9225_s9 + $0x40] ss:$8 sps:$4 sm:$0xff]  }
  0xc9   : > { %2945 = vmatprep.subr.bf16.mxu1 %v7090_v12  ;;  %1929 = vmatpush1.bf16.msra.mxu0 %v7085_v11  ;;  %v8131_v43 = vrot.slane %v2726_v2, %v7889_v17  ;;  %v3238_v44 = vcombine.low %v3234_v29, %v2705_v1  ;;  %v8139_v47 = vrot.slane %v3718_v56, %v7889_v17  ;;  %v6741_v21 = vld.sshfl [vmem:[#allocation2 + $0x18] sm:$0x55 pattern:$0x75316420]  ;;  %v7117_v33 = vld [vmem:[%s9225_s9 + $0x64] ss:$8 sps:$4 sm:$0xff]  }
  0xca   : > { %1930 = vmatprep.subr.bf16.mxu0 %v7093_v18  ;;  %v6672_v41 = vpack.i.b16 %v8017_v54, %v8014_v53  ;;  %v3245_v52 = vrot.slane %v3236_v39, %v7889_v17  ;;  %v2764_v54 = vrot.slane %v2749_v31, %v7889_v17  ;;  %v8157_v57 = vcombine.high %v3725_v45, %v3725_v45  ;;  %v6742_v56 = vld.sshfl [vmem:[#allocation2 + $0x20] sm:$0x55 pattern:$0x75316420]  ;;  %v7109_v31 = vld [vmem:[%s9225_s9 + $0x50] ss:$8 sps:$4 sm:$0xff]  }
  0xcb   : > { %v2750_v48 = vcombine.high %v8131_v43, %v8131_v43  ;;  %v3259_v53 = vrot.slane %v3238_v44, %v7889_v17  ;;  %v3744_v59 = vunpack.i.h.s16 %v8139_v47  ;;  %v6673_v60 = vpack.i.b16 %v8019_v55, %v3738_v37  ;;  %v7100_v55 = vld [vmem:[%s9225_s9 + $0x330] ss:$8 sps:$4 sm:$0xff]   ;;  %v6743_v30 = vld.sshfl [vmem:[#allocation2 + $0x28] sm:$0x55 pattern:$0x75316420] }
  0xcc   : > { %2946 = vmatpush1.bf16.msra.mxu1 %v7088_v28  ;;  %v3261_v1 = vcombine.high %v3245_v52, %v3252_v36  ;;  %v6674_v4 = vpack.i.b16 %v8139_v47, %v8029_v0  ;;  %v3752_v8 = vcombine.low %v8004_v46, %v6672_v41  ;;  %v3260_v11 = vcombine.low %v3245_v52, %v3252_v36  ;;  %v7108_v0 = vld [vmem:[%s9225_s9 + $0x344] ss:$8 sps:$4 sm:$0xff]   ;;  %v7106_v28 = vld [vmem:[%s9225_s9 + $0x340] ss:$8 sps:$4 sm:$0xff]  }
  0xcd   : > { %2947 = vmatprep.subr.bf16.mxu1 %v7096_v42  ;;  %1931 = vmatpush1.bf16.msra.mxu0 %v7091_v15  ;;  %v2778_v63 = vrot.slane %v2750_v48, %v7889_v17  ;;  %v3262_v3 = vcombine.high %v3259_v53, %v3259_v53  ;;  %v6675_v6 = vpack.i.b16 %v8157_v57, %v3744_v59  ;;  %v7114_v42 = vld [vmem:[%s9225_s9 + $0x354] ss:$8 sps:$4 sm:$0xff]  }
  0xce   : > { %1932 = vmatprep.subr.bf16.mxu0 %v7099_v40  ;;  %v3753_v9 = vcombine.low %v6673_v60, %v8023_v58  ;;  %v8177_v14 = vrot.slane %v3261_v1, %v7889_v17  ;;  %v3283_v58 = vrot.slane %v3259_v53, %v7889_v17  ;;  %v3761_v62 = vrot.slane %v3752_v8, %v7889_v17  ;;  %v7115_v60 = vld [vmem:[%s9225_s9 + $0x60] ss:$8 sps:$4 sm:$0xff]  }
  0xcf   : > { %v2780_v12 = vcombine.low %v2764_v54, %v2778_v63  ;;  %v8180_v46 = vrot.slane %v3262_v3, %v7889_v17  ;;  %v3754_v18 = vcombine.low %v6674_v4, %v6675_v6  ;;  %v3269_v22 = vrot.slane %v3260_v11, %v7889_v17  ;;  %v7123_v3 = vld [vmem:[%s9225_s9 + $0x74] ss:$8 sps:$4 sm:$0xff]  }
  0xd0   : > { %2948 = vmatpush1.bf16.msra.mxu1 %v7094_v38  ;;  %v3768_v19 = vrot.slane %v3753_v9, %v7889_v17  ;;  %v4166_v23 = vcombine.high %v6740_v61, %v6740_v61  ;;  %v8193_v2 = vrot.slane %v6740_v61, %v7889_v17  ;;  %v4188_v36 = vcombine.high %v6741_v21, %v6741_v21  ;;  %v7120_v61 = vld [vmem:[%s9225_s9 + $0x364] ss:$8 sps:$4 sm:$0xff]  }
  0xd1   : > { %2949 = vmatprep.subr.bf16.mxu1 %v7102_v35  ;;  %1933 = vmatpush1.bf16.msra.mxu0 %v7097_v49  ;;  %v3292_v51 = vcombine.low %v8177_v14, %v8180_v46  ;;  %v3775_v24 = vrot.slane %v3754_v18, %v7889_v17  ;;  %v8198_v15 = vcombine.low %v3269_v22, %v3283_v58  ;;  %v7129_v22 = vld [vmem:[%s9225_s9 + $0x84] ss:$8 sps:$4 sm:$0xff]   ;;  %v7187_v14 = vld [vmem:[%s9225_s9 + $0x420] ss:$8 sps:$4 sm:$0xff]  }
  0xd2   : > { %2975 = vmatprep.mubr.bf16.mxu1 %v2780_v12  ;;  %1934 = vmatprep.subr.bf16.mxu0 %v7105_v50  ;;  %v3777_v26 = vcombine.high %v3761_v62, %v3768_v19  ;;  %v3776_v7 = vcombine.low %v3761_v62, %v3768_v19  ;;  %v8201_v29 = vrot.slane %v4166_v23, %v7889_v17  ;;  %v4759_v35 = vunpack.i.h.s16 %v8193_v2  ;;  %v7112_v50 = vld [vmem:[%s9225_s9 + $0x350] ss:$8 sps:$4 sm:$0xff]   ;;  %v7126_v62 = vld [vmem:[%s9225_s9 + $0x374] ss:$8 sps:$4 sm:$0xff]   ;;  %v7192_v46 = vld [vmem:[%s9225_s9 + $0x524] ss:$8 sps:$4 sm:$0xff]  }
  0xd3   : > { %v3778_v40 = vcombine.high %v3775_v24, %v3775_v24  ;;  %v8210_v37 = vrot.slane %v6741_v21, %v7889_v17  ;;  %v3799_v39 = vrot.slane %v3775_v24, %v7889_v17  ;;  %v4210_v44 = vcombine.high %v6742_v56, %v6742_v56  ;;  %v6882_v12 = vld.sshfl [vmem:[#allocation2 + $0x10] sm:$0x5a pattern:$0x75316420] }
  0xd4   : > { %2950 = vmatpush1.bf16.msra.mxu1 %v7100_v55  ;;  %v3785_v38 = vrot.slane %v3776_v7, %v7889_v17  ;;  %v8218_v45 = vrot.slane %v6742_v56, %v7889_v17  ;;  %v8221_v41 = vrot.slane %v3777_v26, %v7889_v17  ;;  %v8227_v49 = vrot.slane %v6743_v30, %v7889_v17  ;;  %v7118_v55 = vld [vmem:[%s9225_s9 + $0x360] ss:$8 sps:$4 sm:$0xff]   ;;  %v6883_v21 = vld.sshfl [vmem:[#allocation2 + $0x18] sm:$0x5a pattern:$0x75316420] }
  0xd5   : > { %2951 = vmatprep.subr.bf16.mxu1 %v7108_v0  ;;  %1935 = vmatpush1.bf16.msra.mxu0 %v7103_v13  ;;  %v8224_v48 = vrot.slane %v3778_v40, %v7889_v17  ;;  %v8236_v53 = vrot.slane %v4210_v44, %v7889_v17  ;;  %v4232_v54 = vcombine.high %v6743_v30, %v6743_v30  ;;  %v4761_v59 = vunpack.i.h.s16 %v8201_v29  ;;  %v7121_v13 = vld [vmem:[%s9225_s9 + $0x70] ss:$8 sps:$4 sm:$0xff]   ;;  %v7132_v40 = vld [vmem:[%s9225_s9 + $0x384] ss:$8 sps:$4 sm:$0xff]  }
  0xd6   : > { %1936 = vmatprep.subr.bf16.mxu0 %v7111_v16  ;;  %v8233_v52 = vcombine.low %v3785_v38, %v3799_v39  ;;  %v4251_v1 = vunpack.i.h.s16 %v8210_v37  ;;  %v4257_v4 = vunpack.i.h.s16 %v8227_v49  ;;  %v4765_v6 = vunpack.i.h.s16 %v8218_v45  ;;  %v7124_v7 = vld [vmem:[%s9225_s9 + $0x370] ss:$8 sps:$4 sm:$0xff]   ;;  %v6885_v38 = vld.sshfl [vmem:[#allocation2 + $0x28] sm:$0x5a pattern:$0x75316420] }
  0xd7   : > { %v3808_v63 = vcombine.low %v8221_v41, %v8224_v48  ;;  %v4767_v8 = vunpack.i.h.s16 %v8236_v53  ;;  %v6816_v9 = vpack.i.b16 %v8201_v29, %v4759_v35  ;;  %v8264_v0 = vrot.slane %v4188_v36, %v7889_v17  ;;  %v7135_v36 = vld [vmem:[%s9225_s9 + $0x94] ss:$8 sps:$4 sm:$0xff]   ;;  %v7190_v41 = vld [vmem:[%s9225_s9 + $0x520] ss:$8 sps:$4 sm:$0xff]   ;;  %v7193_v48 = vld [vmem:[%s9225_s9 + $0x430] ss:$8 sps:$4 sm:$0xff]  }
  0xd8   : > { %2952 = vmatpush1.bf16.msra.mxu1 %v7106_v28  ;;  %v4772_v11 = vpack.i.b16 %v4251_v1, %v4761_v59  ;;  %v8267_v58 = vrot.slane %v4232_v54, %v7889_v17  ;;  %v6817_v16 = vpack.i.b16 %v8236_v53, %v4765_v6  ;;  %v5197_v26 = vrot.slane %v6882_v12, %v7889_v17  ;;  %v7130_v59 = vld [vmem:[%s9225_s9 + $0x380] ss:$8 sps:$4 sm:$0xff]  }
  0xd9   : > { %2953 = vmatprep.subr.bf16.mxu1 %v7114_v42  ;;  %1937 = vmatpush1.bf16.msra.mxu0 %v7109_v31  ;;  %v4775_v18 = vpack.i.b16 %v4257_v4, %v4767_v8  ;;  %v5213_v31 = vcombine.high %v6883_v21, %v6883_v21  ;;  %v7127_v42 = vld [vmem:[%s9225_s9 + $0x80] ss:$8 sps:$4 sm:$0xff]   ;;  %v5190_v39 = vcombine.high %v6882_v12, %v6882_v12 }
  0xda   : > { %1938 = vmatprep.subr.bf16.mxu0 %v7117_v33  ;;  %v4777_v19 = vcombine.low %v6816_v9, %v4772_v11  ;;  %v4778_v23 = vcombine.low %v8264_v0, %v6817_v16  ;;  %v5205_v44 = vcombine.high %v5197_v26, %v5197_v26  ;;  %v5259_v8 = vcombine.high %v6885_v38, %v6885_v38  ;;  %v7141_v11 = vld [vmem:[%s9225_s9 + $0xa4] ss:$8 sps:$4 sm:$0xff]  }
  0xdb   : > { %v4779_v24 = vcombine.low %v4775_v18, %v8267_v58  ;;  %v5227_v54 = vrot.slane %v5213_v31, %v7889_v17  ;;  %v7147_v31 = vld [vmem:[%s9225_s9 + $0xb4] ss:$8 sps:$4 sm:$0xff]  }
  0xdc   : > { %2954 = vmatpush1.bf16.msra.mxu1 %v7112_v50  ;;  %v8285_v56 = vrot.slane %v4777_v19, %v7889_v17  ;;  %v8288_v28 = vrot.slane %v4778_v23, %v7889_v17  ;;  %v5220_v50 = vrot.slane %v6883_v21, %v7889_v17  ;;  %v5273_v18 = vrot.slane %v5259_v8, %v7889_v17  ;;  %v7136_v19 = vld [vmem:[%s9225_s9 + $0x390] ss:$8 sps:$4 sm:$0xff]   ;;  %v7144_v23 = vld [vmem:[%s9225_s9 + $0x3a4] ss:$8 sps:$4 sm:$0xff]  }
  0xdd   : > { %2955 = vmatprep.subr.bf16.mxu1 %v7120_v61  ;;  %1939 = vmatpush1.bf16.msra.mxu0 %v7115_v60  ;;  %v8291_v30 = vrot.slane %v4779_v24, %v7889_v17  ;;  %v7133_v61 = vld [vmem:[%s9225_s9 + $0x90] ss:$8 sps:$4 sm:$0xff]   ;;  %v5279_v9 = vunpack.i.h.s16 %v5227_v54  ;;  %v6886_v16 = vpack.i.b16 %v5227_v54, %v5205_v44 }
  0xde   : > { %1940 = vmatprep.subr.bf16.mxu0 %v7123_v3  ;;  %v4801_v33 = vcombine.low %v8285_v56, %v8288_v28  ;;  %v7138_v3 = vld [vmem:[%s9225_s9 + $0x394] ss:$8 sps:$4 sm:$0xff]   ;;  %v5228_v6 = vcombine.high %v5220_v50, %v5220_v50  ;;  %v5285_v26 = vunpack.i.h.s16 %v5273_v18 }
  0xdf   : > { %v4824_v35 = vrot.slane %v8291_v30, %v7889_v17 }
  0xe0   : > { %2956 = vmatpush1.bf16.msra.mxu1 %v7118_v55  ;;  %v4810_v60 = vrot.slane %v4801_v33, %v7889_v17  ;;  %v5204_v55 = vrot.slane %v5190_v39, %v7889_v17 }
  0xe1   : > { %2957 = vmatprep.subr.bf16.mxu1 %v7126_v62  ;;  %1941 = vmatpush1.bf16.msra.mxu0 %v7121_v13  ;;  %v5266_v13 = vrot.slane %v6885_v38, %v7889_v17  ;;  %v6887_v62 = vpack.i.b16 %v5228_v6, %v5279_v9  ;;  %v7142_v38 = vld [vmem:[%s9225_s9 + $0x3a0] ss:$8 sps:$4 sm:$0xff]   ;;  %v7159_v9 = vld [vmem:[%s9225_s9 + $0xd4] ss:$8 sps:$4 sm:$0xff]  }
  0xe2   : > { %1942 = vmatprep.subr.bf16.mxu0 %v7129_v22  ;;  %v8321_v12 = vcombine.low %v4810_v60, %v4824_v35  ;;  %v5293_v21 = vcombine.low %v5204_v55, %v6886_v16  ;;  %v7139_v22 = vld [vmem:[%s9225_s9 + $0xa0] ss:$8 sps:$4 sm:$0xff]   ;;  %v7153_v35 = vld [vmem:[%s9225_s9 + $0xc4] ss:$8 sps:$4 sm:$0xff]  }
  0xe3   : > { %v5274_v24 = vcombine.high %v5266_v13, %v5266_v13  ;;  %v7151_v60 = vld [vmem:[%s9225_s9 + $0xc0] ss:$8 sps:$4 sm:$0xff]  }
  0xe4   : > { %2958 = vmatpush1.bf16.msra.mxu1 %v7124_v7  ;;  %v5294_v7 = vcombine.low %v6887_v62, %v8139_v47  ;;  %v7145_v47 = vld [vmem:[%s9225_s9 + $0xb0] ss:$8 sps:$4 sm:$0xff]   ;;  %v7154_v16 = vld [vmem:[%s9225_s9 + $0x3c0] ss:$8 sps:$4 sm:$0xff]   ;;  %v7162_v62 = vld [vmem:[%s9225_s9 + $0x3d4] ss:$8 sps:$4 sm:$0xff]  }
  0xe5   : > { %2959 = vmatprep.subr.bf16.mxu1 %v7132_v40  ;;  %1943 = vmatpush1.bf16.msra.mxu0 %v7127_v42  ;;  %v6888_v42 = vpack.i.b16 %v5273_v18, %v8157_v57  ;;  %v6889_v40 = vpack.i.b16 %v5274_v24, %v5285_v26  ;;  %v7150_v57 = vld [vmem:[%s9225_s9 + $0x3b4] ss:$8 sps:$4 sm:$0xff]   ;;  %v7157_v18 = vld [vmem:[%s9225_s9 + $0xd0] ss:$8 sps:$4 sm:$0xff]   ;;  %v7168_v24 = vld [vmem:[%s9225_s9 + $0x3e4] ss:$8 sps:$4 sm:$0xff]  }
  0xe6   : > { %1944 = vmatprep.subr.bf16.mxu0 %v7135_v36  ;;  %v5302_v36 = vrot.slane %v5293_v21, %v7889_v17  ;;  %v5309_v33 = vrot.slane %v5294_v7, %v7889_v17  ;;  %v7165_v21 = vld [vmem:[%s9225_s9 + $0xe4] ss:$8 sps:$4 sm:$0xff]   ;;  %v7171_v26 = vld [vmem:[%s9225_s9 + $0xf4] ss:$8 sps:$4 sm:$0xff]   ;;  %v7166_v7 = vld [vmem:[%s9225_s9 + $0x3e0] ss:$8 sps:$4 sm:$0xff]  }
  0xe7   : > { %v5295_v39 = vcombine.low %v6888_v42, %v6889_v40  ;;  %v7169_v42 = vld [vmem:[%s9225_s9 + $0xf0] ss:$8 sps:$4 sm:$0xff]   ;;  %v7174_v40 = vld [vmem:[%s9225_s9 + $0x3f4] ss:$8 sps:$4 sm:$0xff]  }
  0xe8   : > { %2960 = vmatpush1.bf16.msra.mxu1 %v7130_v59  ;;  %v5317_v44 = vcombine.low %v5302_v36, %v5309_v33  ;;  %v5318_v54 = vcombine.high %v5302_v36, %v5309_v33  ;;  %v7148_v59 = vld [vmem:[%s9225_s9 + $0x3b0] ss:$8 sps:$4 sm:$0xff]   ;;  %v1754_v36 = vrot.slane %v8061_v34, %v7889_v17  ;;  %v7177_v33 = vld [vmem:[%s9225_s9 + $0x404] ss:$8 sps:$4 sm:$0xff]   ;;  %v7175_v34 = vld [vmem:[%s9225_s9 + $0x400] ss:$8 sps:$4 sm:$0xff]  }
  0xe9   : > { %2961 = vmatprep.subr.bf16.mxu1 %v7138_v3  ;;  %1945 = vmatpush1.bf16.msra.mxu0 %v7133_v61  ;;  %v5316_v50 = vrot.slane %v5295_v39, %v7889_v17  ;;  %v7156_v61 = vld [vmem:[%s9225_s9 + $0x3c4] ss:$8 sps:$4 sm:$0xff]  }
  0xea   : > { %1946 = vmatprep.subr.bf16.mxu0 %v7141_v11  ;;  %v5326_v6 = vrot.slane %v5317_v44, %v7889_v17  ;;  %v8370_v11 = vrot.slane %v5318_v54, %v7889_v17  ;;  %v7189_v54 = vld [vmem:[%s9225_s9 + $0x424] ss:$8 sps:$4 sm:$0xff]  }
  0xeb   : > { %v5319_v3 = vcombine.high %v5316_v50, %v5316_v50  ;;  %v5340_v8 = vrot.slane %v5316_v50, %v7889_v17  ;;  %v7186_v50 = vld [vmem:[%s9225_s9 + $0x514] ss:$8 sps:$4 sm:$0xff]  }
  0xec   : > { %2962 = vmatpush1.bf16.msra.mxu1 %v7136_v19 }
  0xed   : > { %2963 = vmatprep.subr.bf16.mxu1 %v7144_v23  ;;  %1947 = vmatpush1.bf16.msra.mxu0 %v7139_v22  ;;  %v8373_v55 = vrot.slane %v5319_v3, %v7889_v17  ;;  %v8375_v13 = vcombine.low %v5326_v6, %v5340_v8  ;;  %v7160_v22 = vld [vmem:[%s9225_s9 + $0x3d0] ss:$8 sps:$4 sm:$0xff]   ;;  %v7163_v23 = vld [vmem:[%s9225_s9 + $0xe0] ss:$8 sps:$4 sm:$0xff]   ;;  %v7204_v6 = vld [vmem:[%s9225_s9 + $0x544] ss:$8 sps:$4 sm:$0xff]  }
  0xee   : > { %1948 = vmatprep.subr.bf16.mxu0 %v7147_v31  ;;  %v1731_v31 = vcombine.low %v8050_v25, %v8058_v32  ;;  %v2748_v25 = vcombine.low %v8106_v27, %v8100_v20  ;;  %v7172_v32 = vld [vmem:[%s9225_s9 + $0x3f0] ss:$8 sps:$4 sm:$0xff]   ;;  %v7180_v20 = vld [vmem:[%s9225_s9 + $0x504] ss:$8 sps:$4 sm:$0xff]   ;;  %v7199_v3 = vld [vmem:[%s9225_s9 + $0x440] ss:$8 sps:$4 sm:$0xff]  }
  0xef   : > { %v5349_v19 = vcombine.low %v8370_v11, %v8373_v55  ;;  %v7207_v8 = vld [vmem:[%s9225_s9 + $0x454] ss:$8 sps:$4 sm:$0xff]   ;;  %v7376_v55 = vld [vmem:[%s9225_s9 + $0x830] ss:$8 sps:$4 sm:$0xff]  }
  0xf0   : > { %2964 = vmatpush1.bf16.msra.mxu1 %v7142_v38  ;;  %v1740_v38 = vrot.slane %v1731_v31, %v7889_v17  ;;  %v2757_v39 = vrot.slane %v2748_v25, %v7889_v17  ;;  %v7222_v31 = vld [vmem:[%s9225_s9 + $0x574] ss:$8 sps:$4 sm:$0xff]  }
  0xf1   : > { %2965 = vmatprep.subr.bf16.mxu1 %v7150_v57  ;;  %1949 = vmatpush1.bf16.msra.mxu0 %v7145_v47  ;;  %v2771_v47 = vrot.slane %v8131_v43, %v7889_v17  ;;  %v7183_v57 = vld [vmem:[%s9225_s9 + $0x414] ss:$8 sps:$4 sm:$0xff]   ;;  %v7178_v43 = vld [vmem:[%s9225_s9 + $0x500] ss:$8 sps:$4 sm:$0xff]  }
  0xf2   : > { %1950 = vmatprep.subr.bf16.mxu0 %v7153_v35  ;;  %v1762_v27 = vcombine.low %v1740_v38, %v1754_v36  ;;  %v7181_v35 = vld [vmem:[%s9225_s9 + $0x410] ss:$8 sps:$4 sm:$0xff]   ;;  %v7223_v36 = vld [vmem:[%s9225_s9 + $0x480] ss:$8 sps:$4 sm:$0xff]   ;;  %v7231_v25 = vld [vmem:[%s9225_s9 + $0x494] ss:$8 sps:$4 sm:$0xff]  }
  0xf3   : > { %v2779_v44 = vcombine.low %v2757_v39, %v2771_v47  ;;  %v7229_v38 = vld [vmem:[%s9225_s9 + $0x490] ss:$8 sps:$4 sm:$0xff]   ;;  %v7234_v47 = vld [vmem:[%s9225_s9 + $0x594] ss:$8 sps:$4 sm:$0xff]  }
  0xf4   : > { %2966 = vmatpush1.bf16.msra.mxu1 %v7148_v59  ;;  %v7184_v59 = vld [vmem:[%s9225_s9 + $0x510] ss:$8 sps:$4 sm:$0xff]   ;;  %v7243_v39 = vld [vmem:[%s9225_s9 + $0x4b4] ss:$8 sps:$4 sm:$0xff]  }
  0xf5   : > { %2967 = vmatprep.subr.bf16.mxu1 %v7156_v61  ;;  %1951 = vmatpush1.bf16.msra.mxu0 %v7151_v60  ;;  %v7201_v60 = vld [vmem:[%s9225_s9 + $0x444] ss:$8 sps:$4 sm:$0xff]   ;;  %v7196_v61 = vld [vmem:[%s9225_s9 + $0x530] ss:$8 sps:$4 sm:$0xff]   ;;  %v7378_v11 = vld [vmem:[%s9225_s9 + $0x834] ss:$8 sps:$4 sm:$0xff]  }
  0xf6   : > { %1952 = vmatprep.subr.bf16.mxu0 %v7159_v9  ;;  %v7202_v9 = vld [vmem:[%s9225_s9 + $0x540] ss:$8 sps:$4 sm:$0xff]  }
  0xf8   : > { %2968 = vmatpush1.bf16.msra.mxu1 %v7154_v16  ;;  %v7205_v16 = vld [vmem:[%s9225_s9 + $0x450] ss:$8 sps:$4 sm:$0xff]  }
  0xf9   : > { %2969 = vmatprep.subr.bf16.mxu1 %v7162_v62  ;;  %1953 = vmatpush1.bf16.msra.mxu0 %v7157_v18  ;;  %v7210_v18 = vld [vmem:[%s9225_s9 + $0x554] ss:$8 sps:$4 sm:$0xff]   ;;  %v7213_v62 = vld [vmem:[%s9225_s9 + $0x464] ss:$8 sps:$4 sm:$0xff]  }
  0xfa   : > { %1954 = vmatprep.subr.bf16.mxu0 %v7165_v21  ;;  %v7208_v21 = vld [vmem:[%s9225_s9 + $0x550] ss:$8 sps:$4 sm:$0xff]  }
  0xfc   : > { %2970 = vmatpush1.bf16.msra.mxu1 %v7160_v22  ;;  %v7211_v22 = vld [vmem:[%s9225_s9 + $0x460] ss:$8 sps:$4 sm:$0xff]  }
  0xfd   : > { %2971 = vmatprep.subr.bf16.mxu1 %v7168_v24  ;;  %1955 = vmatpush1.bf16.msra.mxu0 %v7163_v23  ;;  %v7216_v23 = vld [vmem:[%s9225_s9 + $0x564] ss:$8 sps:$4 sm:$0xff]   ;;  %v7219_v24 = vld [vmem:[%s9225_s9 + $0x474] ss:$8 sps:$4 sm:$0xff]  }
  0xfe   : > { %1956 = vmatprep.subr.bf16.mxu0 %v7171_v26  ;;  %v7214_v26 = vld [vmem:[%s9225_s9 + $0x560] ss:$8 sps:$4 sm:$0xff]  }
 0x100   : > { %2972 = vmatpush1.bf16.msra.mxu1 %v7166_v7  ;;  %v7217_v7 = vld [vmem:[%s9225_s9 + $0x470] ss:$8 sps:$4 sm:$0xff]  }
 0x101   : > { %2973 = vmatprep.subr.bf16.mxu1 %v7174_v40  ;;  %1957 = vmatpush1.bf16.msra.mxu0 %v7169_v42  ;;  %v7225_v42 = vld [vmem:[%s9225_s9 + $0x484] ss:$8 sps:$4 sm:$0xff]   ;;  %v7220_v40 = vld [vmem:[%s9225_s9 + $0x570] ss:$8 sps:$4 sm:$0xff]  }
 0x102   : > { %3455 = vmatprep.subr.bf16.mxu0 %v7177_v33  ;;  %v7228_v33 = vld [vmem:[%s9225_s9 + $0x584] ss:$8 sps:$4 sm:$0xff]  }
 0x104   : > { %2974 = vmatpush1.bf16.msra.mxu1 %v7172_v32  ;;  %1959 = vmatmul.mubr.bf16.vlgmr.msra.gmra.mrb[0].mxu0 %v1762_v27  ;;  %v7226_v32 = vld [vmem:[%s9225_s9 + $0x580] ss:$8 sps:$4 sm:$0xff]  }
 0x105   : > { %3971 = vmatprep.subr.bf16.mxu1 %v7180_v20  ;;  %3456 = vmatpush1.bf16.msra.mxu0 %v7175_v34  ;;  %v7237_v34 = vld [vmem:[%s9225_s9 + $0x4a4] ss:$8 sps:$4 sm:$0xff]   ;;  %v7232_v20 = vld [vmem:[%s9225_s9 + $0x590] ss:$8 sps:$4 sm:$0xff]   ;;  %v7235_v27 = vld [vmem:[%s9225_s9 + $0x4a0] ss:$8 sps:$4 sm:$0xff]  }
 0x106   : > { %3487 = vmatprep.mubr.bf16.mxu0 %v3292_v51  ;;  %3457 = vmatprep.subr.bf16.mxu0 %v7183_v57  ;;  %v7195_v51 = vld [vmem:[%s9225_s9 + $0x434] ss:$8 sps:$4 sm:$0xff]   ;;  %v7240_v57 = vld [vmem:[%s9225_s9 + $0x5a4] ss:$8 sps:$4 sm:$0xff]  }
 0x107   : > { %2976 = vmatmul.mubr.bf16.vlgmr.msra.gmra.mrb[4].mxu1 %v2779_v44  ;;  %v7241_v44 = vld [vmem:[%s9225_s9 + $0x4b0] ss:$8 sps:$4 sm:$0xff]  }
 0x108   : > { %3972 = vmatpush1.bf16.msra.mxu1 %v7178_v43  ;;  %4003 = vmatprep.mubr.bf16.mxu1 %v3808_v63  ;;  %v7198_v63 = vld [vmem:[%s9225_s9 + $0x534] ss:$8 sps:$4 sm:$0xff]   ;;  %v7238_v43 = vld [vmem:[%s9225_s9 + $0x5a0] ss:$8 sps:$4 sm:$0xff]  }
 0x109   : > { %3973 = vmatprep.subr.bf16.mxu1 %v7186_v50  ;;  %3458 = vmatpush1.bf16.msra.mxu0 %v7181_v35  ;;  %v7246_v35 = vld [vmem:[%s9225_s9 + $0x5b4] ss:$8 sps:$4 sm:$0xff]   ;;  %v7249_v50 = vld [vmem:[%s9225_s9 + $0x4c4] ss:$8 sps:$4 sm:$0xff]  }
 0x10a   : > { %3459 = vmatprep.subr.bf16.mxu0 %v7189_v54  ;;  %v7244_v54 = vld [vmem:[%s9225_s9 + $0x5b0] ss:$8 sps:$4 sm:$0xff]  }
 0x10c   : > { %3974 = vmatpush1.bf16.msra.mxu1 %v7184_v59  ;;  %v6746_v59 = vpack.i.b16 %v8227_v49, %v8236_v53  ;;  %v6744_v49 = vpack.i.b16 %v8210_v37, %v8201_v29  ;;  %v6745_v53 = vpack.i.b16 %v8264_v0, %v4251_v1  ;;  %v7258_v29 = vld [vmem:[%s9225_s9 + $0x5d4] ss:$8 sps:$4 sm:$0xff]   ;;  %v7261_v37 = vld [vmem:[%s9225_s9 + $0x4e4] ss:$8 sps:$4 sm:$0xff]  }
 0x10d   : > { %3975 = vmatprep.subr.bf16.mxu1 %v7192_v46  ;;  %3460 = vmatpush1.bf16.msra.mxu0 %v7187_v14  ;;  %v6747_v14 = vpack.i.b16 %v8267_v58, %v4257_v4  ;;  %v7247_v46 = vld [vmem:[%s9225_s9 + $0x4c0] ss:$8 sps:$4 sm:$0xff]  }
 0x10e   : > { %3461 = vmatprep.subr.bf16.mxu0 %v7195_v51  ;;  %v7252_v51 = vld [vmem:[%s9225_s9 + $0x5c4] ss:$8 sps:$4 sm:$0xff]   ;;  %v7250_v4 = vld [vmem:[%s9225_s9 + $0x5c0] ss:$8 sps:$4 sm:$0xff]   ;;  %v4265_v1 = vcombine.low %v8193_v2, %v6744_v49  ;;  %v4266_v0 = vcombine.low %v6745_v53, %v8218_v45  ;;  %v7267_v45 = vld [vmem:[%s9225_s9 + $0x4f4] ss:$8 sps:$4 sm:$0xff]  }
 0x10f   : > { %v4267_v58 = vcombine.low %v6746_v59, %v6747_v14  ;;  %v7264_v2 = vld [vmem:[%s9225_s9 + $0x5e4] ss:$8 sps:$4 sm:$0xff]   ;;  %v7301_v59 = vld [vmem:[%s9225_s9 + $0x650] ss:$8 sps:$4 sm:$0xff]   ;;  %v7306_v14 = vld [vmem:[%s9225_s9 + $0x754] ss:$8 sps:$4 sm:$0xff]  }
 0x110   : > { %3976 = vmatpush1.bf16.msra.mxu1 %v7190_v41  ;;  %v7255_v41 = vld [vmem:[%s9225_s9 + $0x4d4] ss:$8 sps:$4 sm:$0xff]   ;;  %v7312_v49 = vld [vmem:[%s9225_s9 + $0x764] ss:$8 sps:$4 sm:$0xff]  }
 0x111   : > { %3977 = vmatprep.subr.bf16.mxu1 %v7198_v63  ;;  %3462 = vmatpush1.bf16.msra.mxu0 %v7193_v48  ;;  %v7253_v48 = vld [vmem:[%s9225_s9 + $0x4d0] ss:$8 sps:$4 sm:$0xff]   ;;  %v7315_v53 = vld [vmem:[%s9225_s9 + $0x674] ss:$8 sps:$4 sm:$0xff]  }
 0x112   : > { %3463 = vmatprep.subr.bf16.mxu0 %v7201_v60  ;;  %v7256_v63 = vld [vmem:[%s9225_s9 + $0x5d0] ss:$8 sps:$4 sm:$0xff]   ;;  %v8615_v60 = vrot.slane %v4267_v58, %v7889_v17 }
 0x113   : > { %v7313_v58 = vld [vmem:[%s9225_s9 + $0x670] ss:$8 sps:$4 sm:$0xff]  }
 0x114   : > { %3978 = vmatpush1.bf16.msra.mxu1 %v7196_v61  ;;  %v7259_v61 = vld [vmem:[%s9225_s9 + $0x4e0] ss:$8 sps:$4 sm:$0xff]  }
 0x115   : > { %3979 = vmatprep.subr.bf16.mxu1 %v7204_v6  ;;  %3464 = vmatpush1.bf16.msra.mxu0 %v7199_v3  ;;  %v8627_v3 = vrot.slane %v4265_v1, %v7889_v17  ;;  %v8630_v6 = vrot.slane %v4266_v0, %v7889_v17  ;;  %v7319_v1 = vld [vmem:[%s9225_s9 + $0x680] ss:$8 sps:$4 sm:$0xff]   ;;  %v7324_v0 = vld [vmem:[%s9225_s9 + $0x784] ss:$8 sps:$4 sm:$0xff]  }
 0x116   : > { %3465 = vmatprep.subr.bf16.mxu0 %v7207_v8  ;;  %v7262_v8 = vld [vmem:[%s9225_s9 + $0x5e0] ss:$8 sps:$4 sm:$0xff]  }
 0x118   : > { %3980 = vmatpush1.bf16.msra.mxu1 %v7202_v9  ;;  %v4291_v9 = vcombine.high %v8615_v60, %v8615_v60 }
 0x119   : > { %3981 = vmatprep.subr.bf16.mxu1 %v7210_v18  ;;  %3466 = vmatpush1.bf16.msra.mxu0 %v7205_v16  ;;  %v7265_v16 = vld [vmem:[%s9225_s9 + $0x4f0] ss:$8 sps:$4 sm:$0xff]   ;;  %v7270_v18 = vld [vmem:[%s9225_s9 + $0x5f4] ss:$8 sps:$4 sm:$0xff]  }
 0x11a   : > { %3467 = vmatprep.subr.bf16.mxu0 %v7213_v62  ;;  %v7273_v62 = vld [vmem:[%s9225_s9 + $0x604] ss:$8 sps:$4 sm:$0xff]  }
 0x11c   : > { %3982 = vmatpush1.bf16.msra.mxu1 %v7208_v21  ;;  %v4290_v21 = vcombine.high %v8627_v3, %v8630_v6 }
 0x11d   : > { %3983 = vmatprep.subr.bf16.mxu1 %v7216_v23  ;;  %3468 = vmatpush1.bf16.msra.mxu0 %v7211_v22  ;;  %v4803_v22 = vcombine.high %v8291_v30, %v8291_v30  ;;  %v7268_v23 = vld [vmem:[%s9225_s9 + $0x5f0] ss:$8 sps:$4 sm:$0xff]   ;;  %v7276_v30 = vld [vmem:[%s9225_s9 + $0x704] ss:$8 sps:$4 sm:$0xff]  }
 0x11e   : > { %3469 = vmatprep.subr.bf16.mxu0 %v7219_v24  ;;  %v4319_v24 = vrot.slane %v4291_v9, %v7889_v17  ;;  %v7328_v9 = vld [vmem:[%s9225_s9 + $0x790] ss:$8 sps:$4 sm:$0xff]  }
 0x120   : > { %3984 = vmatpush1.bf16.msra.mxu1 %v7214_v26  ;;  %v4802_v26 = vcombine.high %v8285_v56, %v8288_v28  ;;  %v7274_v56 = vld [vmem:[%s9225_s9 + $0x700] ss:$8 sps:$4 sm:$0xff]  }
 0x121   : > { %3985 = vmatprep.subr.bf16.mxu1 %v7222_v31  ;;  %3470 = vmatpush1.bf16.msra.mxu0 %v7217_v7  ;;  %v7271_v7 = vld [vmem:[%s9225_s9 + $0x600] ss:$8 sps:$4 sm:$0xff]   ;;  %v4305_v31 = vrot.slane %v4290_v21, %v7889_v17 }
 0x122   : > { %3471 = vmatprep.subr.bf16.mxu0 %v7225_v42  ;;  %v4831_v42 = vrot.slane %v4803_v22, %v7889_v17  ;;  %v7334_v21 = vld [vmem:[%s9225_s9 + $0x7a0] ss:$8 sps:$4 sm:$0xff]   ;;  %v7337_v22 = vld [vmem:[%s9225_s9 + $0x6b0] ss:$8 sps:$4 sm:$0xff]  }
 0x123   : > { %v4321_v28 = vcombine.low %v4305_v31, %v4319_v24  ;;  %v7345_v24 = vld [vmem:[%s9225_s9 + $0x6c4] ss:$8 sps:$4 sm:$0xff]   ;;  %v7351_v31 = vld [vmem:[%s9225_s9 + $0x6d4] ss:$8 sps:$4 sm:$0xff]  }
 0x124   : > { %3986 = vmatpush1.bf16.msra.mxu1 %v7220_v40  ;;  %v7279_v40 = vld [vmem:[%s9225_s9 + $0x614] ss:$8 sps:$4 sm:$0xff]  }
 0x125   : > { %3987 = vmatprep.subr.bf16.mxu1 %v7228_v33  ;;  %3472 = vmatpush1.bf16.msra.mxu0 %v7223_v36  ;;  %v4817_v36 = vrot.slane %v4802_v26, %v7889_v17  ;;  %v7277_v33 = vld [vmem:[%s9225_s9 + $0x610] ss:$8 sps:$4 sm:$0xff]  }
 0x126   : > { %3473 = vmatprep.subr.bf16.mxu0 %v7231_v25  ;;  %v7282_v25 = vld [vmem:[%s9225_s9 + $0x714] ss:$8 sps:$4 sm:$0xff]   ;;  %v7340_v26 = vld [vmem:[%s9225_s9 + $0x7b0] ss:$8 sps:$4 sm:$0xff]  }
 0x128   : > { %3988 = vmatpush1.bf16.msra.mxu1 %v7226_v32  ;;  %v4833_v32 = vcombine.low %v4817_v36, %v4831_v42  ;;  %v7346_v42 = vld [vmem:[%s9225_s9 + $0x7c0] ss:$8 sps:$4 sm:$0xff]   ;;  %v7352_v36 = vld [vmem:[%s9225_s9 + $0x7d0] ss:$8 sps:$4 sm:$0xff]  }
 0x129   : > { %3989 = vmatprep.subr.bf16.mxu1 %v7234_v47  ;;  %3474 = vmatpush1.bf16.msra.mxu0 %v7229_v38  ;;  %v7280_v38 = vld [vmem:[%s9225_s9 + $0x710] ss:$8 sps:$4 sm:$0xff]   ;;  %v7283_v47 = vld [vmem:[%s9225_s9 + $0x620] ss:$8 sps:$4 sm:$0xff]  }
 0x12a   : > { %3475 = vmatprep.subr.bf16.mxu0 %v7237_v34  ;;  %v7288_v34 = vld [vmem:[%s9225_s9 + $0x724] ss:$8 sps:$4 sm:$0xff]  }
 0x12c   : > { %3990 = vmatpush1.bf16.msra.mxu1 %v7232_v20  ;;  %v7286_v20 = vld [vmem:[%s9225_s9 + $0x720] ss:$8 sps:$4 sm:$0xff]  }
 0x12d   : > { %3991 = vmatprep.subr.bf16.mxu1 %v7240_v57  ;;  %3476 = vmatpush1.bf16.msra.mxu0 %v7235_v27  ;;  %v7289_v27 = vld [vmem:[%s9225_s9 + $0x630] ss:$8 sps:$4 sm:$0xff]   ;;  %v7294_v57 = vld [vmem:[%s9225_s9 + $0x734] ss:$8 sps:$4 sm:$0xff]  }
 0x12e   : > { %3477 = vmatprep.subr.bf16.mxu0 %v7243_v39  ;;  %v7297_v39 = vld [vmem:[%s9225_s9 + $0x644] ss:$8 sps:$4 sm:$0xff]  }
 0x130   : > { %3992 = vmatpush1.bf16.msra.mxu1 %v7238_v43  ;;  %v7292_v43 = vld [vmem:[%s9225_s9 + $0x730] ss:$8 sps:$4 sm:$0xff]  }
 0x131   : > { %3993 = vmatprep.subr.bf16.mxu1 %v7246_v35  ;;  %3478 = vmatpush1.bf16.msra.mxu0 %v7241_v44  ;;  %v7295_v44 = vld [vmem:[%s9225_s9 + $0x640] ss:$8 sps:$4 sm:$0xff]   ;;  %v7300_v35 = vld [vmem:[%s9225_s9 + $0x744] ss:$8 sps:$4 sm:$0xff]  }
 0x132   : > { %3479 = vmatprep.subr.bf16.mxu0 %v7249_v50  ;;  %v7303_v50 = vld [vmem:[%s9225_s9 + $0x654] ss:$8 sps:$4 sm:$0xff]  }
 0x134   : > { %3994 = vmatpush1.bf16.msra.mxu1 %v7244_v54  ;;  %v7298_v54 = vld [vmem:[%s9225_s9 + $0x740] ss:$8 sps:$4 sm:$0xff]  }
 0x135   : > { %3995 = vmatprep.subr.bf16.mxu1 %v7252_v51  ;;  %3480 = vmatpush1.bf16.msra.mxu0 %v7247_v46  ;;  %v7309_v46 = vld [vmem:[%s9225_s9 + $0x664] ss:$8 sps:$4 sm:$0xff]   ;;  %v7304_v51 = vld [vmem:[%s9225_s9 + $0x750] ss:$8 sps:$4 sm:$0xff]  }
 0x136   : > { %3481 = vmatprep.subr.bf16.mxu0 %v7255_v41  ;;  %v7307_v41 = vld [vmem:[%s9225_s9 + $0x660] ss:$8 sps:$4 sm:$0xff]  }
 0x138   : > { %3996 = vmatpush1.bf16.msra.mxu1 %v7250_v4  ;;  %v7310_v4 = vld [vmem:[%s9225_s9 + $0x760] ss:$8 sps:$4 sm:$0xff]  }
 0x139   : > { %3997 = vmatprep.subr.bf16.mxu1 %v7258_v29  ;;  %3482 = vmatpush1.bf16.msra.mxu0 %v7253_v48  ;;  %v7318_v48 = vld [vmem:[%s9225_s9 + $0x774] ss:$8 sps:$4 sm:$0xff]   ;;  %v7321_v29 = vld [vmem:[%s9225_s9 + $0x684] ss:$8 sps:$4 sm:$0xff]  }
 0x13a   : > { %3483 = vmatprep.subr.bf16.mxu0 %v7261_v37  ;;  %v7316_v37 = vld [vmem:[%s9225_s9 + $0x770] ss:$8 sps:$4 sm:$0xff]  }
 0x13c   : > { %3998 = vmatpush1.bf16.msra.mxu1 %v7256_v63  ;;  %v7327_v63 = vld [vmem:[%s9225_s9 + $0x694] ss:$8 sps:$4 sm:$0xff]  }
 0x13d   : > { %3999 = vmatprep.subr.bf16.mxu1 %v7264_v2  ;;  %3484 = vmatpush1.bf16.msra.mxu0 %v7259_v61  ;;  %v7322_v61 = vld [vmem:[%s9225_s9 + $0x780] ss:$8 sps:$4 sm:$0xff]   ;;  %v7325_v2 = vld [vmem:[%s9225_s9 + $0x690] ss:$8 sps:$4 sm:$0xff]  }
 0x13e   : > { %3485 = vmatprep.subr.bf16.mxu0 %v7267_v45  ;;  %v7330_v45 = vld [vmem:[%s9225_s9 + $0x794] ss:$8 sps:$4 sm:$0xff]  }
 0x140   : > { %4000 = vmatpush1.bf16.msra.mxu1 %v7262_v8  ;;  %v7333_v8 = vld [vmem:[%s9225_s9 + $0x6a4] ss:$8 sps:$4 sm:$0xff]  }
 0x141   : > { %4001 = vmatprep.subr.bf16.mxu1 %v7270_v18  ;;  %3486 = vmatpush1.bf16.msra.mxu0 %v7265_v16  ;;  %v7331_v16 = vld [vmem:[%s9225_s9 + $0x6a0] ss:$8 sps:$4 sm:$0xff]   ;;  %v7336_v18 = vld [vmem:[%s9225_s9 + $0x7a4] ss:$8 sps:$4 sm:$0xff]  }
 0x142   : > { %4484 = vmatprep.subr.bf16.mxu0 %v7273_v62  ;;  %v7339_v62 = vld [vmem:[%s9225_s9 + $0x6b4] ss:$8 sps:$4 sm:$0xff]  }
 0x144   : > { %4002 = vmatpush1.bf16.msra.mxu1 %v7268_v23  ;;  %3488 = vmatmul.mubr.bf16.vlgmr.msra.gmra.mrb[4].mxu0 %v8198_v15  ;;  %v7285_v15 = vld [vmem:[%s9225_s9 + $0x624] ss:$8 sps:$4 sm:$0xff]   ;;  %v7342_v23 = vld [vmem:[%s9225_s9 + $0x7b4] ss:$8 sps:$4 sm:$0xff]  }
 0x145   : > { %4996 = vmatprep.subr.bf16.mxu1 %v7276_v30  ;;  %4485 = vmatpush1.bf16.msra.mxu0 %v7271_v7  ;;  %v7343_v7 = vld [vmem:[%s9225_s9 + $0x6c0] ss:$8 sps:$4 sm:$0xff]   ;;  %v7348_v30 = vld [vmem:[%s9225_s9 + $0x7c4] ss:$8 sps:$4 sm:$0xff]  }
 0x146   : > { %4516 = vmatprep.mubr.bf16.mxu0 %v4321_v28  ;;  %4486 = vmatprep.subr.bf16.mxu0 %v7279_v40  ;;  %v7349_v40 = vld [vmem:[%s9225_s9 + $0x6d0] ss:$8 sps:$4 sm:$0xff]   ;;  %v7357_v28 = vld [vmem:[%s9225_s9 + $0x6e4] ss:$8 sps:$4 sm:$0xff]  }
 0x147   : > { %4004 = vmatmul.mubr.bf16.vlgmr.msra.gmra.mrb[8].mxu1 %v8233_v52  ;;  %v7291_v52 = vld [vmem:[%s9225_s9 + $0x634] ss:$8 sps:$4 sm:$0xff]  }
 0x148   : > { %4997 = vmatpush1.bf16.msra.mxu1 %v7274_v56  ;;  %5028 = vmatprep.mubr.bf16.mxu1 %v4833_v32  ;;  %v7354_v56 = vld [vmem:[%s9225_s9 + $0x7d4] ss:$8 sps:$4 sm:$0xff]  }
 0x149   : > { %4998 = vmatprep.subr.bf16.mxu1 %v7282_v25  ;;  %4487 = vmatpush1.bf16.msra.mxu0 %v7277_v33  ;;  %v7355_v33 = vld [vmem:[%s9225_s9 + $0x6e0] ss:$8 sps:$4 sm:$0xff]   ;;  %v7360_v25 = vld [vmem:[%s9225_s9 + $0x7e4] ss:$8 sps:$4 sm:$0xff]   ;;  %v7363_v32 = vld [vmem:[%s9225_s9 + $0x6f4] ss:$8 sps:$4 sm:$0xff]  }
 0x14a   : > { %4488 = vmatprep.subr.bf16.mxu0 %v7285_v15  ;;  %v7358_v15 = vld [vmem:[%s9225_s9 + $0x7e0] ss:$8 sps:$4 sm:$0xff]  }
 0x14c   : > { %4999 = vmatpush1.bf16.msra.mxu1 %v7280_v38  ;;  %v4289_v38 = vcombine.low %v8627_v3, %v8630_v6  ;;  %v7364_v3 = vld [vmem:[%s9225_s9 + $0x7f0] ss:$8 sps:$4 sm:$0xff]  }
 0x14d   : > { %5000 = vmatprep.subr.bf16.mxu1 %v7288_v34  ;;  %4489 = vmatpush1.bf16.msra.mxu0 %v7283_v47  ;;  %v7361_v47 = vld [vmem:[%s9225_s9 + $0x6f0] ss:$8 sps:$4 sm:$0xff]   ;;  %v7366_v34 = vld [vmem:[%s9225_s9 + $0x7f4] ss:$8 sps:$4 sm:$0xff]  }
 0x14e   : > { %4490 = vmatprep.subr.bf16.mxu0 %v7291_v52  ;;  %v4312_v52 = vrot.slane %v8615_v60, %v7889_v17  ;;  %v4298_v6 = vrot.slane %v4289_v38, %v7889_v17  ;;  %v7372_v60 = vld [vmem:[%s9225_s9 + $0x814] ss:$8 sps:$4 sm:$0xff]  }
 0x150   : > { %5001 = vmatpush1.bf16.msra.mxu1 %v7286_v20  ;;  %v7369_v20 = vld [vmem:[%s9225_s9 + $0x804] ss:$8 sps:$4 sm:$0xff]  }
 0x151   : > { %5002 = vmatprep.subr.bf16.mxu1 %v7294_v57  ;;  %4491 = vmatpush1.bf16.msra.mxu0 %v7289_v27  ;;  %v7367_v27 = vld [vmem:[%s9225_s9 + $0x800] ss:$8 sps:$4 sm:$0xff]   ;;  %v4320_v57 = vcombine.low %v4298_v6, %v4312_v52 }
 0x152   : > { %4492 = vmatprep.subr.bf16.mxu0 %v7297_v39  ;;  %v7370_v39 = vld [vmem:[%s9225_s9 + $0x810] ss:$8 sps:$4 sm:$0xff]  }
 0x154   : > { %5003 = vmatpush1.bf16.msra.mxu1 %v7292_v43  ;;  %v7375_v43 = vld [vmem:[%s9225_s9 + $0x824] ss:$8 sps:$4 sm:$0xff]  }
 0x155   : > { %5004 = vmatprep.subr.bf16.mxu1 %v7300_v35  ;;  %4493 = vmatpush1.bf16.msra.mxu0 %v7295_v44  ;;  %v7373_v44 = vld [vmem:[%s9225_s9 + $0x820] ss:$8 sps:$4 sm:$0xff]   ;;  %v7384_v35 = vld [vmem:[%s9225_s9 + $0x854] ss:$8 sps:$4 sm:$0xff]  }
 0x156   : > { %4494 = vmatprep.subr.bf16.mxu0 %v7303_v50  ;;  %v7382_v50 = vld [vmem:[%s9225_s9 + $0x850] ss:$8 sps:$4 sm:$0xff]  }
 0x158   : > { %5005 = vmatpush1.bf16.msra.mxu1 %v7298_v54  ;;  %v7387_v54 = vld [vmem:[%s9225_s9 + $0x864] ss:$8 sps:$4 sm:$0xff]  }
 0x159   : > { %5006 = vmatprep.subr.bf16.mxu1 %v7306_v14  ;;  %4495 = vmatpush1.bf16.msra.mxu0 %v7301_v59  ;;  %v7385_v59 = vld [vmem:[%s9225_s9 + $0x860] ss:$8 sps:$4 sm:$0xff]  }
 0x15a   : > { %4496 = vmatprep.subr.bf16.mxu0 %v7309_v46  ;;  %v7390_v46 = vld [vmem:[%s9225_s9 + $0x874] ss:$8 sps:$4 sm:$0xff]  }
 0x15c   : > { %5007 = vmatpush1.bf16.msra.mxu1 %v7304_v51 }
 0x15d   : > { %5008 = vmatprep.subr.bf16.mxu1 %v7312_v49  ;;  %4497 = vmatpush1.bf16.msra.mxu0 %v7307_v41 }
 0x15e   : > { %4498 = vmatprep.subr.bf16.mxu0 %v7315_v53 }
 0x160   : > { %5009 = vmatpush1.bf16.msra.mxu1 %v7310_v4 }
 0x161   : > { %5010 = vmatprep.subr.bf16.mxu1 %v7318_v48  ;;  %4499 = vmatpush1.bf16.msra.mxu0 %v7313_v58  ;;  %v7388_v58 = vld [vmem:[%s9225_s9 + $0x870] ss:$8 sps:$4 sm:$0xff]  }
 0x162   : > { %4500 = vmatprep.subr.bf16.mxu0 %v7321_v29  ;;  %v7393_v29 = vld [vmem:[%s9225_s9 + $0x884] ss:$8 sps:$4 sm:$0xff]  }
 0x164   : > { %5011 = vmatpush1.bf16.msra.mxu1 %v7316_v37  ;;  %v7391_v37 = vld [vmem:[%s9225_s9 + $0x880] ss:$8 sps:$4 sm:$0xff]  }
 0x165   : > { %5012 = vmatprep.subr.bf16.mxu1 %v7324_v0  ;;  %4501 = vmatpush1.bf16.msra.mxu0 %v7319_v1  ;;  %v7396_v1 = vld [vmem:[%s9225_s9 + $0x894] ss:$8 sps:$4 sm:$0xff]   ;;  %v7394_v0 = vld [vmem:[%s9225_s9 + $0x890] ss:$8 sps:$4 sm:$0xff]  }
 0x166   : > { %4502 = vmatprep.subr.bf16.mxu0 %v7327_v63  ;;  %v7399_v63 = vld [vmem:[%s9225_s9 + $0x8a4] ss:$8 sps:$4 sm:$0xff]  }
 0x168   : > { %5013 = vmatpush1.bf16.msra.mxu1 %v7322_v61  ;;  %v7397_v61 = vld [vmem:[%s9225_s9 + $0x8a0] ss:$8 sps:$4 sm:$0xff]  }
 0x169   : > { %5014 = vmatprep.subr.bf16.mxu1 %v7330_v45  ;;  %4503 = vmatpush1.bf16.msra.mxu0 %v7325_v2  ;;  %v7402_v2 = vld [vmem:[%s9225_s9 + $0x8b4] ss:$8 sps:$4 sm:$0xff]   ;;  %v7400_v45 = vld [vmem:[%s9225_s9 + $0x8b0] ss:$8 sps:$4 sm:$0xff]  }
 0x16a   : > { %4504 = vmatprep.subr.bf16.mxu0 %v7333_v8  ;;  %v7405_v8 = vld [vmem:[%s9225_s9 + $0x8c4] ss:$8 sps:$4 sm:$0xff]  }
 0x16c   : > { %5015 = vmatpush1.bf16.msra.mxu1 %v7328_v9  ;;  %v7403_v9 = vld [vmem:[%s9225_s9 + $0x8c0] ss:$8 sps:$4 sm:$0xff]  }
 0x16d   : > { %5016 = vmatprep.subr.bf16.mxu1 %v7336_v18  ;;  %4505 = vmatpush1.bf16.msra.mxu0 %v7331_v16  ;;  %v7408_v16 = vld [vmem:[%s9225_s9 + $0x8d4] ss:$8 sps:$4 sm:$0xff]   ;;  %v7406_v18 = vld [vmem:[%s9225_s9 + $0x8d0] ss:$8 sps:$4 sm:$0xff]  }
 0x16e   : > { %4506 = vmatprep.subr.bf16.mxu0 %v7339_v62  ;;  %v7411_v62 = vld [vmem:[%s9225_s9 + $0x8e4] ss:$8 sps:$4 sm:$0xff]  }
 0x170   : > { %5017 = vmatpush1.bf16.msra.mxu1 %v7334_v21  ;;  %v7409_v21 = vld [vmem:[%s9225_s9 + $0x8e0] ss:$8 sps:$4 sm:$0xff]  }
 0x171   : > { %5018 = vmatprep.subr.bf16.mxu1 %v7342_v23  ;;  %4507 = vmatpush1.bf16.msra.mxu0 %v7337_v22  ;;  %v7414_v22 = vld [vmem:[%s9225_s9 + $0x8f4] ss:$8 sps:$4 sm:$0xff]   ;;  %v7412_v23 = vld [vmem:[%s9225_s9 + $0x8f0] ss:$8 sps:$4 sm:$0xff]  }
 0x172   : > { %4508 = vmatprep.subr.bf16.mxu0 %v7345_v24 }
 0x174   : > { %5019 = vmatpush1.bf16.msra.mxu1 %v7340_v26 }
 0x175   : > { %5020 = vmatprep.subr.bf16.mxu1 %v7348_v30  ;;  %4509 = vmatpush1.bf16.msra.mxu0 %v7343_v7 }
 0x176   : > { %4510 = vmatprep.subr.bf16.mxu0 %v7351_v31 }
 0x178   : > { %5021 = vmatpush1.bf16.msra.mxu1 %v7346_v42 }
 0x179   : > { %5022 = vmatprep.subr.bf16.mxu1 %v7354_v56  ;;  %4511 = vmatpush1.bf16.msra.mxu0 %v7349_v40 }
 0x17a   : > { %4512 = vmatprep.subr.bf16.mxu0 %v7357_v28 }
 0x17c   : > { %5023 = vmatpush1.bf16.msra.mxu1 %v7352_v36 }
 0x17d   : > { %5024 = vmatprep.subr.bf16.mxu1 %v7360_v25  ;;  %4513 = vmatpush1.bf16.msra.mxu0 %v7355_v33 }
 0x17e   : > { %4514 = vmatprep.subr.bf16.mxu0 %v7363_v32 }
 0x180   : > { %5025 = vmatpush1.bf16.msra.mxu1 %v7358_v15 }
 0x181   : > { %5026 = vmatprep.subr.bf16.mxu1 %v7366_v34  ;;  %4515 = vmatpush1.bf16.msra.mxu0 %v7361_v47 }
 0x182   : > { %5512 = vmatprep.subr.bf16.mxu0 %v7369_v20 }
 0x184   : > { %5027 = vmatpush1.bf16.msra.mxu1 %v7364_v3  ;;  %4517 = vmatmul.mubr.bf16.vlgmr.msra.gmra.mrb[8].mxu0 %v4320_v57 }
 0x185   : > { %5513 = vmatpush1.bf16.msra.mxu0 %v7367_v27  ;;  %5544 = vmatprep.mubr.bf16.mxu0 %v5349_v19  ;;  %v7379_v19 = vld [vmem:[%s9225_s9 + $0x840] ss:$8 sps:$4 sm:$0xff]  }
 0x186   : > { %5514 = vmatprep.subr.bf16.mxu0 %v7372_v60 }
 0x187   : > { %5029 = vmatmul.mubr.bf16.vlgmr.msra.gmra.mrb[12].mxu1 %v8321_v12  ;;  %v7381_v12 = vld [vmem:[%s9225_s9 + $0x844] ss:$8 sps:$4 sm:$0xff]  }
 0x189   : > { %5515 = vmatpush1.bf16.msra.mxu0 %v7370_v39 }
 0x18a   : > { %5516 = vmatprep.subr.bf16.mxu0 %v7375_v43 }
 0x18d   : > { %5517 = vmatpush1.bf16.msra.mxu0 %v7373_v44 }
 0x18e   : > { %5518 = vmatprep.subr.bf16.mxu0 %v7378_v11 }
 0x191   : > { %5519 = vmatpush1.bf16.msra.mxu0 %v7376_v55 }
 0x192   : > { %5520 = vmatprep.subr.bf16.mxu0 %v7381_v12 }
 0x195   : > { %5521 = vmatpush1.bf16.msra.mxu0 %v7379_v19 }
 0x196   : > { %5522 = vmatprep.subr.bf16.mxu0 %v7384_v35 }
 0x199   : > { %5523 = vmatpush1.bf16.msra.mxu0 %v7382_v50 }
 0x19a   : > { %v2464_v14 = vpop.f32.mrb[0].mxu1  ;;  %5524 = vmatprep.subr.bf16.mxu0 %v7387_v54 }
 0x19b   : > { %v2466_v51 = vpop.f32.mrb[1].mxu1 }
 0x19c   : > { %v2477_v41 = vcombine.low %v2464_v14, %v2466_v51  ;;  %v2478_v49 = vcombine.high %v2464_v14, %v2466_v51  ;;  %v2468_v53 = vpop.f32.mrb[2].mxu1 }
 0x19d   : > { %v2470_v4 = vpop.f32.mrb[3].mxu1  ;;  %5525 = vmatpush1.bf16.msra.mxu0 %v7385_v59 }
 0x19e   : > { %v2527_v48 = vcombine.low %v2468_v53, %v2470_v4  ;;  %5526 = vmatprep.subr.bf16.mxu0 %v7390_v46  ;;  %v2485_v24 = vrot.slane %v2477_v41, %v7889_v17  ;;  %v2492_v26 = vrot.slane %v2478_v49, %v7889_v17 }
 0x1a0   : > { %v2493_v7 = vcombine.high %v2485_v24, %v2485_v24  ;;  %v2494_v30 = vcombine.high %v2492_v26, %v2492_v26  ;;  %v2534_v31 = vrot.slane %v2527_v48, %v7889_v17  ;;  %v2501_v42 = vrot.slane %v2485_v24, %v7889_v17 }
 0x1a1   : > { %5527 = vmatpush1.bf16.msra.mxu0 %v7388_v58  ;;  %v2508_v40 = vrot.slane %v2492_v26, %v7889_v17 }
 0x1a2   : > { %5528 = vmatprep.subr.bf16.mxu0 %v7393_v29  ;;  %v2515_v56 = vrot.slane %v2493_v7, %v7889_v17  ;;  %v2522_v36 = vrot.slane %v2494_v30, %v7889_v17  ;;  %v2535_v33 = vcombine.high %v2534_v31, %v2534_v31  ;;  %v2523_v38 = vcombine.high %v2501_v42, %v2501_v42 }
 0x1a3   : > { %v2524_v47 = vcombine.high %v2508_v40, %v2508_v40  ;;  %v8964_v34 = vrot.slane %v2534_v31, %v7889_v17 }
 0x1a4   : > { %v2525_v3 = vcombine.high %v2515_v56, %v2515_v56  ;;  %v2526_v39 = vcombine.high %v2522_v36, %v2522_v36  ;;  %v2549_v43 = vrot.slane %v2535_v33, %v7889_v17 }
 0x1a5   : > { %5529 = vmatpush1.bf16.msra.mxu0 %v7391_v37 }
 0x1a6   : > { %5530 = vmatprep.subr.bf16.mxu0 %v7396_v1 }
 0x1a9   : > { %5531 = vmatpush1.bf16.msra.mxu0 %v7394_v0 }
 0x1aa   : > { %5532 = vmatprep.subr.bf16.mxu0 %v7399_v63 }
 0x1ad   : > { %5533 = vmatpush1.bf16.msra.mxu0 %v7397_v61 }
 0x1ae   : > { %5534 = vmatprep.subr.bf16.mxu0 %v7402_v2 }
 0x1b1   : > { %5535 = vmatpush1.bf16.msra.mxu0 %v7400_v45 }
 0x1b2   : > { %5536 = vmatprep.subr.bf16.mxu0 %v7405_v8 }
 0x1b5   : > { %5537 = vmatpush1.bf16.msra.mxu0 %v7403_v9 }
 0x1b6   : > { %5538 = vmatprep.subr.bf16.mxu0 %v7408_v16 }
 0x1b9   : > { %5539 = vmatpush1.bf16.msra.mxu0 %v7406_v18 }
 0x1ba   : > { %5540 = vmatprep.subr.bf16.mxu0 %v7411_v62 }
 0x1bd   : > { %5541 = vmatpush1.bf16.msra.mxu0 %v7409_v21 }
 0x1be   : > { %5542 = vmatprep.subr.bf16.mxu0 %v7414_v22 }
 0x1c1   : > { %5543 = vmatpush1.bf16.msra.mxu0 %v7412_v23 }
 0x1c4   : > { %5545 = vmatmul.mubr.bf16.vlgmr.msra.gmra.mrb[12].mxu0 %v8375_v13 }
 0x1d7   : > { %v1960_v28 = vpop.f32.mrb[0].mxu0 }
 0x1d8   : > { %v1962_v25 = vpop.f32.mrb[1].mxu0 }
 0x1d9   : > { %v1973_v13 = vcombine.low %v1960_v28, %v1962_v25  ;;  %v1974_v32 = vcombine.high %v1960_v28, %v1962_v25  ;;  %v1964_v15 = vpop.f32.mrb[2].mxu0 }
 0x1da   : > { %v2977_v52 = vpop.f32.mrb[4].mxu1  ;;  %v1966_v20 = vpop.f32.mrb[3].mxu0 }
 0x1db   : > { %v1981_v6 = vrot.slane %v1973_v13, %v7889_v17  ;;  %v1988_v27 = vrot.slane %v1974_v32, %v7889_v17  ;;  %v2979_v57 = vpop.f32.mrb[5].mxu1  ;;  %v2023_v60 = vcombine.low %v1964_v15, %v1966_v20  ;;  %v2550_v32 = vcombine.high %v8964_v34, %v8964_v34 }
 0x1dc   : > { %v2990_v44 = vcombine.low %v2977_v52, %v2979_v57  ;;  %v2991_v11 = vcombine.high %v2977_v52, %v2979_v57  ;;  %v2981_v55 = vpop.f32.mrb[6].mxu1 }
 0x1dd   : > { %v1989_v12 = vcombine.high %v1981_v6, %v1981_v6  ;;  %v1990_v19 = vcombine.high %v1988_v27, %v1988_v27  ;;  %v1997_v35 = vrot.slane %v1981_v6, %v7889_v17  ;;  %v2004_v50 = vrot.slane %v1988_v27, %v7889_v17  ;;  %v2983_v54 = vpop.f32.mrb[7].mxu1 }
 0x1de   : > { %v2998_v59 = vrot.slane %v2990_v44, %v7889_v17  ;;  %v3005_v14 = vrot.slane %v2991_v11, %v7889_v17  ;;  %v2030_v46 = vrot.slane %v2023_v60, %v7889_v17  ;;  %v3040_v51 = vcombine.low %v2981_v55, %v2983_v54 }
 0x1df   : > { %v2011_v41 = vrot.slane %v1989_v12, %v7889_v17  ;;  %v2018_v49 = vrot.slane %v1990_v19, %v7889_v17  ;;  %v2019_v53 = vcombine.high %v1997_v35, %v1997_v35  ;;  %v2020_v4 = vcombine.high %v2004_v50, %v2004_v50 }
 0x1e0   : > { %v2564_v58 = vadd.f32 %v2501_v42, %v1997_v35  ;;  %v2568_v48 = vadd.f32 %v2508_v40, %v2004_v50  ;;  %v3006_v29 = vcombine.high %v2998_v59, %v2998_v59  ;;  %v3007_v37 = vcombine.high %v3005_v14, %v3005_v14 }
 0x1e1   : > { %v2021_v1 = vcombine.high %v2011_v41, %v2011_v41  ;;  %v2022_v0 = vcombine.high %v2018_v49, %v2018_v49  ;;  %v2565_v63 = vadd.f32 %v2515_v56, %v2011_v41  ;;  %v2566_v61 = vadd.f32 %v2523_v38, %v2019_v53 }
 0x1e2   : > { %v2569_v2 = vadd.f32 %v2522_v36, %v2018_v49  ;;  %v2570_v45 = vadd.f32 %v2524_v47, %v2020_v4  ;;  %v3014_v8 = vrot.slane %v2998_v59, %v7889_v17  ;;  %v3021_v9 = vrot.slane %v3005_v14, %v7889_v17 }
 0x1e3   : > { %v2567_v16 = vadd.f32 %v2525_v3, %v2021_v1  ;;  %v2571_v18 = vadd.f32 %v2526_v39, %v2022_v0  ;;  %v3028_v62 = vrot.slane %v3006_v29, %v7889_v17  ;;  %v3035_v21 = vrot.slane %v3007_v37, %v7889_v17 }
 0x1e4   : > { %v3036_v22 = vcombine.high %v3014_v8, %v3014_v8  ;;  %v3037_v23 = vcombine.high %v3021_v9, %v3021_v9  ;;  %v3077_v24 = vadd.f32 %v3014_v8, %v2564_v58  ;;  %v3081_v26 = vadd.f32 %v3021_v9, %v2568_v48 }
 0x1e5   : > { %v3038_v7 = vcombine.high %v3028_v62, %v3028_v62  ;;  %v3039_v30 = vcombine.high %v3035_v21, %v3035_v21  ;;  %v3078_v31 = vadd.f32 %v3028_v62, %v2565_v63  ;;  %v3082_v42 = vadd.f32 %v3035_v21, %v2569_v2 }
 0x1e6   : > { %v3079_v40 = vadd.f32 %v3036_v22, %v2566_v61  ;;  %v3083_v56 = vadd.f32 %v3037_v23, %v2570_v45  ;;  %v2031_v28 = vcombine.high %v2030_v46, %v2030_v46  ;;  %v2038_v36 = vrot.slane %v2030_v46, %v7889_v17 }
 0x1e7   : > { %v3080_v33 = vadd.f32 %v3038_v7, %v2567_v16  ;;  %v3084_v25 = vadd.f32 %v3039_v30, %v2571_v18  ;;  %v3047_v13 = vrot.slane %v3040_v51, %v7889_v17  ;;  %v2551_v3 = vcombine.high %v2549_v43, %v2549_v43 }
 0x1e8   : > { %v2045_v15 = vrot.slane %v2031_v28, %v7889_v17  ;;  %v2046_v38 = vcombine.high %v2038_v36, %v2038_v36  ;;  %v2572_v47 = vadd.f32 %v8964_v34, %v2038_v36 }
 0x1e9   : > { %v3048_v52 = vcombine.high %v3047_v13, %v3047_v13  ;;  %v3055_v20 = vrot.slane %v3047_v13, %v7889_v17 }
 0x1ea   : > { %v2047_v6 = vcombine.high %v2045_v15, %v2045_v15  ;;  %v2573_v27 = vadd.f32 %v2549_v43, %v2045_v15  ;;  %v2574_v57 = vadd.f32 %v2550_v32, %v2046_v38 }
 0x1eb   : > { %v3062_v60 = vrot.slane %v3048_v52, %v7889_v17  ;;  %v3063_v39 = vcombine.high %v3055_v20, %v3055_v20  ;;  %v8988_v44 = vadd.f32 %v3055_v20, %v2572_v47 }
 0x1ec   : > { %v2575_v11 = vadd.f32 %v2551_v3, %v2047_v6 }
 0x1ed   : > { %v3064_v55 = vcombine.high %v3062_v60, %v3062_v60  ;;  %v8990_v12 = vadd.f32 %v3062_v60, %v2573_v27  ;;  %v8992_v19 = vadd.f32 %v3063_v39, %v2574_v57 }
 0x1ef   : > { %v8994_v35 = vadd.f32 %v3064_v55, %v2575_v11 }
 0x217   : > { %v3489_v34 = vpop.f32.mrb[4].mxu0 }
 0x218   : > { %v3491_v50 = vpop.f32.mrb[5].mxu0 }
 0x219   : > { %v3502_v54 = vcombine.low %v3489_v34, %v3491_v50  ;;  %v3503_v59 = vcombine.high %v3489_v34, %v3491_v50  ;;  %v3493_v14 = vpop.f32.mrb[6].mxu0 }
 0x21a   : > { %v4005_v43 = vpop.f32.mrb[8].mxu1  ;;  %v3495_v46 = vpop.f32.mrb[7].mxu0 }
 0x21b   : > { %v3510_v51 = vrot.slane %v3502_v54, %v7889_v17  ;;  %v3517_v41 = vrot.slane %v3503_v59, %v7889_v17  ;;  %v4007_v49 = vpop.f32.mrb[9].mxu1  ;;  %v3552_v53 = vcombine.low %v3493_v14, %v3495_v46 }
 0x21c   : > { %v4018_v4 = vcombine.low %v4005_v43, %v4007_v49  ;;  %v4019_v58 = vcombine.high %v4005_v43, %v4007_v49  ;;  %v4009_v48 = vpop.f32.mrb[10].mxu1 }
 0x21d   : > { %v3518_v29 = vcombine.high %v3510_v51, %v3510_v51  ;;  %v3519_v37 = vcombine.high %v3517_v41, %v3517_v41  ;;  %v3526_v1 = vrot.slane %v3510_v51, %v7889_v17  ;;  %v3533_v0 = vrot.slane %v3517_v41, %v7889_v17  ;;  %v4011_v63 = vpop.f32.mrb[11].mxu1 }
 0x21e   : > { %v4026_v61 = vrot.slane %v4018_v4, %v7889_v17  ;;  %v4033_v2 = vrot.slane %v4019_v58, %v7889_v17  ;;  %v3559_v45 = vrot.slane %v3552_v53, %v7889_v17  ;;  %v4068_v8 = vcombine.low %v4009_v48, %v4011_v63 }
 0x21f   : > { %v3540_v9 = vrot.slane %v3518_v29, %v7889_v17  ;;  %v3547_v16 = vrot.slane %v3519_v37, %v7889_v17  ;;  %v3548_v18 = vcombine.high %v3526_v1, %v3526_v1  ;;  %v3549_v62 = vcombine.high %v3533_v0, %v3533_v0 }
 0x220   : > { %v3589_v21 = vadd.f32 %v3526_v1, %v3077_v24  ;;  %v3593_v22 = vadd.f32 %v3533_v0, %v3081_v26  ;;  %v4034_v23 = vcombine.high %v4026_v61, %v4026_v61  ;;  %v4035_v7 = vcombine.high %v4033_v2, %v4033_v2 }
 0x221   : > { %v3550_v30 = vcombine.high %v3540_v9, %v3540_v9  ;;  %v3551_v28 = vcombine.high %v3547_v16, %v3547_v16  ;;  %v3590_v36 = vadd.f32 %v3540_v9, %v3078_v31  ;;  %v3591_v13 = vadd.f32 %v3548_v18, %v3079_v40 }
 0x222   : > { %v3594_v32 = vadd.f32 %v3547_v16, %v3082_v42  ;;  %v3595_v15 = vadd.f32 %v3549_v62, %v3083_v56  ;;  %v4042_v38 = vrot.slane %v4026_v61, %v7889_v17  ;;  %v4049_v47 = vrot.slane %v4033_v2, %v7889_v17 }
 0x223   : > { %v3592_v52 = vadd.f32 %v3550_v30, %v3080_v33  ;;  %v3596_v20 = vadd.f32 %v3551_v28, %v3084_v25  ;;  %v4056_v3 = vrot.slane %v4034_v23, %v7889_v17  ;;  %v4063_v6 = vrot.slane %v4035_v7, %v7889_v17 }
 0x224   : > { %v4064_v24 = vcombine.high %v4042_v38, %v4042_v38  ;;  %v4065_v26 = vcombine.high %v4049_v47, %v4049_v47  ;;  %v4105_v27 = vadd.f32 %v4042_v38, %v3589_v21  ;;  %v4109_v57 = vadd.f32 %v4049_v47, %v3593_v22 }
 0x225   : > { %v4066_v60 = vcombine.high %v4056_v3, %v4056_v3  ;;  %v4067_v39 = vcombine.high %v4063_v6, %v4063_v6  ;;  %v4106_v31 = vadd.f32 %v4056_v3, %v3590_v36  ;;  %v4110_v40 = vadd.f32 %v4063_v6, %v3594_v32 }
 0x226   : > { %v4107_v42 = vadd.f32 %v4064_v24, %v3591_v13  ;;  %v4111_v56 = vadd.f32 %v4065_v26, %v3595_v15  ;;  %v3560_v11 = vcombine.high %v3559_v45, %v3559_v45  ;;  %v3567_v55 = vrot.slane %v3559_v45, %v7889_v17 }
 0x227   : > { %v4108_v34 = vadd.f32 %v4066_v60, %v3592_v52  ;;  %v4112_v33 = vadd.f32 %v4067_v39, %v3596_v20  ;;  %v4075_v25 = vrot.slane %v4068_v8, %v7889_v17 }
 0x228   : > { %v3574_v50 = vrot.slane %v3560_v11, %v7889_v17  ;;  %v3575_v54 = vcombine.high %v3567_v55, %v3567_v55  ;;  %v3597_v59 = vadd.f32 %v3567_v55, %v8988_v44 }
 0x229   : > { %v4076_v14 = vcombine.high %v4075_v25, %v4075_v25  ;;  %v4083_v43 = vrot.slane %v4075_v25, %v7889_v17 }
 0x22a   : > { %v3576_v46 = vcombine.high %v3574_v50, %v3574_v50  ;;  %v3598_v51 = vadd.f32 %v3574_v50, %v8990_v12  ;;  %v3599_v41 = vadd.f32 %v3575_v54, %v8992_v19 }
 0x22b   : > { %v4090_v49 = vrot.slane %v4076_v14, %v7889_v17  ;;  %v4091_v53 = vcombine.high %v4083_v43, %v4083_v43  ;;  %v9017_v4 = vadd.f32 %v4083_v43, %v3597_v59 }
 0x22c   : > { %v3600_v58 = vadd.f32 %v3576_v46, %v8994_v35 }
 0x22d   : > { %v4092_v48 = vcombine.high %v4090_v49, %v4090_v49  ;;  %v9020_v29 = vadd.f32 %v4090_v49, %v3598_v51  ;;  %v9022_v37 = vadd.f32 %v4091_v53, %v3599_v41 }
 0x22f   : > { %v9024_v44 = vadd.f32 %v4092_v48, %v3600_v58 }
 0x257   : > { %v4518_v1 = vpop.f32.mrb[8].mxu0 }
 0x258   : > { %v4520_v0 = vpop.f32.mrb[9].mxu0 }
 0x259   : > { %v4531_v63 = vcombine.low %v4518_v1, %v4520_v0  ;;  %v4532_v12 = vcombine.high %v4518_v1, %v4520_v0  ;;  %v4522_v61 = vpop.f32.mrb[10].mxu0 }
 0x25a   : > { %v5030_v19 = vpop.f32.mrb[12].mxu1  ;;  %v4524_v2 = vpop.f32.mrb[11].mxu0 }
 0x25b   : > { %v4539_v45 = vrot.slane %v4531_v63, %v7889_v17  ;;  %v4546_v8 = vrot.slane %v4532_v12, %v7889_v17  ;;  %v5032_v9 = vpop.f32.mrb[13].mxu1  ;;  %v4581_v35 = vcombine.low %v4522_v61, %v4524_v2 }
 0x25c   : > { %v5043_v16 = vcombine.low %v5030_v19, %v5032_v9  ;;  %v5044_v18 = vcombine.high %v5030_v19, %v5032_v9  ;;  %v5034_v62 = vpop.f32.mrb[14].mxu1 }
 0x25d   : > { %v4547_v21 = vcombine.high %v4539_v45, %v4539_v45  ;;  %v4548_v22 = vcombine.high %v4546_v8, %v4546_v8  ;;  %v4555_v23 = vrot.slane %v4539_v45, %v7889_v17  ;;  %v4562_v7 = vrot.slane %v4546_v8, %v7889_v17  ;;  %v5036_v30 = vpop.f32.mrb[15].mxu1 }
 0x25e   : > { %v5051_v28 = vrot.slane %v5043_v16, %v7889_v17  ;;  %v5058_v36 = vrot.slane %v5044_v18, %v7889_v17  ;;  %v4588_v13 = vrot.slane %v4581_v35, %v7889_v17  ;;  %v5093_v32 = vcombine.low %v5034_v62, %v5036_v30 }
 0x25f   : > { %v4569_v15 = vrot.slane %v4547_v21, %v7889_v17  ;;  %v4576_v38 = vrot.slane %v4548_v22, %v7889_v17  ;;  %v4577_v47 = vcombine.high %v4555_v23, %v4555_v23  ;;  %v4578_v52 = vcombine.high %v4562_v7, %v4562_v7 }
 0x260   : > { %v4618_v20 = vadd.f32 %v4555_v23, %v4105_v27  ;;  %v4622_v3 = vadd.f32 %v4562_v7, %v4109_v57  ;;  %v5059_v6 = vcombine.high %v5051_v28, %v5051_v28  ;;  %v5060_v24 = vcombine.high %v5058_v36, %v5058_v36 }
 0x261   : > { %v4579_v26 = vcombine.high %v4569_v15, %v4569_v15  ;;  %v4580_v60 = vcombine.high %v4576_v38, %v4576_v38  ;;  %v4619_v39 = vadd.f32 %v4569_v15, %v4106_v31  ;;  %v4620_v11 = vadd.f32 %v4577_v47, %v4107_v42 }
 0x262   : > { %v4623_v55 = vadd.f32 %v4576_v38, %v4110_v40  ;;  %v4624_v25 = vadd.f32 %v4578_v52, %v4111_v56  ;;  %v5067_v50 = vrot.slane %v5051_v28, %v7889_v17  ;;  %v5074_v54 = vrot.slane %v5058_v36, %v7889_v17 }
 0x263   : > { %v4621_v59 = vadd.f32 %v4579_v26, %v4108_v34  ;;  %v4625_v14 = vadd.f32 %v4580_v60, %v4112_v33  ;;  %v5081_v43 = vrot.slane %v5059_v6, %v7889_v17  ;;  %v5088_v46 = vrot.slane %v5060_v24, %v7889_v17 }
 0x264   : > { %v5089_v27 = vcombine.high %v5067_v50, %v5067_v50  ;;  %v5090_v57 = vcombine.high %v5074_v54, %v5074_v54  ;;  %v9039_v51 = vadd.f32 %v5067_v50, %v4618_v20  ;;  %v9041_v41 = vadd.f32 %v5074_v54, %v4622_v3 }
 0x265   : > { %v5091_v31 = vcombine.high %v5081_v43, %v5081_v43  ;;  %v5092_v42 = vcombine.high %v5088_v46, %v5088_v46  ;;  %v9043_v40 = vadd.f32 %v5081_v43, %v4619_v39  ;;  %v9045_v56 = vadd.f32 %v5088_v46, %v4623_v55 }
 0x266   : > { %v9047_v49 = vadd.f32 %v5089_v27, %v4620_v11  ;;  %v9049_v34 = vadd.f32 %v5090_v57, %v4624_v25  ;;  %v4589_v33 = vcombine.high %v4588_v13, %v4588_v13  ;;  %v4596_v53 = vrot.slane %v4588_v13, %v7889_v17 }
 0x267   : > { %v9052_v58 = vadd.f32 %v5091_v31, %v4621_v59  ;;  %v9054_v48 = vadd.f32 %v5092_v42, %v4625_v14  ;;  %v5100_v1 = vrot.slane %v5093_v32, %v7889_v17  ;;  %v5666_v23 = vsub.s32 1, %v7589_v5 }
 0x268   : > { %v4603_v0 = vrot.slane %v4589_v33, %v7889_v17  ;;  %v4604_v63 = vcombine.high %v4596_v53, %v4596_v53  ;;  %v4626_v12 = vadd.f32 %v4596_v53, %v9017_v4 }
 0x269   : > { %v5101_v61 = vcombine.high %v5100_v1, %v5100_v1  ;;  %v5108_v19 = vrot.slane %v5100_v1, %v7889_v17 }
 0x26a   : > { %v4605_v2 = vcombine.high %v4603_v0, %v4603_v0  ;;  %v4627_v45 = vadd.f32 %v4603_v0, %v9020_v29  ;;  %v4628_v8 = vadd.f32 %v4604_v63, %v9022_v37  ;;  %v5658_v29 = vld [vmem:[%s9226_s10] sm:$0x3] }
 0x26b   : > { %v5115_v9 = vrot.slane %v5101_v61, %v7889_v17  ;;  %v5116_v35 = vcombine.high %v5108_v19, %v5108_v19  ;;  %v9063_v16 = vadd.f32 %v5108_v19, %v4626_v12  ;;  %v5707_v37 = vld [vmem:[%s9227_s11] sm:$0x3]  ;;  %v5663_v7 = vrot.slane %v5658_v29, %v7602_v10 }
 0x26c   : > { %v4629_v18 = vadd.f32 %v4605_v2, %v9024_v44  ;;  %v5667_v44 = vrot.slane %v5658_v29, %v5666_v23  ;;  %v5712_v30 = vrot.slane %v5707_v37, %v7602_v10  ;;  %v5716_v28 = vrot.slane %v5707_v37, %v5666_v23 }
 0x26d   : > { %v5117_v62 = vcombine.high %v5115_v9, %v5115_v9  ;;  %v9066_v21 = vadd.f32 %v5115_v9, %v4627_v45  ;;  %v9068_v22 = vadd.f32 %v5116_v35, %v4628_v8 }
 0x26e   : > { %v5668_v36 = vcombine.low %v5663_v7, %v5667_v44  ;;  %v5717_v13 = vcombine.low %v5712_v30, %v5716_v28 }
 0x26f   : > { %v9070_v4 = vadd.f32 %v5117_v62, %v4629_v18 }
 0x270   : > { %v5675_v32 = vrot.slane %v5668_v36, %v7889_v17  ;;  %v5724_v5 = vrot.slane %v5717_v13, %v7889_v17 }
 0x272   : > { %v5676_v47 = vcombine.high %v5675_v32, %v5675_v32  ;;  %v9084_v6 = vrot.slane %v5675_v32, %v7889_v17  ;;  %v5725_v24 = vcombine.high %v5724_v5, %v5724_v5  ;;  %v9087_v26 = vrot.slane %v5724_v5, %v7889_v17 }
 0x274   : > { %v9092_v55 = vrot.slane %v5676_v47, %v7889_v17  ;;  %v9098_v14 = vcombine.high %v9084_v6, %v9084_v6  ;;  %v9101_v43 = vrot.slane %v5725_v24, %v7889_v17  ;;  %v9105_v46 = vcombine.high %v9087_v26, %v9087_v26 }
 0x297   : > { %v5546_v15 = vpop.f32.mrb[12].mxu0 }
 0x298   : > { %v5548_v38 = vpop.f32.mrb[13].mxu0 }
 0x299   : > { %v5559_v52 = vcombine.low %v5546_v15, %v5548_v38  ;;  %v5560_v20 = vcombine.high %v5546_v15, %v5548_v38  ;;  %v5550_v3 = vpop.f32.mrb[14].mxu0 }
 0x29a   : > { %v5552_v10 = vpop.f32.mrb[15].mxu0 }
 0x29b   : > { %v5567_v60 = vrot.slane %v5559_v52, %v7889_v17  ;;  %v5574_v39 = vrot.slane %v5560_v20, %v7889_v17  ;;  %v5609_v11 = vcombine.low %v5550_v3, %v5552_v10 }
 0x29d   : > { %v5575_v25 = vcombine.high %v5567_v60, %v5567_v60  ;;  %v5576_v50 = vcombine.high %v5574_v39, %v5574_v39  ;;  %v5583_v54 = vrot.slane %v5567_v60, %v7889_v17  ;;  %v5590_v59 = vrot.slane %v5574_v39, %v7889_v17 }
 0x29e   : > { %v5616_v27 = vrot.slane %v5609_v11, %v7889_v17 }
 0x29f   : > { %v5597_v57 = vrot.slane %v5575_v25, %v7889_v17  ;;  %v5604_v31 = vrot.slane %v5576_v50, %v7889_v17  ;;  %v5605_v42 = vcombine.high %v5583_v54, %v5583_v54  ;;  %v5606_v33 = vcombine.high %v5590_v59, %v5590_v59 }
 0x2a0   : > { %v5646_v53 = vadd.f32 %v5583_v54, %v9039_v51  ;;  %v5650_v1 = vadd.f32 %v5590_v59, %v9041_v41  ;;  %v5617_v0 = vcombine.high %v5616_v27, %v5616_v27  ;;  %v5624_v63 = vrot.slane %v5616_v27, %v7889_v17 }
 0x2a1   : > { %v5607_v12 = vcombine.high %v5597_v57, %v5597_v57  ;;  %v5608_v61 = vcombine.high %v5604_v31, %v5604_v31  ;;  %v5647_v19 = vadd.f32 %v5597_v57, %v9043_v40  ;;  %v5648_v2 = vadd.f32 %v5605_v42, %v9047_v49 }
 0x2a2   : > { %v5651_v45 = vadd.f32 %v5604_v31, %v9045_v56  ;;  %v5652_v8 = vadd.f32 %v5606_v33, %v9049_v34  ;;  %v5695_v9 = vmul.f32 %v9084_v6, %v5646_v53  ;;  %v5699_v35 = vmul.f32 %v9092_v55, %v5650_v1 }
 0x2a3   : > { %v5649_v51 = vadd.f32 %v5607_v12, %v9052_v58  ;;  %v5653_v41 = vadd.f32 %v5608_v61, %v9054_v48  ;;  %v5696_v18 = vmul.f32 %v9092_v55, %v5647_v19  ;;  %v5697_v62 = vmul.f32 %v9098_v14, %v5648_v2 }
 0x2a4   : > { %v5700_v40 = vmul.f32 %v9098_v14, %v5651_v45  ;;  %v5701_v49 = vmul.f32 %v9084_v6, %v5652_v8  ;;  %v5744_v56 = vadd.f32 %v9087_v26, %v5695_v9  ;;  %v5748_v34 = vadd.f32 %v9101_v43, %v5699_v35 }
 0x2a5   : > { %v5698_v23 = vmul.f32 %v9084_v6, %v5649_v51  ;;  %v5702_v29 = vmul.f32 %v9092_v55, %v5653_v41  ;;  %v5745_v58 = vadd.f32 %v9101_v43, %v5696_v18  ;;  %v5746_v48 = vadd.f32 %v9105_v46, %v5697_v62 }
 0x2a6   : > { %v5749_v37 = vadd.f32 %v9105_v46, %v5700_v40  ;;  %v5750_v7 = vadd.f32 %v9087_v26, %v5701_v49  ;;  %v6922_v44 = vmul.f32 -1.442695, %v5744_v56  ;;  %v6926_v32 = vmul.f32 -1.442695, %v5748_v34 }
 0x2a7   : > { %v5747_v30 = vadd.f32 %v9087_v26, %v5698_v23  ;;  %v5751_v28 = vadd.f32 %v9101_v43, %v5702_v29  ;;  %v6923_v36 = vmul.f32 -1.442695, %v5745_v58  ;;  %v6924_v13 = vmul.f32 -1.442695, %v5746_v48 }
 0x2a8   : > { %7415 = vpow2.f32 %v6922_v44  ;;  %v6927_v5 = vmul.f32 -1.442695, %v5749_v37  ;;  %v5631_v15 = vrot.slane %v5617_v0, %v7889_v17  ;;  %v6928_v47 = vmul.f32 -1.442695, %v5750_v7 }
 0x2a9   : > { %7417 = vpow2.f32 %v6923_v36  ;;  %v6925_v38 = vmul.f32 -1.442695, %v5747_v30  ;;  %v5632_v52 = vcombine.high %v5624_v63, %v5624_v63  ;;  %v5654_v3 = vadd.f32 %v5624_v63, %v9063_v16  ;;  %v5832_v36 = vld [vmem:[%s9161_s21] sm:$0x7] }
 0x2aa   : > { %7419 = vpow2.f32 %v6924_v13  ;;  %v5633_v20 = vcombine.high %v5631_v15, %v5631_v15  ;;  %v5655_v24 = vadd.f32 %v5631_v15, %v9066_v21  ;;  %v6929_v10 = vmul.f32 -1.442695, %v5751_v28  ;;  %v5828_v28 = vld [vmem:[%s9155_s17] sm:$0x7] }
 0x2ab   : > { %7421 = vpow2.f32 %v6925_v38  ;;  %v5656_v60 = vadd.f32 %v5632_v52, %v9068_v22  ;;  %v5703_v11 = vmul.f32 %v9098_v14, %v5654_v3 }
 0x2ac   : > { %7423 = vpow2.f32 %v6926_v32  ;;  %v5657_v39 = vadd.f32 %v5633_v20, %v9070_v4  ;;  %v5704_v25 = vmul.f32 %v9084_v6, %v5655_v24 }
 0x2ad   : > { %7425 = vpow2.f32 %v6927_v5  ;;  %v5705_v50 = vmul.f32 %v9092_v55, %v5656_v60  ;;  %v5752_v54 = vadd.f32 %v9105_v46, %v5703_v11  ;;  %v5833_v60 = vld [vmem:[%s9161_s21 + $0x4] sm:$0x7] }
 0x2ae   : > { %7427 = vpow2.f32 %v6928_v47  ;;  %v5753_v16 = vadd.f32 %v9087_v26, %v5704_v25  ;;  %v5706_v27 = vmul.f32 %v9098_v14, %v5657_v39 }
 0x2af   : > { %7429 = vpow2.f32 %v6929_v10  ;;  %v5754_v21 = vadd.f32 %v9101_v43, %v5705_v50  ;;  %v6930_v59 = vmul.f32 -1.442695, %v5752_v54  ;;  %v5829_v10 = vld [vmem:[%s9155_s17 + $0x4] sm:$0x7] }
 0x2b0   : > { %v6931_v22 = vmul.f32 -1.442695, %v5753_v16  ;;  %v5755_v26 = vadd.f32 %v9105_v46, %v5706_v27 }
 0x2b1   : > { %v6932_v4 = vmul.f32 -1.442695, %v5754_v21  ;;  %7431 = vpow2.f32 %v6930_v59 }
 0x2b2   : > { %v7416_v57 = vpop.eup %7415  ;;  %7433 = vpow2.f32 %v6931_v22  ;;  %v6933_v2 = vmul.f32 -1.442695, %v5755_v26 }
 0x2b3   : > { %v7418_v31 = vpop.eup %7417  ;;  %v5792_v6 = vadd.f32 1.0, %v7416_v57  ;;  %7435 = vpow2.f32 %v6932_v4 }
 0x2b4   : > { %v7420_v42 = vpop.eup %7419  ;;  %v5793_v55 = vadd.f32 1.0, %v7418_v31 }
 0x2b5   : > { %v7422_v33 = vpop.eup %7421  ;;  %v5794_v53 = vadd.f32 1.0, %v7420_v42  ;;  %7437 = vrcp.f32 %v5792_v6 }
 0x2b6   : > { %v7424_v1 = vpop.eup %7423  ;;  %v5795_v43 = vadd.f32 1.0, %v7422_v33  ;;  %7439 = vrcp.f32 %v5793_v55 }
 0x2b7   : > { %v7426_v0 = vpop.eup %7425  ;;  %v5796_v63 = vadd.f32 1.0, %v7424_v1  ;;  %7441 = vrcp.f32 %v5794_v53  ;;  %v5830_v1 = vld [vmem:[%s9155_s17 + $0x8] sm:$0x7] }
 0x2b8   : > { %v7428_v14 = vpop.eup %7427  ;;  %v5797_v12 = vadd.f32 1.0, %v7426_v0  ;;  %7443 = vrcp.f32 %v5795_v43  ;;  %v5834_v43 = vld [vmem:[%s9161_s21 + $0x8] sm:$0x7] }
 0x2b9   : > { %v7430_v61 = vpop.eup %7429  ;;  %v5798_v19 = vadd.f32 1.0, %v7428_v14  ;;  %7445 = vrcp.f32 %v5796_v63 }
 0x2ba   : > { %v5799_v45 = vadd.f32 1.0, %v7430_v61  ;;  %7447 = vrcp.f32 %v5797_v12 }
 0x2bb   : > { %7449 = vrcp.f32 %v5798_v19  ;;  %v7432_v8 = vpop.eup %7431 }
 0x2bc   : > { %7451 = vrcp.f32 %v5799_v45  ;;  %v7434_v46 = vpop.eup %7433  ;;  %v5800_v9 = vadd.f32 1.0, %v7432_v8 }
 0x2bd   : > { %7453 = vpow2.f32 %v6933_v2  ;;  %v7436_v35 = vpop.eup %7435  ;;  %v5801_v51 = vadd.f32 1.0, %v7434_v46 }
 0x2be   : > { %v5802_v18 = vadd.f32 1.0, %v7436_v35  ;;  %7455 = vrcp.f32 %v5800_v9 }
 0x2bf   : > { %v7438_v41 = vpop.eup %7437  ;;  %7457 = vrcp.f32 %v5801_v51 }
 0x2c0   : > { %v7440_v62 = vpop.eup %7439  ;;  %7459 = vrcp.f32 %v5802_v18 }
 0x2c1   : > { %v7442_v40 = vpop.eup %7441  ;;  %v5848_v49 = vcombine.low %v7438_v41, %v7440_v62  ;;  %v5831_v62 = vld [vmem:[%s9155_s17 + $0xc] sm:$0x7] }
 0x2c2   : > { %v7444_v56 = vpop.eup %7443  ;;  %v5862_v29 = vrot.slane %v7442_v40, %v7889_v17  ;;  %v5835_v40 = vld [vmem:[%s9161_s21 + $0xc] sm:$0x7] }
 0x2c3   : > { %v7446_v34 = vpop.eup %7445  ;;  %v5855_v23 = vrot.slane %v5848_v49, %v7889_v17 }
 0x2c4   : > { %v7448_v58 = vpop.eup %7447  ;;  %v5871_v48 = vcombine.low %v7444_v56, %v7446_v34 }
 0x2c5   : > { %v7450_v37 = vpop.eup %7449  ;;  %v5863_v7 = vcombine.low %v5855_v23, %v5862_v29  ;;  %v5948_v44 = vcombine.high %v5855_v23, %v5862_v29  ;;  %v5885_v32 = vrot.slane %v7448_v58, %v7889_v17 }
 0x2c6   : > { %v7452_v30 = vpop.eup %7451  ;;  %v5878_v13 = vrot.slane %v5871_v48, %v7889_v17 }
 0x2c7   : > { %v7454_v5 = vpop.eup %7453  ;;  %v5870_v15 = vrot.slane %v5863_v7, %v7889_v17  ;;  %v5894_v38 = vcombine.low %v7450_v37, %v7452_v30  ;;  %v5955_v47 = vrot.slane %v5948_v44, %v7889_v17 }
 0x2c8   : > { %v5886_v52 = vcombine.low %v5878_v13, %v5885_v32  ;;  %v5956_v20 = vcombine.high %v5878_v13, %v5885_v32  ;;  %v5803_v3 = vadd.f32 1.0, %v7454_v5  ;;  %v7456_v24 = vpop.eup %7455 }
 0x2c9   : > { %v5944_v39 = vmul.f32 %v5870_v15, %v5828_v28  ;;  %v5984_v11 = vmul.f32 %v5955_v47, %v5832_v36  ;;  %v5996_v25 = vmul.f32 %v5955_v47, %v5828_v28  ;;  %v6000_v50 = vmul.f32 %v5870_v15, %v5832_v36  ;;  %v7458_v54 = vpop.eup %7457 }
 0x2ca   : > { %v5893_v16 = vrot.slane %v5886_v52, %v7889_v17  ;;  %v5963_v21 = vrot.slane %v5956_v20, %v7889_v17  ;;  %7461 = vrcp.f32 %v5803_v3  ;;  %v5901_v59 = vrot.slane %v5894_v38, %v7889_v17  ;;  %v7460_v22 = vpop.eup %7459 }
 0x2cb   : > { %v5988_v27 = vsub.f32 %v5944_v39, %v5984_v11  ;;  %v6004_v4 = vadd.f32 %v6000_v50, %v5996_v25  ;;  %v5908_v57 = vrot.slane %v7456_v24, %v7889_v17  ;;  %v5917_v53 = vcombine.low %v7458_v54, %v7460_v22 }
 0x2cc   : > { %v5945_v31 = vmul.f32 %v5893_v16, %v5829_v10  ;;  %v5985_v6 = vmul.f32 %v5963_v21, %v5833_v60  ;;  %v5997_v42 = vmul.f32 %v5963_v21, %v5829_v10  ;;  %v6001_v55 = vmul.f32 %v5893_v16, %v5833_v60 }
 0x2cd   : > { %5992 = vst [vmem:[%s9177_s19] sm:$0x7] %v5988_v27  ;;  %6008 = vst [vmem:[%s9183_s24] sm:$0x7] %v6004_v4  ;;  %v5909_v33 = vcombine.low %v5901_v59, %v5908_v57  ;;  %v5964_v26 = vcombine.high %v5901_v59, %v5908_v57  ;;  %v5924_v8 = vrot.slane %v5917_v53, %v7889_v17 }
 0x2ce   : > { %v5989_v0 = vsub.f32 %v5945_v31, %v5985_v6  ;;  %v6005_v63 = vadd.f32 %v6001_v55, %v5997_v42 }
 0x2cf   : > { %v5916_v14 = vrot.slane %v5909_v33, %v7889_v17  ;;  %v5971_v12 = vrot.slane %v5964_v26, %v7889_v17 }
 0x2d0   : > { %5993 = vst [vmem:[%s9177_s19 + $0x4] sm:$0x7] %v5989_v0  ;;  %6009 = vst [vmem:[%s9183_s24 + $0x4] sm:$0x7] %v6005_v63 }
 0x2d1   : > { %v5946_v61 = vmul.f32 %v5916_v14, %v5830_v1  ;;  %v5986_v19 = vmul.f32 %v5971_v12, %v5834_v43  ;;  %v5998_v2 = vmul.f32 %v5971_v12, %v5830_v1  ;;  %v6002_v45 = vmul.f32 %v5916_v14, %v5834_v43 }
 0x2d3   : > { %v5990_v46 = vsub.f32 %v5946_v61, %v5986_v19  ;;  %v6006_v9 = vadd.f32 %v6002_v45, %v5998_v2 }
 0x2d4   : > { %v7462_v35 = vpop.eup %7461 }
 0x2d5   : > { %v5931_v51 = vrot.slane %v7462_v35, %v7889_v17  ;;  %5994 = vst [vmem:[%s9177_s19 + $0x8] sm:$0x7] %v5990_v46  ;;  %6010 = vst [vmem:[%s9183_s24 + $0x8] sm:$0x7] %v6006_v9 }
 0x2d7   : > { %v5932_v41 = vcombine.low %v5924_v8, %v5931_v51  ;;  %v5972_v18 = vcombine.high %v5924_v8, %v5931_v51 }
 0x2d9   : > { %v5939_v49 = vrot.slane %v5932_v41, %v7889_v17  ;;  %v5979_v56 = vrot.slane %v5972_v18, %v7889_v17 }
 0x2db   : > { %v5947_v34 = vmul.f32 %v5939_v49, %v5831_v62  ;;  %v5987_v23 = vmul.f32 %v5979_v56, %v5835_v40  ;;  %v5999_v29 = vmul.f32 %v5979_v56, %v5831_v62  ;;  %v6003_v58 = vmul.f32 %v5939_v49, %v5835_v40 }
 0x2dd   : > { %v5991_v48 = vsub.f32 %v5947_v34, %v5987_v23  ;;  %v6007_v37 = vadd.f32 %v6003_v58, %v5999_v29 }
 0x2df   : > { %5995 = vst [vmem:[%s9177_s19 + $0xc] sm:$0x7] %v5991_v48  ;;  %6011 = vst [vmem:[%s9183_s24 + $0xc] sm:$0x7] %v6007_v37 }
 0x2e0 PF: > { %s24_s27 = sadd.s32 1, %s7485_s27   ;;  %s9240_s25 = smov %s7481_s26 }
 0x2e1   : > { %p21_p5 = scmp.ge.s32.totalorder %s24_s27, 4   ;;  %s9241_s26 = smov %s9243_s28 }
 0x2e3   :  { %23 = sbr.rel (!%p21_p5) target bundleno = 2 (0x2), region = 144 }

</bundles_post_ra>
